<compile_context>
chip_gen: v7x
topology: tpu7x:2x2x1
jax: 0.10.0
libtpu: 0.0.40
codegen_flags: <defaults>
</compile_context>

<pallas_src>
import functools

import jax
import jax.numpy as jnp
from jax.experimental import pallas as pl
from jax.experimental.pallas import tpu as pltpu

_BN_EPS = 1e-5
_RATES = (3, 6, 9)


# ---------------------------------------------------------------------------
# Pallas kernel
# ---------------------------------------------------------------------------
def _aspp_fused_kernel(TH, H, W, P, rates,
                       xp_ref, w0_ref, w1_ref, w2_ref, w3_ref,
                       bconv_ref, wpc_ref, bp_ref,
                       w4_ref, b4_ref, wp4_ref,
                       o_ref, pool_sc):
    """All five branches + fused projection for one (image, output-row-tile) block.

    xp_ref   : (1, H + 2P, W + 2P, Cin)  max-halo zero-padded input (resident per image)
    w0_ref   : (Cin, Cb)                 1x1 branch weights (BN folded)
    w1..w3   : (9*Cin, Cb)               3x3 dilated branch weights, im2col-flattened
    bconv_ref: (4, Cb)                   per-branch BN shifts
    wpc_ref  : (4*Cb, Cp)                projection weights for the 4 conv branches
    bp_ref   : (1, Cp)                   projection BN shift
    w4_ref   : (Cin, Cb)                 pooling-branch 1x1 weights (BN folded)
    b4_ref   : (1, Cb)                   pooling-branch BN shift
    wp4_ref  : (Cb, Cp)                  projection weight slice for the pooling branch
    o_ref    : (1, TH, W, Cp)
    pool_sc  : (1, Cp) f32 VMEM scratch  per-image, already-projected pooling contribution
    """
    Cin = xp_ref.shape[-1]
    Cb = w0_ref.shape[-1]
    Cp = o_ref.shape[-1]
    row0 = pl.multiple_of(pl.program_id(1) * TH, TH)   # first output row of this tile

    # --- pooling branch: compute once per image, cache (already projected) in VMEM ----
    @pl.when(pl.program_id(1) == 0)
    def _():
        # zero padding => sum over padded image == sum over original image
        col = jnp.sum(xp_ref[0].astype(jnp.float32), axis=0)           # (Wp, Cin)
        mean = jnp.sum(col, axis=0, keepdims=True) * (1.0 / (H * W))   # (1, Cin)
        z4 = jnp.dot(mean.astype(w4_ref.dtype), w4_ref[...],
                     preferred_element_type=jnp.float32)
        y4 = jnp.maximum(z4 + b4_ref[...], 0.0).astype(wp4_ref.dtype)  # (1, Cb)
        pool_sc[...] = jnp.dot(y4, wp4_ref[...],
                               preferred_element_type=jnp.float32)     # (1, Cp)

    def window(dy, dx):
        # (TH, W, Cin) window of the padded input, offset (dy, dx) from the centre.
        return xp_ref[0, pl.ds(row0 + P + dy, TH), pl.ds(P + dx, W), :]

    w3x3 = (w1_ref, w2_ref, w3_ref)

    # --- branch 0: 1x1 conv + folded BN + ReLU, immediately projected ------------------
    x0 = window(0, 0).reshape(TH * W, Cin)
    z = jnp.dot(x0, w0_ref[...], preferred_element_type=jnp.float32)
    y = jnp.maximum(z + bconv_ref[0:1, :], 0.0).astype(wpc_ref.dtype)
    acc = jnp.dot(y, wpc_ref[0:Cb, :], preferred_element_type=jnp.float32)

    # --- branches 1..3: 3x3 dilated convs via im2col -> one big matmul per branch ------
    for bi, rate in enumerate(rates):
        taps = [window((ky - 1) * rate, (kx - 1) * rate)
                for ky in range(3) for kx in range(3)]
        xcol = jnp.concatenate(taps, axis=-1).reshape(TH * W, 9 * Cin)
        z = jnp.dot(xcol, w3x3[bi][...], preferred_element_type=jnp.float32)
        y = jnp.maximum(z + bconv_ref[bi + 1:bi + 2, :], 0.0).astype(wpc_ref.dtype)
        acc = acc + jnp.dot(y, wpc_ref[(bi + 1) * Cb:(bi + 2) * Cb, :],
                            preferred_element_type=jnp.float32)

    # --- pooling-branch rank-1 contribution (broadcast) + projection shift + ReLU ------
    out = acc + pool_sc[...] + bp_ref[...]
    o_ref[0] = jnp.maximum(out, 0.0).reshape(TH, W, Cp).astype(o_ref.dtype)


# ---------------------------------------------------------------------------
# Forward pass (Pallas)
# ---------------------------------------------------------------------------
def aspp_forward(x_nchw, params, row_tile=8):
    x = jnp.transpose(x_nchw, (0, 2, 3, 1))                  # NCHW -> NHWC
    N, H, W, Cin = x.shape
    dt = x.dtype

    w0, b0 = params["b0"]                                    # (1,1,Cin,Cb), (Cb,)
    Cb = w0.shape[-1]
    wp, bp = params["proj"]                                  # (1,1,5Cb,Cp), (Cp,)
    Cp = wp.shape[-1]
    w4, b4 = params["b4"]

    # Fold parameters into matmul-friendly shapes (im2col order = (ky, kx, cin)).
    w0_m = w0.reshape(Cin, Cb).astype(dt)                             # (Cin, Cb)
    w3x3 = [params[f"b{i + 1}"][0].reshape(9 * Cin, Cb).astype(dt)    # (9*Cin, Cb)
            for i in range(len(_RATES))]
    bconv = jnp.stack(
        [b0] + [params[f"b{i + 1}"][1] for i in range(len(_RATES))],
        axis=0).astype(jnp.float32)                                   # (4, Cb)
    wp_m = wp.reshape(5 * Cb, Cp).astype(dt)
    wp_conv = wp_m[:4 * Cb]                                           # (4*Cb, Cp)
    wp_pool = wp_m[4 * Cb:]                                           # (Cb, Cp)
    bp_m = bp.reshape(1, Cp).astype(jnp.float32)
    w4_m = w4.reshape(Cin, Cb).astype(dt)
    b4_m = b4.reshape(1, Cb).astype(jnp.float32)

    # One shared zero-padded copy of the input: max halo over all dilation rates.
    P = max(_RATES)                                          # 3x3 conv -> pad = dilation
    xp = jnp.pad(x, ((0, 0), (P, P), (P, P), (0, 0)))
    Hp, Wp = H + 2 * P, W + 2 * P

    TH = row_tile if H % row_tile == 0 else H                # output-row tile size
    R = H // TH

    kernel = functools.partial(_aspp_fused_kernel, TH, H, W, P, _RATES)
    out = pl.pallas_call(
        kernel,
        out_shape=jax.ShapeDtypeStruct((N, H, W, Cp), dt),
        grid_spec=pltpu.PrefetchScalarGridSpec(
            num_scalar_prefetch=0,
            grid=(N, R),
            in_specs=[
                # Same block index across the row axis -> padded image stays VMEM-resident.
                pl.BlockSpec((1, Hp, Wp, Cin), lambda n, r: (n, 0, 0, 0)),
                pl.BlockSpec((Cin, Cb), lambda n, r: (0, 0)),
                pl.BlockSpec((9 * Cin, Cb), lambda n, r: (0, 0)),
                pl.BlockSpec((9 * Cin, Cb), lambda n, r: (0, 0)),
                pl.BlockSpec((9 * Cin, Cb), lambda n, r: (0, 0)),
                pl.BlockSpec((4, Cb), lambda n, r: (0, 0)),
                pl.BlockSpec((4 * Cb, Cp), lambda n, r: (0, 0)),
                pl.BlockSpec((1, Cp), lambda n, r: (0, 0)),
                pl.BlockSpec((Cin, Cb), lambda n, r: (0, 0)),
                pl.BlockSpec((1, Cb), lambda n, r: (0, 0)),
                pl.BlockSpec((Cb, Cp), lambda n, r: (0, 0)),
            ],
            out_specs=pl.BlockSpec((1, TH, W, Cp), lambda n, r: (n, r, 0, 0)),
            scratch_shapes=[pltpu.VMEM((1, Cp), jnp.float32)],
        ),
        compiler_params=pltpu.CompilerParams(
            # Row axis is "arbitrary": the per-image pooled vector is computed at r == 0
            # and reused from scratch for the remaining row tiles of that image.
            dimension_semantics=("parallel", "arbitrary")),
    )(xp, w0_m, *w3x3, bconv, wp_conv, bp_m, w4_m, b4_m, wp_pool)

    # TODO(synk): nn.Dropout(0.5) is treated as identity (eval mode); PyTorch
    # training-mode stochastic dropout (framework RNG) is not reproduced.
    return jnp.transpose(out, (0, 3, 1, 2))                  # NHWC -> NCHW


# ---------------------------------------------------------------------------
# Parameter construction (deterministic, BN folded)
# ---------------------------------------------------------------------------
def _fold_bn(w_hwio, gamma, beta, mean, var, eps=_BN_EPS):
    scale = gamma / jnp.sqrt(var + eps)
    return w_hwio * scale, beta - mean * scale


def init_aspp_params(key, in_channels, out_channels):
    def bn_params(k, c):
        k1, k2, k3, k4 = jax.random.split(k, 4)
        gamma = 1.0 + 0.1 * jax.random.normal(k1, (c,), jnp.float32)
        beta = 0.1 * jax.random.normal(k2, (c,), jnp.float32)
        mean = 0.1 * jax.random.normal(k3, (c,), jnp.float32)
        var = 0.9 + 0.2 * jnp.abs(jax.random.normal(k4, (c,), jnp.float32))
        return gamma, beta, mean, var

    keys = iter(jax.random.split(key, 12))
    params = {}

    # branch 0: 1x1 conv + BN + ReLU
    w = 0.1 * jax.random.normal(next(keys), (1, 1, in_channels, out_channels), jnp.float32)
    params["b0"] = _fold_bn(w, *bn_params(next(keys), out_channels))
    # branches 1..3: 3x3 dilated convs (rates 3, 6, 9) + BN + ReLU
    for i in range(3):
        w = 0.1 * jax.random.normal(next(keys), (3, 3, in_channels, out_channels), jnp.float32)
        params[f"b{i + 1}"] = _fold_bn(w, *bn_params(next(keys), out_channels))
    # branch 4: pooling branch (1x1 conv) + BN + ReLU
    w = 0.1 * jax.random.normal(next(keys), (1, 1, in_channels, out_channels), jnp.float32)
    params["b4"] = _fold_bn(w, *bn_params(next(keys), out_channels))
    # projection: 1x1 conv (5*out_channels -> out_channels) + BN + ReLU + Dropout
    w = 0.1 * jax.random.normal(next(keys), (1, 1, 5 * out_channels, out_channels), jnp.float32)
    params["proj"] = _fold_bn(w, *bn_params(next(keys), out_channels))
    return params


# ---------------------------------------------------------------------------
# Pure-JAX reference
# ---------------------------------------------------------------------------
def _ref_conv_bn_relu(x_nhwc, w_hwio, bias, dilation):
    K = w_hwio.shape[0]
    pad = dilation * (K // 2)
    y = jax.lax.conv_general_dilated(
        x_nhwc, w_hwio, window_strides=(1, 1),
        padding=((pad, pad), (pad, pad)),
        rhs_dilation=(dilation, dilation),
        dimension_numbers=("NHWC", "HWIO", "NHWC"),
        precision=jax.lax.Precision.HIGHEST)
    return jnp.maximum(y + bias[None, None, None, :], 0.0)


def _ref_pool_bn_relu(x_nhwc, w_io, bias):
    N, H, W, _ = x_nhwc.shape
    m = jnp.mean(x_nhwc, axis=(1, 2))                        # (N, Cin)
    y = jnp.maximum(m @ w_io + bias[None, :], 0.0)           # (N, Cout)
    return jnp.broadcast_to(y[:, None, None, :], (N, H, W, y.shape[-1]))


def aspp_reference(x_nchw, params):
    x = jnp.transpose(x_nchw, (0, 2, 3, 1))
    branches = [_ref_conv_bn_relu(x, *params["b0"], dilation=1)]
    for i, rate in enumerate(_RATES):
        branches.append(_ref_conv_bn_relu(x, *params[f"b{i + 1}"], dilation=rate))
    w4, b4 = params["b4"]
    branches.append(_ref_pool_bn_relu(x, w4[0, 0], b4))
    cat = jnp.concatenate(branches, axis=-1)
    out = _ref_conv_bn_relu(cat, *params["proj"], dilation=1)
    return jnp.transpose(out, (0, 3, 1, 2))


# ---------------------------------------------------------------------------
if __name__ == "__main__":
    key = jax.random.PRNGKey(0)
    kx, kp = jax.random.split(key)

    N, C_IN, H, W = 2, 4, 16, 16
    C_OUT = 8

    x = jax.random.normal(kx, (N, C_IN, H, W), jnp.float32)   # NCHW, like PyTorch
    params = init_aspp_params(kp, C_IN, C_OUT)

    out = jax.block_until_ready(aspp_forward(x, params))
    ref = jax.block_until_ready(aspp_reference(x, params))

    assert out.shape == (N, C_OUT, H, W), out.shape
    err = float(jnp.max(jnp.abs(out - ref)))
    if err > 1e-2:
        raise AssertionError(f"Pallas ASPP mismatch vs reference, max abs err = {err}")
    print("KERNEL_OK")
</pallas_src>

<mosaic_0001>
module attributes {stable_mosaic.version = 11 : i64} {
  func.func @_aspp_fused_kernel(%arg0: i32, %arg1: i32, %arg2: memref<1x34x34x4xf32, #tpu.memory_space<vmem>>, %arg3: memref<4x8xf32, #tpu.memory_space<vmem>>, %arg4: memref<36x8xf32, #tpu.memory_space<vmem>>, %arg5: memref<36x8xf32, #tpu.memory_space<vmem>>, %arg6: memref<36x8xf32, #tpu.memory_space<vmem>>, %arg7: memref<4x8xf32, #tpu.memory_space<vmem>>, %arg8: memref<32x8xf32, #tpu.memory_space<vmem>>, %arg9: memref<1x8xf32, #tpu.memory_space<vmem>>, %arg10: memref<4x8xf32, #tpu.memory_space<vmem>>, %arg11: memref<1x8xf32, #tpu.memory_space<vmem>>, %arg12: memref<8x8xf32, #tpu.memory_space<vmem>>, %arg13: memref<1x8x16x8xf32, #tpu.memory_space<vmem>>, %arg14: memref<1x8xf32, #tpu.memory_space<vmem>>) attributes {dimension_semantics = [#tpu.dimension_semantics<parallel>, #tpu.dimension_semantics<arbitrary>], iteration_bounds = array<i64: 2, 2>, scalar_prefetch = 0 : i64, scratch_operands = 1 : i64, tpu.core_type = #tpu.core_type<tc>, window_params = [{transform_indices = @transform_0, window_bounds = array<i64: 1, 34, 34, 4>}, {pipeline_mode = #tpu.pipeline_mode<synchronous>, transform_indices = @transform_1, window_bounds = array<i64: 4, 8>}, {pipeline_mode = #tpu.pipeline_mode<synchronous>, transform_indices = @transform_2, window_bounds = array<i64: 36, 8>}, {pipeline_mode = #tpu.pipeline_mode<synchronous>, transform_indices = @transform_3, window_bounds = array<i64: 36, 8>}, {pipeline_mode = #tpu.pipeline_mode<synchronous>, transform_indices = @transform_4, window_bounds = array<i64: 36, 8>}, {pipeline_mode = #tpu.pipeline_mode<synchronous>, transform_indices = @transform_5, window_bounds = array<i64: 4, 8>}, {pipeline_mode = #tpu.pipeline_mode<synchronous>, transform_indices = @transform_6, window_bounds = array<i64: 32, 8>}, {pipeline_mode = #tpu.pipeline_mode<synchronous>, transform_indices = @transform_7, window_bounds = array<i64: 1, 8>}, {pipeline_mode = #tpu.pipeline_mode<synchronous>, transform_indices = @transform_8, window_bounds = array<i64: 4, 8>}, {pipeline_mode = #tpu.pipeline_mode<synchronous>, transform_indices = @transform_9, window_bounds = array<i64: 1, 8>}, {pipeline_mode = #tpu.pipeline_mode<synchronous>, transform_indices = @transform_10, window_bounds = array<i64: 8, 8>}, {transform_indices = @transform_11, window_bounds = array<i64: 1, 8, 16, 8>}]} {
    %c8_i32 = arith.constant 8 : i32
    %0 = arith.muli %arg1, %c8_i32 : i32
    %1 = tpu.assume_multiple %0, 8 : i32
    %c0_i32 = arith.constant 0 : i32
    %2 = arith.cmpi eq, %arg1, %c0_i32 : i32
    %3 = arith.extui %2 : i1 to i32
    %c0_i32_0 = arith.constant 0 : i32
    %4 = arith.cmpi ne, %3, %c0_i32_0 : i32
    scf.if %4 {
      %c0_167 = arith.constant 0 : index
      %c0_168 = arith.constant 0 : index
      %c0_169 = arith.constant 0 : index
      %c0_170 = arith.constant 0 : index
      %203 = vector.load %arg2[%c0_167, %c0_168, %c0_169, %c0_170] : memref<1x34x34x4xf32, #tpu.memory_space<vmem>>, vector<1x34x34x4xf32>
      %204 = vector.shape_cast %203 : vector<1x34x34x4xf32> to vector<34x34x4xf32>
      %cst_171 = arith.constant dense<0.000000e+00> : vector<34x4xf32>
      %205 = vector.multi_reduction <add>, %204, %cst_171 [0] : vector<34x34x4xf32> to vector<34x4xf32>
      %cst_172 = arith.constant dense<0.000000e+00> : vector<4xf32>
      %206 = vector.multi_reduction <add>, %205, %cst_172 [0] : vector<34x4xf32> to vector<4xf32>
      %207 = vector.shape_cast %206 : vector<4xf32> to vector<1x4xf32>
      %cst_173 = arith.constant 3.906250e-03 : f32
      %208 = vector.broadcast %cst_173 : f32 to vector<1x4xf32>
      %209 = arith.mulf %207, %208 : vector<1x4xf32>
      %c0_174 = arith.constant 0 : index
      %c0_175 = arith.constant 0 : index
      %210 = vector.load %arg10[%c0_174, %c0_175] : memref<4x8xf32, #tpu.memory_space<vmem>>, vector<4x8xf32>
      %cst_176 = arith.constant dense<0.000000e+00> : vector<1x8xf32>
      %211 = tpu.matmul %209, %210, %cst_176 {dimension_numbers = #tpu.dot_dimension_numbers<[1], [0], [0], [1], [0, 0, 1, 1], [], []>} : vector<1x4xf32>, vector<4x8xf32>, vector<1x8xf32> -> vector<1x8xf32>
      %c0_177 = arith.constant 0 : index
      %c0_178 = arith.constant 0 : index
      %212 = vector.load %arg11[%c0_177, %c0_178] : memref<1x8xf32, #tpu.memory_space<vmem>>, vector<1x8xf32>
      %213 = arith.addf %211, %212 : vector<1x8xf32>
      %cst_179 = arith.constant 0.000000e+00 : f32
      %214 = vector.broadcast %cst_179 : f32 to vector<1x8xf32>
      %215 = arith.maximumf %213, %214 : vector<1x8xf32>
      %c0_180 = arith.constant 0 : index
      %c0_181 = arith.constant 0 : index
      %216 = vector.load %arg12[%c0_180, %c0_181] : memref<8x8xf32, #tpu.memory_space<vmem>>, vector<8x8xf32>
      %cst_182 = arith.constant dense<0.000000e+00> : vector<1x8xf32>
      %217 = tpu.matmul %215, %216, %cst_182 {dimension_numbers = #tpu.dot_dimension_numbers<[1], [0], [0], [1], [0, 0, 1, 1], [], []>} : vector<1x8xf32>, vector<8x8xf32>, vector<1x8xf32> -> vector<1x8xf32>
      %c0_183 = arith.constant 0 : index
      %c0_184 = arith.constant 0 : index
      %218 = vector.load %arg14[%c0_183, %c0_184] : memref<1x8xf32, #tpu.memory_space<vmem>>, vector<1x8xf32>
      tpu.vector_store %arg14[%c0_183, %c0_184], %217 {strides = array<i32>} : memref<1x8xf32, #tpu.memory_space<vmem>>, vector<1x8xf32>,
    } else {
    }
    %c9_i32 = arith.constant 9 : i32
    %5 = arith.addi %1, %c9_i32 : i32
    %c0_i32_1 = arith.constant 0 : i32
    %6 = arith.addi %5, %c0_i32_1 : i32
    %c0 = arith.constant 0 : index
    %7 = arith.index_cast %6 : i32 to index
    %c9 = arith.constant 9 : index
    %c0_2 = arith.constant 0 : index
    %8 = vector.load %arg2[%c0, %7, %c9, %c0_2] : memref<1x34x34x4xf32, #tpu.memory_space<vmem>>, vector<1x8x16x4xf32>
    %9 = vector.shape_cast %8 : vector<1x8x16x4xf32> to vector<8x16x4xf32>
    %10 = vector.shape_cast %9 : vector<8x16x4xf32> to vector<128x4xf32>
    %c0_3 = arith.constant 0 : index
    %c0_4 = arith.constant 0 : index
    %11 = vector.load %arg3[%c0_3, %c0_4] : memref<4x8xf32, #tpu.memory_space<vmem>>, vector<4x8xf32>
    %cst = arith.constant dense<0.000000e+00> : vector<128x8xf32>
    %12 = tpu.matmul %10, %11, %cst {dimension_numbers = #tpu.dot_dimension_numbers<[1], [0], [0], [1], [0, 0, 1, 1], [], []>} : vector<128x4xf32>, vector<4x8xf32>, vector<128x8xf32> -> vector<128x8xf32>
    %c0_5 = arith.constant 0 : index
    %c0_6 = arith.constant 0 : index
    %13 = vector.load %arg7[%c0_5, %c0_6] : memref<4x8xf32, #tpu.memory_space<vmem>>, vector<1x8xf32>
    %14 = vector.broadcast %13 : vector<1x8xf32> to vector<128x8xf32>
    %15 = arith.addf %12, %14 : vector<128x8xf32>
    %cst_7 = arith.constant 0.000000e+00 : f32
    %16 = vector.broadcast %cst_7 : f32 to vector<128x8xf32>
    %17 = arith.maximumf %15, %16 : vector<128x8xf32>
    %c0_8 = arith.constant 0 : index
    %c0_9 = arith.constant 0 : index
    %18 = vector.load %arg8[%c0_8, %c0_9] : memref<32x8xf32, #tpu.memory_space<vmem>>, vector<8x8xf32>
    %cst_10 = arith.constant dense<0.000000e+00> : vector<128x8xf32>
    %19 = tpu.matmul %17, %18, %cst_10 {dimension_numbers = #tpu.dot_dimension_numbers<[1], [0], [0], [1], [0, 0, 1, 1], [], []>} : vector<128x8xf32>, vector<8x8xf32>, vector<128x8xf32> -> vector<128x8xf32>
    %c9_i32_11 = arith.constant 9 : i32
    %20 = arith.addi %1, %c9_i32_11 : i32
    %c-3_i32 = arith.constant -3 : i32
    %21 = arith.addi %20, %c-3_i32 : i32
    %c0_12 = arith.constant 0 : index
    %22 = arith.index_cast %21 : i32 to index
    %c6 = arith.constant 6 : index
    %c0_13 = arith.constant 0 : index
    %23 = vector.load %arg2[%c0_12, %22, %c6, %c0_13] : memref<1x34x34x4xf32, #tpu.memory_space<vmem>>, vector<1x8x16x4xf32>
    %24 = vector.shape_cast %23 : vector<1x8x16x4xf32> to vector<8x16x4xf32>
    %c9_i32_14 = arith.constant 9 : i32
    %25 = arith.addi %1, %c9_i32_14 : i32
    %c-3_i32_15 = arith.constant -3 : i32
    %26 = arith.addi %25, %c-3_i32_15 : i32
    %c0_16 = arith.constant 0 : index
    %27 = arith.index_cast %26 : i32 to index
    %c9_17 = arith.constant 9 : index
    %c0_18 = arith.constant 0 : index
    %28 = vector.load %arg2[%c0_16, %27, %c9_17, %c0_18] : memref<1x34x34x4xf32, #tpu.memory_space<vmem>>, vector<1x8x16x4xf32>
    %29 = vector.shape_cast %28 : vector<1x8x16x4xf32> to vector<8x16x4xf32>
    %c9_i32_19 = arith.constant 9 : i32
    %30 = arith.addi %1, %c9_i32_19 : i32
    %c-3_i32_20 = arith.constant -3 : i32
    %31 = arith.addi %30, %c-3_i32_20 : i32
    %c0_21 = arith.constant 0 : index
    %32 = arith.index_cast %31 : i32 to index
    %c12 = arith.constant 12 : index
    %c0_22 = arith.constant 0 : index
    %33 = vector.load %arg2[%c0_21, %32, %c12, %c0_22] : memref<1x34x34x4xf32, #tpu.memory_space<vmem>>, vector<1x8x16x4xf32>
    %34 = vector.shape_cast %33 : vector<1x8x16x4xf32> to vector<8x16x4xf32>
    %c9_i32_23 = arith.constant 9 : i32
    %35 = arith.addi %1, %c9_i32_23 : i32
    %c0_i32_24 = arith.constant 0 : i32
    %36 = arith.addi %35, %c0_i32_24 : i32
    %c0_25 = arith.constant 0 : index
    %37 = arith.index_cast %36 : i32 to index
    %c6_26 = arith.constant 6 : index
    %c0_27 = arith.constant 0 : index
    %38 = vector.load %arg2[%c0_25, %37, %c6_26, %c0_27] : memref<1x34x34x4xf32, #tpu.memory_space<vmem>>, vector<1x8x16x4xf32>
    %39 = vector.shape_cast %38 : vector<1x8x16x4xf32> to vector<8x16x4xf32>
    %c9_i32_28 = arith.constant 9 : i32
    %40 = arith.addi %1, %c9_i32_28 : i32
    %c0_i32_29 = arith.constant 0 : i32
    %41 = arith.addi %40, %c0_i32_29 : i32
    %c0_30 = arith.constant 0 : index
    %42 = arith.index_cast %41 : i32 to index
    %c9_31 = arith.constant 9 : index
    %c0_32 = arith.constant 0 : index
    %43 = vector.load %arg2[%c0_30, %42, %c9_31, %c0_32] : memref<1x34x34x4xf32, #tpu.memory_space<vmem>>, vector<1x8x16x4xf32>
    %44 = vector.shape_cast %43 : vector<1x8x16x4xf32> to vector<8x16x4xf32>
    %c9_i32_33 = arith.constant 9 : i32
    %45 = arith.addi %1, %c9_i32_33 : i32
    %c0_i32_34 = arith.constant 0 : i32
    %46 = arith.addi %45, %c0_i32_34 : i32
    %c0_35 = arith.constant 0 : index
    %47 = arith.index_cast %46 : i32 to index
    %c12_36 = arith.constant 12 : index
    %c0_37 = arith.constant 0 : index
    %48 = vector.load %arg2[%c0_35, %47, %c12_36, %c0_37] : memref<1x34x34x4xf32, #tpu.memory_space<vmem>>, vector<1x8x16x4xf32>
    %49 = vector.shape_cast %48 : vector<1x8x16x4xf32> to vector<8x16x4xf32>
    %c9_i32_38 = arith.constant 9 : i32
    %50 = arith.addi %1, %c9_i32_38 : i32
    %c3_i32 = arith.constant 3 : i32
    %51 = arith.addi %50, %c3_i32 : i32
    %c0_39 = arith.constant 0 : index
    %52 = arith.index_cast %51 : i32 to index
    %c6_40 = arith.constant 6 : index
    %c0_41 = arith.constant 0 : index
    %53 = vector.load %arg2[%c0_39, %52, %c6_40, %c0_41] : memref<1x34x34x4xf32, #tpu.memory_space<vmem>>, vector<1x8x16x4xf32>
    %54 = vector.shape_cast %53 : vector<1x8x16x4xf32> to vector<8x16x4xf32>
    %c9_i32_42 = arith.constant 9 : i32
    %55 = arith.addi %1, %c9_i32_42 : i32
    %c3_i32_43 = arith.constant 3 : i32
    %56 = arith.addi %55, %c3_i32_43 : i32
    %c0_44 = arith.constant 0 : index
    %57 = arith.index_cast %56 : i32 to index
    %c9_45 = arith.constant 9 : index
    %c0_46 = arith.constant 0 : index
    %58 = vector.load %arg2[%c0_44, %57, %c9_45, %c0_46] : memref<1x34x34x4xf32, #tpu.memory_space<vmem>>, vector<1x8x16x4xf32>
    %59 = vector.shape_cast %58 : vector<1x8x16x4xf32> to vector<8x16x4xf32>
    %c9_i32_47 = arith.constant 9 : i32
    %60 = arith.addi %1, %c9_i32_47 : i32
    %c3_i32_48 = arith.constant 3 : i32
    %61 = arith.addi %60, %c3_i32_48 : i32
    %c0_49 = arith.constant 0 : index
    %62 = arith.index_cast %61 : i32 to index
    %c12_50 = arith.constant 12 : index
    %c0_51 = arith.constant 0 : index
    %63 = vector.load %arg2[%c0_49, %62, %c12_50, %c0_51] : memref<1x34x34x4xf32, #tpu.memory_space<vmem>>, vector<1x8x16x4xf32>
    %64 = vector.shape_cast %63 : vector<1x8x16x4xf32> to vector<8x16x4xf32>
    %65 = tpu.concatenate %24, %29, %34, %39, %44, %49, %54, %59, %64 in 2 : vector<8x16x4xf32>, vector<8x16x4xf32>, vector<8x16x4xf32>, vector<8x16x4xf32>, vector<8x16x4xf32>, vector<8x16x4xf32>, vector<8x16x4xf32>, vector<8x16x4xf32>, vector<8x16x4xf32> -> vector<8x16x36xf32>
    %66 = vector.shape_cast %65 : vector<8x16x36xf32> to vector<128x36xf32>
    %c0_52 = arith.constant 0 : index
    %c0_53 = arith.constant 0 : index
    %67 = vector.load %arg4[%c0_52, %c0_53] : memref<36x8xf32, #tpu.memory_space<vmem>>, vector<36x8xf32>
    %cst_54 = arith.constant dense<0.000000e+00> : vector<128x8xf32>
    %68 = tpu.matmul %66, %67, %cst_54 {dimension_numbers = #tpu.dot_dimension_numbers<[1], [0], [0], [1], [0, 0, 1, 1], [], []>} : vector<128x36xf32>, vector<36x8xf32>, vector<128x8xf32> -> vector<128x8xf32>
    %c1 = arith.constant 1 : index
    %c0_55 = arith.constant 0 : index
    %69 = vector.load %arg7[%c1, %c0_55] : memref<4x8xf32, #tpu.memory_space<vmem>>, vector<1x8xf32>
    %70 = vector.broadcast %69 : vector<1x8xf32> to vector<128x8xf32>
    %71 = arith.addf %68, %70 : vector<128x8xf32>
    %cst_56 = arith.constant 0.000000e+00 : f32
    %72 = vector.broadcast %cst_56 : f32 to vector<128x8xf32>
    %73 = arith.maximumf %71, %72 : vector<128x8xf32>
    %c8 = arith.constant 8 : index
    %c0_57 = arith.constant 0 : index
    %74 = vector.load %arg8[%c8, %c0_57] : memref<32x8xf32, #tpu.memory_space<vmem>>, vector<8x8xf32>
    %cst_58 = arith.constant dense<0.000000e+00> : vector<128x8xf32>
    %75 = tpu.matmul %73, %74, %cst_58 {dimension_numbers = #tpu.dot_dimension_numbers<[1], [0], [0], [1], [0, 0, 1, 1], [], []>} : vector<128x8xf32>, vector<8x8xf32>, vector<128x8xf32> -> vector<128x8xf32>
    %76 = arith.addf %19, %75 : vector<128x8xf32>
    %c9_i32_59 = arith.constant 9 : i32
    %77 = arith.addi %1, %c9_i32_59 : i32
    %c-6_i32 = arith.constant -6 : i32
    %78 = arith.addi %77, %c-6_i32 : i32
    %c0_60 = arith.constant 0 : index
    %79 = arith.index_cast %78 : i32 to index
    %c3 = arith.constant 3 : index
    %c0_61 = arith.constant 0 : index
    %80 = vector.load %arg2[%c0_60, %79, %c3, %c0_61] : memref<1x34x34x4xf32, #tpu.memory_space<vmem>>, vector<1x8x16x4xf32>
    %81 = vector.shape_cast %80 : vector<1x8x16x4xf32> to vector<8x16x4xf32>
    %c9_i32_62 = arith.constant 9 : i32
    %82 = arith.addi %1, %c9_i32_62 : i32
    %c-6_i32_63 = arith.constant -6 : i32
    %83 = arith.addi %82, %c-6_i32_63 : i32
    %c0_64 = arith.constant 0 : index
    %84 = arith.index_cast %83 : i32 to index
    %c9_65 = arith.constant 9 : index
    %c0_66 = arith.constant 0 : index
    %85 = vector.load %arg2[%c0_64, %84, %c9_65, %c0_66] : memref<1x34x34x4xf32, #tpu.memory_space<vmem>>, vector<1x8x16x4xf32>
    %86 = vector.shape_cast %85 : vector<1x8x16x4xf32> to vector<8x16x4xf32>
    %c9_i32_67 = arith.constant 9 : i32
    %87 = arith.addi %1, %c9_i32_67 : i32
    %c-6_i32_68 = arith.constant -6 : i32
    %88 = arith.addi %87, %c-6_i32_68 : i32
    %c0_69 = arith.constant 0 : index
    %89 = arith.index_cast %88 : i32 to index
    %c15 = arith.constant 15 : index
    %c0_70 = arith.constant 0 : index
    %90 = vector.load %arg2[%c0_69, %89, %c15, %c0_70] : memref<1x34x34x4xf32, #tpu.memory_space<vmem>>, vector<1x8x16x4xf32>
    %91 = vector.shape_cast %90 : vector<1x8x16x4xf32> to vector<8x16x4xf32>
    %c9_i32_71 = arith.constant 9 : i32
    %92 = arith.addi %1, %c9_i32_71 : i32
    %c0_i32_72 = arith.constant 0 : i32
    %93 = arith.addi %92, %c0_i32_72 : i32
    %c0_73 = arith.constant 0 : index
    %94 = arith.index_cast %93 : i32 to index
    %c3_74 = arith.constant 3 : index
    %c0_75 = arith.constant 0 : index
    %95 = vector.load %arg2[%c0_73, %94, %c3_74, %c0_75] : memref<1x34x34x4xf32, #tpu.memory_space<vmem>>, vector<1x8x16x4xf32>
    %96 = vector.shape_cast %95 : vector<1x8x16x4xf32> to vector<8x16x4xf32>
    %c9_i32_76 = arith.constant 9 : i32
    %97 = arith.addi %1, %c9_i32_76 : i32
    %c0_i32_77 = arith.constant 0 : i32
    %98 = arith.addi %97, %c0_i32_77 : i32
    %c0_78 = arith.constant 0 : index
    %99 = arith.index_cast %98 : i32 to index
    %c9_79 = arith.constant 9 : index
    %c0_80 = arith.constant 0 : index
    %100 = vector.load %arg2[%c0_78, %99, %c9_79, %c0_80] : memref<1x34x34x4xf32, #tpu.memory_space<vmem>>, vector<1x8x16x4xf32>
    %101 = vector.shape_cast %100 : vector<1x8x16x4xf32> to vector<8x16x4xf32>
    %c9_i32_81 = arith.constant 9 : i32
    %102 = arith.addi %1, %c9_i32_81 : i32
    %c0_i32_82 = arith.constant 0 : i32
    %103 = arith.addi %102, %c0_i32_82 : i32
    %c0_83 = arith.constant 0 : index
    %104 = arith.index_cast %103 : i32 to index
    %c15_84 = arith.constant 15 : index
    %c0_85 = arith.constant 0 : index
    %105 = vector.load %arg2[%c0_83, %104, %c15_84, %c0_85] : memref<1x34x34x4xf32, #tpu.memory_space<vmem>>, vector<1x8x16x4xf32>
    %106 = vector.shape_cast %105 : vector<1x8x16x4xf32> to vector<8x16x4xf32>
    %c9_i32_86 = arith.constant 9 : i32
    %107 = arith.addi %1, %c9_i32_86 : i32
    %c6_i32 = arith.constant 6 : i32
    %108 = arith.addi %107, %c6_i32 : i32
    %c0_87 = arith.constant 0 : index
    %109 = arith.index_cast %108 : i32 to index
    %c3_88 = arith.constant 3 : index
    %c0_89 = arith.constant 0 : index
    %110 = vector.load %arg2[%c0_87, %109, %c3_88, %c0_89] : memref<1x34x34x4xf32, #tpu.memory_space<vmem>>, vector<1x8x16x4xf32>
    %111 = vector.shape_cast %110 : vector<1x8x16x4xf32> to vector<8x16x4xf32>
    %c9_i32_90 = arith.constant 9 : i32
    %112 = arith.addi %1, %c9_i32_90 : i32
    %c6_i32_91 = arith.constant 6 : i32
    %113 = arith.addi %112, %c6_i32_91 : i32
    %c0_92 = arith.constant 0 : index
    %114 = arith.index_cast %113 : i32 to index
    %c9_93 = arith.constant 9 : index
    %c0_94 = arith.constant 0 : index
    %115 = vector.load %arg2[%c0_92, %114, %c9_93, %c0_94] : memref<1x34x34x4xf32, #tpu.memory_space<vmem>>, vector<1x8x16x4xf32>
    %116 = vector.shape_cast %115 : vector<1x8x16x4xf32> to vector<8x16x4xf32>
    %c9_i32_95 = arith.constant 9 : i32
    %117 = arith.addi %1, %c9_i32_95 : i32
    %c6_i32_96 = arith.constant 6 : i32
    %118 = arith.addi %117, %c6_i32_96 : i32
    %c0_97 = arith.constant 0 : index
    %119 = arith.index_cast %118 : i32 to index
    %c15_98 = arith.constant 15 : index
    %c0_99 = arith.constant 0 : index
    %120 = vector.load %arg2[%c0_97, %119, %c15_98, %c0_99] : memref<1x34x34x4xf32, #tpu.memory_space<vmem>>, vector<1x8x16x4xf32>
    %121 = vector.shape_cast %120 : vector<1x8x16x4xf32> to vector<8x16x4xf32>
    %122 = tpu.concatenate %81, %86, %91, %96, %101, %106, %111, %116, %121 in 2 : vector<8x16x4xf32>, vector<8x16x4xf32>, vector<8x16x4xf32>, vector<8x16x4xf32>, vector<8x16x4xf32>, vector<8x16x4xf32>, vector<8x16x4xf32>, vector<8x16x4xf32>, vector<8x16x4xf32> -> vector<8x16x36xf32>
    %123 = vector.shape_cast %122 : vector<8x16x36xf32> to vector<128x36xf32>
    %c0_100 = arith.constant 0 : index
    %c0_101 = arith.constant 0 : index
    %124 = vector.load %arg5[%c0_100, %c0_101] : memref<36x8xf32, #tpu.memory_space<vmem>>, vector<36x8xf32>
    %cst_102 = arith.constant dense<0.000000e+00> : vector<128x8xf32>
    %125 = tpu.matmul %123, %124, %cst_102 {dimension_numbers = #tpu.dot_dimension_numbers<[1], [0], [0], [1], [0, 0, 1, 1], [], []>} : vector<128x36xf32>, vector<36x8xf32>, vector<128x8xf32> -> vector<128x8xf32>
    %c2 = arith.constant 2 : index
    %c0_103 = arith.constant 0 : index
    %126 = vector.load %arg7[%c2, %c0_103] : memref<4x8xf32, #tpu.memory_space<vmem>>, vector<1x8xf32>
    %127 = vector.broadcast %126 : vector<1x8xf32> to vector<128x8xf32>
    %128 = arith.addf %125, %127 : vector<128x8xf32>
    %cst_104 = arith.constant 0.000000e+00 : f32
    %129 = vector.broadcast %cst_104 : f32 to vector<128x8xf32>
    %130 = arith.maximumf %128, %129 : vector<128x8xf32>
    %c16 = arith.constant 16 : index
    %c0_105 = arith.constant 0 : index
    %131 = vector.load %arg8[%c16, %c0_105] : memref<32x8xf32, #tpu.memory_space<vmem>>, vector<8x8xf32>
    %cst_106 = arith.constant dense<0.000000e+00> : vector<128x8xf32>
    %132 = tpu.matmul %130, %131, %cst_106 {dimension_numbers = #tpu.dot_dimension_numbers<[1], [0], [0], [1], [0, 0, 1, 1], [], []>} : vector<128x8xf32>, vector<8x8xf32>, vector<128x8xf32> -> vector<128x8xf32>
    %133 = arith.addf %76, %132 : vector<128x8xf32>
    %c9_i32_107 = arith.constant 9 : i32
    %134 = arith.addi %1, %c9_i32_107 : i32
    %c-9_i32 = arith.constant -9 : i32
    %135 = arith.addi %134, %c-9_i32 : i32
    %c0_108 = arith.constant 0 : index
    %136 = arith.index_cast %135 : i32 to index
    %c0_109 = arith.constant 0 : index
    %c0_110 = arith.constant 0 : index
    %137 = vector.load %arg2[%c0_108, %136, %c0_109, %c0_110] : memref<1x34x34x4xf32, #tpu.memory_space<vmem>>, vector<1x8x16x4xf32>
    %138 = vector.shape_cast %137 : vector<1x8x16x4xf32> to vector<8x16x4xf32>
    %c9_i32_111 = arith.constant 9 : i32
    %139 = arith.addi %1, %c9_i32_111 : i32
    %c-9_i32_112 = arith.constant -9 : i32
    %140 = arith.addi %139, %c-9_i32_112 : i32
    %c0_113 = arith.constant 0 : index
    %141 = arith.index_cast %140 : i32 to index
    %c9_114 = arith.constant 9 : index
    %c0_115 = arith.constant 0 : index
    %142 = vector.load %arg2[%c0_113, %141, %c9_114, %c0_115] : memref<1x34x34x4xf32, #tpu.memory_space<vmem>>, vector<1x8x16x4xf32>
    %143 = vector.shape_cast %142 : vector<1x8x16x4xf32> to vector<8x16x4xf32>
    %c9_i32_116 = arith.constant 9 : i32
    %144 = arith.addi %1, %c9_i32_116 : i32
    %c-9_i32_117 = arith.constant -9 : i32
    %145 = arith.addi %144, %c-9_i32_117 : i32
    %c0_118 = arith.constant 0 : index
    %146 = arith.index_cast %145 : i32 to index
    %c18 = arith.constant 18 : index
    %c0_119 = arith.constant 0 : index
    %147 = vector.load %arg2[%c0_118, %146, %c18, %c0_119] : memref<1x34x34x4xf32, #tpu.memory_space<vmem>>, vector<1x8x16x4xf32>
    %148 = vector.shape_cast %147 : vector<1x8x16x4xf32> to vector<8x16x4xf32>
    %c9_i32_120 = arith.constant 9 : i32
    %149 = arith.addi %1, %c9_i32_120 : i32
    %c0_i32_121 = arith.constant 0 : i32
    %150 = arith.addi %149, %c0_i32_121 : i32
    %c0_122 = arith.constant 0 : index
    %151 = arith.index_cast %150 : i32 to index
    %c0_123 = arith.constant 0 : index
    %c0_124 = arith.constant 0 : index
    %152 = vector.load %arg2[%c0_122, %151, %c0_123, %c0_124] : memref<1x34x34x4xf32, #tpu.memory_space<vmem>>, vector<1x8x16x4xf32>
    %153 = vector.shape_cast %152 : vector<1x8x16x4xf32> to vector<8x16x4xf32>
    %c9_i32_125 = arith.constant 9 : i32
    %154 = arith.addi %1, %c9_i32_125 : i32
    %c0_i32_126 = arith.constant 0 : i32
    %155 = arith.addi %154, %c0_i32_126 : i32
    %c0_127 = arith.constant 0 : index
    %156 = arith.index_cast %155 : i32 to index
    %c9_128 = arith.constant 9 : index
    %c0_129 = arith.constant 0 : index
    %157 = vector.load %arg2[%c0_127, %156, %c9_128, %c0_129] : memref<1x34x34x4xf32, #tpu.memory_space<vmem>>, vector<1x8x16x4xf32>
    %158 = vector.shape_cast %157 : vector<1x8x16x4xf32> to vector<8x16x4xf32>
    %c9_i32_130 = arith.constant 9 : i32
    %159 = arith.addi %1, %c9_i32_130 : i32
    %c0_i32_131 = arith.constant 0 : i32
    %160 = arith.addi %159, %c0_i32_131 : i32
    %c0_132 = arith.constant 0 : index
    %161 = arith.index_cast %160 : i32 to index
    %c18_133 = arith.constant 18 : index
    %c0_134 = arith.constant 0 : index
    %162 = vector.load %arg2[%c0_132, %161, %c18_133, %c0_134] : memref<1x34x34x4xf32, #tpu.memory_space<vmem>>, vector<1x8x16x4xf32>
    %163 = vector.shape_cast %162 : vector<1x8x16x4xf32> to vector<8x16x4xf32>
    %c9_i32_135 = arith.constant 9 : i32
    %164 = arith.addi %1, %c9_i32_135 : i32
    %c9_i32_136 = arith.constant 9 : i32
    %165 = arith.addi %164, %c9_i32_136 : i32
    %c0_137 = arith.constant 0 : index
    %166 = arith.index_cast %165 : i32 to index
    %c0_138 = arith.constant 0 : index
    %c0_139 = arith.constant 0 : index
    %167 = vector.load %arg2[%c0_137, %166, %c0_138, %c0_139] : memref<1x34x34x4xf32, #tpu.memory_space<vmem>>, vector<1x8x16x4xf32>
    %168 = vector.shape_cast %167 : vector<1x8x16x4xf32> to vector<8x16x4xf32>
    %c9_i32_140 = arith.constant 9 : i32
    %169 = arith.addi %1, %c9_i32_140 : i32
    %c9_i32_141 = arith.constant 9 : i32
    %170 = arith.addi %169, %c9_i32_141 : i32
    %c0_142 = arith.constant 0 : index
    %171 = arith.index_cast %170 : i32 to index
    %c9_143 = arith.constant 9 : index
    %c0_144 = arith.constant 0 : index
    %172 = vector.load %arg2[%c0_142, %171, %c9_143, %c0_144] : memref<1x34x34x4xf32, #tpu.memory_space<vmem>>, vector<1x8x16x4xf32>
    %173 = vector.shape_cast %172 : vector<1x8x16x4xf32> to vector<8x16x4xf32>
    %c9_i32_145 = arith.constant 9 : i32
    %174 = arith.addi %1, %c9_i32_145 : i32
    %c9_i32_146 = arith.constant 9 : i32
    %175 = arith.addi %174, %c9_i32_146 : i32
    %c0_147 = arith.constant 0 : index
    %176 = arith.index_cast %175 : i32 to index
    %c18_148 = arith.constant 18 : index
    %c0_149 = arith.constant 0 : index
    %177 = vector.load %arg2[%c0_147, %176, %c18_148, %c0_149] : memref<1x34x34x4xf32, #tpu.memory_space<vmem>>, vector<1x8x16x4xf32>
    %178 = vector.shape_cast %177 : vector<1x8x16x4xf32> to vector<8x16x4xf32>
    %179 = tpu.concatenate %138, %143, %148, %153, %158, %163, %168, %173, %178 in 2 : vector<8x16x4xf32>, vector<8x16x4xf32>, vector<8x16x4xf32>, vector<8x16x4xf32>, vector<8x16x4xf32>, vector<8x16x4xf32>, vector<8x16x4xf32>, vector<8x16x4xf32>, vector<8x16x4xf32> -> vector<8x16x36xf32>
    %180 = vector.shape_cast %179 : vector<8x16x36xf32> to vector<128x36xf32>
    %c0_150 = arith.constant 0 : index
    %c0_151 = arith.constant 0 : index
    %181 = vector.load %arg6[%c0_150, %c0_151] : memref<36x8xf32, #tpu.memory_space<vmem>>, vector<36x8xf32>
    %cst_152 = arith.constant dense<0.000000e+00> : vector<128x8xf32>
    %182 = tpu.matmul %180, %181, %cst_152 {dimension_numbers = #tpu.dot_dimension_numbers<[1], [0], [0], [1], [0, 0, 1, 1], [], []>} : vector<128x36xf32>, vector<36x8xf32>, vector<128x8xf32> -> vector<128x8xf32>
    %c3_153 = arith.constant 3 : index
    %c0_154 = arith.constant 0 : index
    %183 = vector.load %arg7[%c3_153, %c0_154] : memref<4x8xf32, #tpu.memory_space<vmem>>, vector<1x8xf32>
    %184 = vector.broadcast %183 : vector<1x8xf32> to vector<128x8xf32>
    %185 = arith.addf %182, %184 : vector<128x8xf32>
    %cst_155 = arith.constant 0.000000e+00 : f32
    %186 = vector.broadcast %cst_155 : f32 to vector<128x8xf32>
    %187 = arith.maximumf %185, %186 : vector<128x8xf32>
    %c24 = arith.constant 24 : index
    %c0_156 = arith.constant 0 : index
    %188 = vector.load %arg8[%c24, %c0_156] : memref<32x8xf32, #tpu.memory_space<vmem>>, vector<8x8xf32>
    %cst_157 = arith.constant dense<0.000000e+00> : vector<128x8xf32>
    %189 = tpu.matmul %187, %188, %cst_157 {dimension_numbers = #tpu.dot_dimension_numbers<[1], [0], [0], [1], [0, 0, 1, 1], [], []>} : vector<128x8xf32>, vector<8x8xf32>, vector<128x8xf32> -> vector<128x8xf32>
    %190 = arith.addf %133, %189 : vector<128x8xf32>
    %c0_158 = arith.constant 0 : index
    %c0_159 = arith.constant 0 : index
    %191 = vector.load %arg14[%c0_158, %c0_159] : memref<1x8xf32, #tpu.memory_space<vmem>>, vector<1x8xf32>
    %192 = vector.broadcast %191 : vector<1x8xf32> to vector<128x8xf32>
    %193 = arith.addf %190, %192 : vector<128x8xf32>
    %c0_160 = arith.constant 0 : index
    %c0_161 = arith.constant 0 : index
    %194 = vector.load %arg9[%c0_160, %c0_161] : memref<1x8xf32, #tpu.memory_space<vmem>>, vector<1x8xf32>
    %195 = vector.broadcast %194 : vector<1x8xf32> to vector<128x8xf32>
    %196 = arith.addf %193, %195 : vector<128x8xf32>
    %cst_162 = arith.constant 0.000000e+00 : f32
    %197 = vector.broadcast %cst_162 : f32 to vector<128x8xf32>
    %198 = arith.maximumf %196, %197 : vector<128x8xf32>
    %199 = vector.shape_cast %198 : vector<128x8xf32> to vector<8x16x8xf32>
    %c0_163 = arith.constant 0 : index
    %c0_164 = arith.constant 0 : index
    %c0_165 = arith.constant 0 : index
    %c0_166 = arith.constant 0 : index
    %200 = vector.load %arg13[%c0_163, %c0_164, %c0_165, %c0_166] : memref<1x8x16x8xf32, #tpu.memory_space<vmem>>, vector<1x8x16x8xf32>
    %201 = vector.shape_cast %200 : vector<1x8x16x8xf32> to vector<8x16x8xf32>
    %202 = vector.shape_cast %199 : vector<8x16x8xf32> to vector<1x8x16x8xf32>
    tpu.vector_store %arg13[%c0_163, %c0_164, %c0_165, %c0_166], %202 {strides = array<i32>} : memref<1x8x16x8xf32, #tpu.memory_space<vmem>>, vector<1x8x16x8xf32>,
    return
  }
  func.func @transform_0(%arg0: i32, %arg1: i32) -> (i32, i32, i32, i32) {
    %c0_i32 = arith.constant 0 : i32
    %c0_i32_0 = arith.constant 0 : i32
    %c0_i32_1 = arith.constant 0 : i32
    %c0_i32_2 = arith.constant 0 : i32
    return %arg0, %c0_i32, %c0_i32_0, %c0_i32_1 : i32, i32, i32, i32
  }
  func.func @transform_1(%arg0: i32, %arg1: i32) -> (i32, i32) {
    %c0_i32 = arith.constant 0 : i32
    %c0_i32_0 = arith.constant 0 : i32
    %c0_i32_1 = arith.constant 0 : i32
    return %c0_i32, %c0_i32_0 : i32, i32
  }
  func.func @transform_2(%arg0: i32, %arg1: i32) -> (i32, i32) {
    %c0_i32 = arith.constant 0 : i32
    %c0_i32_0 = arith.constant 0 : i32
    %c0_i32_1 = arith.constant 0 : i32
    return %c0_i32, %c0_i32_0 : i32, i32
  }
  func.func @transform_3(%arg0: i32, %arg1: i32) -> (i32, i32) {
    %c0_i32 = arith.constant 0 : i32
    %c0_i32_0 = arith.constant 0 : i32
    %c0_i32_1 = arith.constant 0 : i32
    return %c0_i32, %c0_i32_0 : i32, i32
  }
  func.func @transform_4(%arg0: i32, %arg1: i32) -> (i32, i32) {
    %c0_i32 = arith.constant 0 : i32
    %c0_i32_0 = arith.constant 0 : i32
    %c0_i32_1 = arith.constant 0 : i32
    return %c0_i32, %c0_i32_0 : i32, i32
  }
  func.func @transform_5(%arg0: i32, %arg1: i32) -> (i32, i32) {
    %c0_i32 = arith.constant 0 : i32
    %c0_i32_0 = arith.constant 0 : i32
    %c0_i32_1 = arith.constant 0 : i32
    return %c0_i32, %c0_i32_0 : i32, i32
  }
  func.func @transform_6(%arg0: i32, %arg1: i32) -> (i32, i32) {
    %c0_i32 = arith.constant 0 : i32
    %c0_i32_0 = arith.constant 0 : i32
    %c0_i32_1 = arith.constant 0 : i32
    return %c0_i32, %c0_i32_0 : i32, i32
  }
  func.func @transform_7(%arg0: i32, %arg1: i32) -> (i32, i32) {
    %c0_i32 = arith.constant 0 : i32
    %c0_i32_0 = arith.constant 0 : i32
    %c0_i32_1 = arith.constant 0 : i32
    return %c0_i32, %c0_i32_0 : i32, i32
  }
  func.func @transform_8(%arg0: i32, %arg1: i32) -> (i32, i32) {
    %c0_i32 = arith.constant 0 : i32
    %c0_i32_0 = arith.constant 0 : i32
    %c0_i32_1 = arith.constant 0 : i32
    return %c0_i32, %c0_i32_0 : i32, i32
  }
  func.func @transform_9(%arg0: i32, %arg1: i32) -> (i32, i32) {
    %c0_i32 = arith.constant 0 : i32
    %c0_i32_0 = arith.constant 0 : i32
    %c0_i32_1 = arith.constant 0 : i32
    return %c0_i32, %c0_i32_0 : i32, i32
  }
  func.func @transform_10(%arg0: i32, %arg1: i32) -> (i32, i32) {
    %c0_i32 = arith.constant 0 : i32
    %c0_i32_0 = arith.constant 0 : i32
    %c0_i32_1 = arith.constant 0 : i32
    return %c0_i32, %c0_i32_0 : i32, i32
  }
  func.func @transform_11(%arg0: i32, %arg1: i32) -> (i32, i32, i32, i32) {
    %c0_i32 = arith.constant 0 : i32
    %c0_i32_0 = arith.constant 0 : i32
    %c0_i32_1 = arith.constant 0 : i32
    return %arg0, %arg1, %c0_i32, %c0_i32_0 : i32, i32, i32, i32
  }
}

</mosaic_0001>

<bundles_post_ra>
// kernel: tpu_custom_call.1
= control target key start
LH: loop header
LB: loop body
LE: loop exit
PB: predicated region body
PF: predicated region fallthrough
CT: control target
= control target key end

     0   :  { %s6337_s17 = smov 0   ;;  %s6339_s18 = smov 0   ;;  %s8931_s0 = inlined_call_operand.vmem [shape: f32[2,34,34,4], index: 0, kind: input, shape index: {}]   ;;  %s8932_s1 = inlined_call_operand.vmem [shape: f32[4,8], index: 1, kind: input, shape index: {}]   ;;  %s8933_s2 = inlined_call_operand.vmem [shape: f32[36,8], index: 2, kind: input, shape index: {}]   ;;  %s8934_s3 = inlined_call_operand.vmem [shape: f32[36,8], index: 3, kind: input, shape index: {}]   ;;  %s8935_s4 = inlined_call_operand.vmem [shape: f32[36,8], index: 4, kind: input, shape index: {}]   ;;  %s8936_s5 = inlined_call_operand.vmem [shape: f32[4,8], index: 5, kind: input, shape index: {}]   ;;  %s8937_s6 = inlined_call_operand.vmem [shape: f32[32,8], index: 6, kind: input, shape index: {}]   ;;  %s8938_s7 = inlined_call_operand.vmem [shape: f32[1,8], index: 7, kind: input, shape index: {}]   ;;  %s8939_s8 = inlined_call_operand.vmem [shape: f32[4,8], index: 8, kind: input, shape index: {}]   ;;  %s8940_s9 = inlined_call_operand.vmem [shape: f32[1,8], index: 9, kind: input, shape index: {}]   ;;  %s8941_s10 = inlined_call_operand.vmem [shape: f32[8,8], index: 10, kind: input, shape index: {}]   ;;  %s8942_s11 = inlined_call_operand.vmem [shape: f32[2,16,16,8], index: 11, kind: output, shape index: {}]  }
   0x1   :  { %s6341_s19 = smov 0   ;;  %s6343_s20 = smov 0  }
   0x2   :  { %s6345_s21 = smov 0  }
   0x3 LB: > { %s30_s22 = sadd.s32 1, %s6257_s19  ;;  %s33_s23 = sadd.s32 1, %s6261_s20  ;;  %s6265_s21 = sphi %s6345_s21, %s21_s21   ;;  %s6261_s20 = sphi %s6343_s20, %s8990_s20   ;;  %s6257_s19 = sphi %s6341_s19, %s8989_s19   ;;  %s6253_s18 = sphi %s6339_s18, %s8988_s18   ;;  %s6249_s17 = sphi %s6337_s17, %s8987_s17  }
   0x4   : > { %p31_p0 = scmp.ge.s32.totalorder %s30_s22, 2  ;;  %p5193_p1 = scmp.ge.s32.totalorder %s6265_s21, 1 }
   0x5   : > { %p351_p2 = scmp.lt.s32.totalorder %s6265_s21, 5 }
   0x6   : > { %s8992_s22 = smov (%p31_p0, %s30_s22), 0  ;;  %s8994_s23 = smov (!%p31_p0, %s33_s23), %s6261_s20 }
   0x7   : > { %8947 = sst [smem:[#allocation3_spill]] %s8992_s22  ;;  %p352_p3 = pnand %p5193_p1, %p351_p2 }
   0x8   : > { %p35_p4 = scmp.ge.s32.totalorder %s8994_s23, 2 }
   0x9   : > { %355 = sbr.rel (%p352_p3) target bundleno = 1837 (0x72d), region = 64 }
   0xa   : > { %s8996_s23 = smov (%p35_p4, %s8994_s23), 0 }
   0xb   : > { %8948 = sst [smem:[#allocation4_spill]] %s8996_s23 }
  0x10   : > { %p396_p5 = scmp.lt.s32.totalorder %s6253_s18, 1  ;;  %s5195_s24 = sshll.u32 %s6249_s17, 3 }
  0x11   : > { %p404_p6 = scmp.lt.s32.totalorder %s5195_s24, 15  ;;  %p5200_p7 = scmp.ne.s32.totalorder %s6249_s17, 0 }
  0x12   : > { %s8998_s18 = smov (!%p396_p5, %s6253_s18), 1  ;;  %v940_v0 = vld [vmem:[%s8939_s8] sm:$0xf] (!%p5200_p7)  ;;  %vm945_vm0 = vcmask (!%p5200_p7), 1043456   ;;  %v6267_v2 = vmov (!%p5200_p7), 0.0   ;;  %vm6268_vm1 = vmmov (!%p5200_p7), 0  }
  0x13   : > { %s9000_s24 = smov (!%p404_p6, %s5195_s24), 15  ;;  %s6175_s25 = smul.u32 1360, %s8998_s18  ;;  %5861 = vmatprep.subr.mxu0 (!%p5200_p7), %v6267_v2  ;;  %5863 = vmatprep.mubr.msk.f32.mxu0 (!%p5200_p7), %vm6268_vm1, %v6267_v2  ;;  %vm587_vm2 = vcmask (!%p5200_p7), 31744   ;;  %vm856_vm3 = vcmask (!%p5200_p7), 25600   ;;  %vm1021_vm4 = vcmask (!%p5200_p7), 64512   ;;  %vm1095_vm5 = vcmask (!%p5200_p7), 57344  }
  0x14   : > { %s5197_s26 = sshll.u32 %s8998_s18, 5  ;;  %s5196_s27 = sshll.u32 %s9000_s24, 1  ;;  %5862 = vmatpush3.msk.msra.mxu0 (!%p5200_p7), %vm945_vm0, %v940_v0  ;;  %5866 = vmatprep.subr.mxu1 (!%p5200_p7), %v6267_v2 }
  0x15   : > { %s6373_s30 = scalar_lea.vmem %s8931_s0, %s6175_s25  ;;  %s408_s12 = sadd.s32 %s5197_s26, %s5196_s27  ;;  %5868 = vmatprep.mubr.msk.f32.mxu1 (!%p5200_p7), %vm6268_vm1, %v6267_v2 }
  0x16   : > { %s5198_s13 = sshll.u32 %s408_s12, 3  ;;  %416 = sbr.rel (%p5200_p7) target bundleno = 577 (0x241), region = 68  ;;  %v417_v1 = vld [vmem:[%s6373_s30] sm:$0xff] (!%p5200_p7)  ;;  %v418_v3 = vld [vmem:[%s6373_s30 + $0x8] sm:$0xff] (!%p5200_p7)  ;;  %v419_v4 = vld [vmem:[%s6373_s30 + $0x10] sm:$0xff] (!%p5200_p7) }
  0x17   : > { %s6378_s16 = scalar_lea.vmem %s8942_s11, %s5198_s13  ;;  %v422_v5 = vld [vmem:[%s6373_s30 + $0x28] sm:$0xff] (!%p5200_p7)  ;;  %v423_v6 = vld [vmem:[%s6373_s30 + $0x30] sm:$0xff] (!%p5200_p7)  ;;  %v588_v7 = vsel (!%p5200_p7), %vm587_vm2, %v417_v1, 0.0  ;;  %v655_v8 = vsel (!%p5200_p7), %vm587_vm2, %v418_v3, 0.0  ;;  %v424_v9 = vld [vmem:[%s6373_s30 + $0x38] sm:$0xff] (!%p5200_p7)  ;;  %v722_v17 = vsel (!%p5200_p7), %vm587_vm2, %v419_v4, 0.0 }
  0x18   : > { %v589_v10 = vsel (!%p5200_p7), %vm587_vm2, %v422_v5, 0.0  ;;  %v656_v11 = vsel (!%p5200_p7), %vm587_vm2, %v423_v6, 0.0  ;;  %v427_v12 = vld [vmem:[%s6373_s30 + $0x50] sm:$0xff] (!%p5200_p7)  ;;  %v428_v13 = vld [vmem:[%s6373_s30 + $0x58] sm:$0xff] (!%p5200_p7)  ;;  %v429_v14 = vld [vmem:[%s6373_s30 + $0x60] sm:$0xff] (!%p5200_p7)  ;;  %v723_v18 = vsel (!%p5200_p7), %vm587_vm2, %v424_v9, 0.0 }
  0x19   : > { %v590_v15 = vadd.f32 (!%p5200_p7), %v589_v10, %v588_v7  ;;  %v657_v16 = vadd.f32 (!%p5200_p7), %v656_v11, %v655_v8  ;;  %v420_v19 = vld [vmem:[%s6373_s30 + $0x18] sm:$0xff] (!%p5200_p7)  ;;  %v591_v21 = vsel (!%p5200_p7), %vm587_vm2, %v427_v12, 0.0  ;;  %v658_v22 = vsel (!%p5200_p7), %vm587_vm2, %v428_v13, 0.0  ;;  %v425_v24 = vld [vmem:[%s6373_s30 + $0x40] sm:$0xff] (!%p5200_p7)  ;;  %v434_v26 = vld [vmem:[%s6373_s30 + $0x88] sm:$0xff] (!%p5200_p7) }
  0x1a   : > { %v432_v20 = vld [vmem:[%s6373_s30 + $0x78] sm:$0xff] (!%p5200_p7)  ;;  %v724_v23 = vadd.f32 (!%p5200_p7), %v723_v18, %v722_v17  ;;  %v433_v25 = vld [vmem:[%s6373_s30 + $0x80] sm:$0xff] (!%p5200_p7)  ;;  %v725_v30 = vsel (!%p5200_p7), %vm587_vm2, %v429_v14, 0.0  ;;  %v438_v32 = vld [vmem:[%s6373_s30 + $0xa8] sm:$0xff] (!%p5200_p7)  ;;  %v727_v35 = vsel (!%p5200_p7), %vm587_vm2, %v434_v26, 0.0  ;;  %v789_v46 = vsel (!%p5200_p7), %vm587_vm2, %v420_v19, 0.0 }
  0x1b   : > { %v592_v27 = vadd.f32 (!%p5200_p7), %v591_v21, %v590_v15  ;;  %v593_v28 = vsel (!%p5200_p7), %vm587_vm2, %v432_v20, 0.0  ;;  %v659_v29 = vadd.f32 (!%p5200_p7), %v658_v22, %v657_v16  ;;  %v437_v31 = vld [vmem:[%s6373_s30 + $0xa0] sm:$0xff] (!%p5200_p7)  ;;  %v660_v33 = vsel (!%p5200_p7), %vm587_vm2, %v433_v25, 0.0  ;;  %v439_v36 = vld [vmem:[%s6373_s30 + $0xb0] sm:$0xff] (!%p5200_p7)  ;;  %v442_v41 = vld [vmem:[%s6373_s30 + $0xc8] sm:$0xff] (!%p5200_p7) }
  0x1c   : > { %v726_v34 = vadd.f32 (!%p5200_p7), %v725_v30, %v724_v23  ;;  %v595_v38 = vsel (!%p5200_p7), %vm587_vm2, %v437_v31, 0.0  ;;  %v662_v40 = vsel (!%p5200_p7), %vm587_vm2, %v438_v32, 0.0  ;;  %v443_v42 = vld [vmem:[%s6373_s30 + $0xd0] sm:$0xff] (!%p5200_p7)  ;;  %v444_v43 = vld [vmem:[%s6373_s30 + $0xd8] sm:$0xff] (!%p5200_p7)  ;;  %v729_v45 = vsel (!%p5200_p7), %vm587_vm2, %v439_v36, 0.0  ;;  %v430_v53 = vld [vmem:[%s6373_s30 + $0x68] sm:$0xff] (!%p5200_p7) }
  0x1d   : > { %v594_v37 = vadd.f32 %v593_v28, %v592_v27  ;;  %v661_v39 = vadd.f32 %v660_v33, %v659_v29  ;;  %v790_v47 = vsel %vm587_vm2, %v425_v24, 0.0  ;;  %v447_v48 = vld [vmem:[%s6373_s30 + $0xf0] sm:$0xff]  ;;  %v597_v50 = vsel %vm587_vm2, %v442_v41, 0.0  ;;  %v448_v54 = vld [vmem:[%s6373_s30 + $0xf8] sm:$0xff]  ;;  %v449_v55 = vld [vmem:[%s6373_s30 + $0x100] sm:$0xff] }
  0x1e   : > { %v728_v44 = vadd.f32 %v727_v35, %v726_v34  ;;  %v664_v52 = vsel %vm587_vm2, %v443_v42, 0.0  ;;  %v599_v56 = vsel %vm587_vm2, %v447_v48, 0.0  ;;  %v731_v58 = vsel %vm587_vm2, %v444_v43, 0.0  ;;  %v452_v59 = vld [vmem:[%s6373_s30 + $0x118] sm:$0xff]  ;;  %v453_v60 = vld [vmem:[%s6373_s30 + $0x120] sm:$0xff]  ;;  %v454_v1 = vld [vmem:[%s6373_s30 + $0x128] sm:$0xff] }
  0x1f   : > { %v596_v49 = vadd.f32 %v595_v38, %v594_v37  ;;  %v663_v51 = vadd.f32 %v662_v40, %v661_v39  ;;  %v666_v63 = vsel %vm587_vm2, %v448_v54, 0.0  ;;  %v733_v0 = vsel %vm587_vm2, %v449_v55, 0.0  ;;  %v457_v6 = vld [vmem:[%s6373_s30 + $0x140] sm:$0xff]  ;;  %v458_v7 = vld [vmem:[%s6373_s30 + $0x148] sm:$0xff]  ;;  %v459_v8 = vld [vmem:[%s6373_s30 + $0x150] sm:$0xff] }
  0x20   : > { %v730_v57 = vadd.f32 %v729_v45, %v728_v44  ;;  %v601_v2 = vsel %vm587_vm2, %v452_v59, 0.0  ;;  %v668_v3 = vsel %vm587_vm2, %v453_v60, 0.0  ;;  %v791_v5 = vadd.f32 %v790_v47, %v789_v46  ;;  %v462_v13 = vld [vmem:[%s6373_s30 + $0x168] sm:$0xff]  ;;  %v435_v17 = vld [vmem:[%s6373_s30 + $0x90] sm:$0xff]  ;;  %v440_v22 = vld [vmem:[%s6373_s30 + $0xb8] sm:$0xff] }
  0x21   : > { %v598_v61 = vadd.f32 %v597_v50, %v596_v49  ;;  %v665_v62 = vadd.f32 %v664_v52, %v663_v51  ;;  %v735_v11 = vsel %vm587_vm2, %v454_v1, 0.0  ;;  %v792_v12 = vsel %vm587_vm2, %v430_v53, 0.0  ;;  %v463_v18 = vld [vmem:[%s6373_s30 + $0x170] sm:$0xff]  ;;  %v464_v23 = vld [vmem:[%s6373_s30 + $0x178] sm:$0xff]  ;;  %v445_v38 = vld [vmem:[%s6373_s30 + $0xe0] sm:$0xff] }
  0x22   : > { %v732_v4 = vadd.f32 %v731_v58, %v730_v57  ;;  %v603_v14 = vsel %vm587_vm2, %v457_v6, 0.0  ;;  %v670_v15 = vsel %vm587_vm2, %v458_v7, 0.0  ;;  %v737_v21 = vsel %vm587_vm2, %v459_v8, 0.0  ;;  %v467_v28 = vld [vmem:[%s6373_s30 + $0x190] sm:$0xff]  ;;  %v468_v29 = vld [vmem:[%s6373_s30 + $0x198] sm:$0xff]  ;;  %v469_v39 = vld [vmem:[%s6373_s30 + $0x1a0] sm:$0xff] }
  0x23   : > { %v600_v9 = vadd.f32 %v599_v56, %v598_v61  ;;  %v667_v10 = vadd.f32 %v666_v63, %v665_v62  ;;  %v605_v24 = vsel %vm587_vm2, %v462_v13, 0.0  ;;  %v672_v25 = vsel %vm587_vm2, %v463_v18, 0.0  ;;  %v472_v43 = vld [vmem:[%s6373_s30 + $0x1b8] sm:$0xff]  ;;  %v473_v44 = vld [vmem:[%s6373_s30 + $0x1c0] sm:$0xff]  ;;  %v474_v51 = vld [vmem:[%s6373_s30 + $0x1c8] sm:$0xff] }
  0x24   : > { %v734_v16 = vadd.f32 %v733_v0, %v732_v4  ;;  %v793_v27 = vadd.f32 %v792_v12, %v791_v5  ;;  %v794_v33 = vsel %vm587_vm2, %v435_v17, 0.0  ;;  %v739_v36 = vsel %vm587_vm2, %v464_v23, 0.0  ;;  %v450_v54 = vld [vmem:[%s6373_s30 + $0x108] sm:$0xff]  ;;  %v477_v55 = vld [vmem:[%s6373_s30 + $0x1e0] sm:$0xff]  ;;  %v455_v57 = vld [vmem:[%s6373_s30 + $0x130] sm:$0xff] }
  0x25   : > { %v602_v19 = vadd.f32 %v601_v2, %v600_v9  ;;  %v669_v20 = vadd.f32 %v668_v3, %v667_v10  ;;  %v796_v37 = vsel %vm587_vm2, %v440_v22, 0.0  ;;  %v607_v40 = vsel %vm587_vm2, %v467_v28, 0.0  ;;  %v478_v56 = vld [vmem:[%s6373_s30 + $0x1e8] sm:$0xff]  ;;  %v479_v63 = vld [vmem:[%s6373_s30 + $0x1f0] sm:$0xff]  ;;  %v460_v6 = vld [vmem:[%s6373_s30 + $0x158] sm:$0xff] }
  0x26   : > { %v736_v26 = vadd.f32 %v735_v11, %v734_v16  ;;  %v674_v41 = vsel %vm587_vm2, %v468_v29, 0.0  ;;  %v795_v42 = vadd.f32 %v794_v33, %v793_v27  ;;  %v741_v49 = vsel %vm587_vm2, %v469_v39, 0.0  ;;  %v482_v3 = vld [vmem:[%s6373_s30 + $0x208] sm:$0xff]  ;;  %v483_v4 = vld [vmem:[%s6373_s30 + $0x210] sm:$0xff]  ;;  %v484_v12 = vld [vmem:[%s6373_s30 + $0x218] sm:$0xff] }
  0x27   : > { %v604_v30 = vadd.f32 %v603_v14, %v602_v19  ;;  %v671_v31 = vadd.f32 %v670_v15, %v669_v20  ;;  %v798_v50 = vsel %vm587_vm2, %v445_v38, 0.0  ;;  %v609_v52 = vsel %vm587_vm2, %v472_v43, 0.0  ;;  %v487_v16 = vld [vmem:[%s6373_s30 + $0x230] sm:$0xff]  ;;  %v488_v17 = vld [vmem:[%s6373_s30 + $0x238] sm:$0xff]  ;;  %v465_v20 = vld [vmem:[%s6373_s30 + $0x180] sm:$0xff] }
  0x28   : > { %v738_v32 = vadd.f32 %v737_v21, %v736_v26  ;;  %v797_v46 = vadd.f32 %v796_v37, %v795_v42  ;;  %v676_v53 = vsel %vm587_vm2, %v473_v44, 0.0  ;;  %v743_v62 = vsel %vm587_vm2, %v474_v51, 0.0  ;;  %v492_v29 = vld [vmem:[%s6373_s30 + $0x258] sm:$0xff]  ;;  %v475_v37 = vld [vmem:[%s6373_s30 + $0x1d0] sm:$0xff]  ;;  %v494_v38 = vld [vmem:[%s6373_s30 + $0x268] sm:$0xff] }
  0x29   : > { %v606_v34 = vadd.f32 %v605_v24, %v604_v30  ;;  %v673_v35 = vadd.f32 %v672_v25, %v671_v31  ;;  %v611_v0 = vsel %vm587_vm2, %v477_v55, 0.0  ;;  %v678_v1 = vsel %vm587_vm2, %v478_v56, 0.0  ;;  %v470_v24 = vld [vmem:[%s6373_s30 + $0x1a8] sm:$0xff]  ;;  %v489_v25 = vld [vmem:[%s6373_s30 + $0x240] sm:$0xff]  ;;  %v503_v55 = vld [vmem:[%s6373_s30 + $0x2b0] sm:$0xff] }
  0x2a   : > { %v740_v45 = vadd.f32 %v739_v36, %v738_v32  ;;  %v799_v59 = vadd.f32 %v798_v50, %v797_v46  ;;  %v800_v2 = vsel %vm587_vm2, %v450_v54, 0.0  ;;  %v802_v5 = vsel %vm587_vm2, %v455_v57, 0.0  ;;  %v493_v30 = vld [vmem:[%s6373_s30 + $0x260] sm:$0xff]  ;;  %v498_v43 = vld [vmem:[%s6373_s30 + $0x288] sm:$0xff]  ;;  %v499_v50 = vld [vmem:[%s6373_s30 + $0x290] sm:$0xff] }
  0x2b   : > { %v608_v47 = vadd.f32 %v607_v40, %v606_v34  ;;  %v675_v48 = vadd.f32 %v674_v41, %v673_v35  ;;  %v745_v11 = vsel %vm587_vm2, %v479_v63, 0.0  ;;  %v613_v13 = vsel %vm587_vm2, %v482_v3, 0.0  ;;  %v497_v42 = vld [vmem:[%s6373_s30 + $0x280] sm:$0xff]  ;;  %v502_v54 = vld [vmem:[%s6373_s30 + $0x2a8] sm:$0xff]  ;;  %v508_v3 = vld [vmem:[%s6373_s30 + $0x2d8] sm:$0xff] }
  0x2c   : > { %v742_v58 = vadd.f32 %v741_v49, %v740_v45  ;;  %v801_v8 = vadd.f32 %v800_v2, %v799_v59  ;;  %v680_v14 = vsel %vm587_vm2, %v483_v4, 0.0  ;;  %v804_v18 = vsel %vm587_vm2, %v460_v6, 0.0  ;;  %v485_v56 = vld [vmem:[%s6373_s30 + $0x220] sm:$0xff]  ;;  %v507_v2 = vld [vmem:[%s6373_s30 + $0x2d0] sm:$0xff] }
  0x2d   : > { %v610_v60 = vadd.f32 %v609_v52, %v608_v47  ;;  %v677_v61 = vadd.f32 %v676_v53, %v675_v48  ;;  %v747_v23 = vsel %vm587_vm2, %v484_v12, 0.0  ;;  %v615_v26 = vsel %vm587_vm2, %v487_v16, 0.0  ;;  %v480_v53 = vld [vmem:[%s6373_s30 + $0x1f8] sm:$0xff] }
  0x2e   : > { %v744_v7 = vadd.f32 %v743_v62, %v742_v58  ;;  %v803_v15 = vadd.f32 %v802_v5, %v801_v8  ;;  %v682_v27 = vsel %vm587_vm2, %v488_v17, 0.0  ;;  %v806_v32 = vsel %vm587_vm2, %v465_v20, 0.0  ;;  %v504_v62 = vld [vmem:[%s6373_s30 + $0x2b8] sm:$0xff]  ;;  %v490_v5 = vld [vmem:[%s6373_s30 + $0x248] sm:$0xff]  ;;  %v513_v17 = vld [vmem:[%s6373_s30 + $0x300] sm:$0xff] }
  0x2f   : > { %v612_v9 = vadd.f32 %v611_v0, %v610_v60  ;;  %v679_v10 = vadd.f32 %v678_v1, %v677_v61  ;;  %v749_v35 = vsel %vm587_vm2, %v489_v25, 0.0  ;;  %v808_v36 = vsel %vm587_vm2, %v470_v24, 0.0  ;;  %v512_v16 = vld [vmem:[%s6373_s30 + $0x2f8] sm:$0xff] }
  0x30   : > { %v746_v19 = vadd.f32 %v745_v11, %v744_v7  ;;  %v805_v28 = vadd.f32 %v804_v18, %v803_v15  ;;  %v617_v39 = vsel %vm587_vm2, %v492_v29, 0.0  ;;  %v684_v40 = vsel %vm587_vm2, %v493_v30, 0.0  ;;  %v509_v11 = vld [vmem:[%s6373_s30 + $0x2e0] sm:$0xff]  ;;  %v495_v15 = vld [vmem:[%s6373_s30 + $0x270] sm:$0xff]  ;;  %v510_v30 = vld [vmem:[%s6373_s30 + $0x2e8] sm:$0xff] }
  0x31   : > { %v614_v21 = vadd.f32 %v613_v13, %v612_v9  ;;  %v681_v22 = vadd.f32 %v680_v14, %v679_v10  ;;  %v751_v48 = vsel %vm587_vm2, %v494_v38, 0.0  ;;  %v810_v49 = vsel %vm587_vm2, %v475_v37, 0.0 }
  0x32   : > { %v748_v31 = vadd.f32 %v747_v23, %v746_v19  ;;  %v807_v41 = vadd.f32 %v806_v32, %v805_v28  ;;  %v619_v51 = vsel %vm587_vm2, %v497_v42, 0.0  ;;  %v686_v52 = vsel %vm587_vm2, %v498_v43, 0.0  ;;  %v500_v19 = vld [vmem:[%s6373_s30 + $0x298] sm:$0xff]  ;;  %v518_v32 = vld [vmem:[%s6373_s30 + $0x328] sm:$0xff] }
  0x33   : > { %v616_v33 = vadd.f32 %v615_v26, %v614_v21  ;;  %v683_v34 = vadd.f32 %v682_v27, %v681_v22  ;;  %v753_v61 = vsel %vm587_vm2, %v499_v50, 0.0  ;;  %v621_v63 = vsel %vm587_vm2, %v502_v54, 0.0  ;;  %v505_v22 = vld [vmem:[%s6373_s30 + $0x2c0] sm:$0xff]  ;;  %v514_v26 = vld [vmem:[%s6373_s30 + $0x308] sm:$0xff] }
  0x34   : > { %v750_v44 = vadd.f32 %v749_v35, %v748_v31  ;;  %v809_v45 = vadd.f32 %v808_v36, %v807_v41  ;;  %v688_v0 = vsel %vm587_vm2, %v503_v55, 0.0  ;;  %v812_v1 = vsel %vm587_vm2, %v480_v53, 0.0  ;;  %v517_v31 = vld [vmem:[%s6373_s30 + $0x320] sm:$0xff]  ;;  %v519_v41 = vld [vmem:[%s6373_s30 + $0x330] sm:$0xff] }
  0x35   : > { %v618_v46 = vadd.f32 %v617_v39, %v616_v33  ;;  %v685_v47 = vadd.f32 %v684_v40, %v683_v34  ;;  %v814_v4 = vsel %vm587_vm2, %v485_v56, 0.0  ;;  %v755_v10 = vsel %vm587_vm2, %v504_v62, 0.0  ;;  %v527_v53 = vld [vmem:[%s6373_s30 + $0x370] sm:$0xff]  ;;  %v436_v62 = vld [vmem:[%s6373_s30 + $0x98] sm:$0x3] }
  0x36   : > { %v752_v57 = vadd.f32 %v751_v48, %v750_v44  ;;  %v811_v58 = vadd.f32 %v810_v49, %v809_v45  ;;  %v623_v12 = vsel %vm587_vm2, %v507_v2, 0.0  ;;  %v690_v13 = vsel %vm587_vm2, %v508_v3, 0.0  ;;  %v515_v45 = vld [vmem:[%s6373_s30 + $0x310] sm:$0xff]  ;;  %v524_v49 = vld [vmem:[%s6373_s30 + $0x358] sm:$0xff] }
  0x37   : > { %v620_v59 = vadd.f32 %v619_v51, %v618_v46  ;;  %v687_v60 = vadd.f32 %v686_v52, %v685_v47  ;;  %v816_v18 = vsel %vm587_vm2, %v490_v5, 0.0  ;;  %v757_v25 = vsel %vm587_vm2, %v509_v11, 0.0  ;;  %v522_v46 = vld [vmem:[%s6373_s30 + $0x348] sm:$0xff]  ;;  %v523_v47 = vld [vmem:[%s6373_s30 + $0x350] sm:$0xff]  ;;  %v421_v51 = vld [vmem:[%s6373_s30 + $0x20] sm:$0x3] }
  0x38   : > { %v754_v6 = vadd.f32 %v753_v61, %v752_v57  ;;  %v813_v7 = vadd.f32 %v812_v1, %v811_v58  ;;  %v625_v27 = vsel %vm587_vm2, %v512_v16, 0.0  ;;  %v692_v28 = vsel %vm587_vm2, %v513_v17, 0.0  ;;  %v426_v52 = vld [vmem:[%s6373_s30 + $0x48] sm:$0x3]  ;;  %v431_v58 = vld [vmem:[%s6373_s30 + $0x70] sm:$0x3] }
  0x39   : > { %v622_v8 = vadd.f32 %v621_v63, %v620_v59  ;;  %v689_v9 = vadd.f32 %v688_v0, %v687_v60  ;;  %v818_v29 = vsel %vm587_vm2, %v495_v15, 0.0  ;;  %v820_v34 = vsel %vm587_vm2, %v500_v19, 0.0  ;;  %v520_v63 = vld [vmem:[%s6373_s30 + $0x338] sm:$0xff]  ;;  %v525_v17 = vld [vmem:[%s6373_s30 + $0x360] sm:$0xff] }
  0x3a   : > { %v815_v14 = vadd.f32 %v814_v4, %v813_v7  ;;  %v756_v20 = vadd.f32 %v755_v10, %v754_v6  ;;  %v822_v36 = vsel %vm587_vm2, %v505_v22, 0.0  ;;  %v759_v39 = vsel %vm587_vm2, %v514_v26, 0.0  ;;  %v528_v0 = vld [vmem:[%s6373_s30 + $0x378] sm:$0xff]  ;;  %v441_v6 = vld [vmem:[%s6373_s30 + $0xc0] sm:$0x3] }
  0x3b   : > { %v624_v23 = vadd.f32 %v623_v12, %v622_v8  ;;  %v691_v24 = vadd.f32 %v690_v13, %v689_v9  ;;  %v627_v42 = vsel %vm587_vm2, %v517_v31, 0.0  ;;  %v694_v43 = vsel %vm587_vm2, %v518_v32, 0.0  ;;  %v529_v7 = vld [vmem:[%s6373_s30 + $0x380] sm:$0xff]  ;;  %v446_v12 = vld [vmem:[%s6373_s30 + $0xe8] sm:$0x3] }
  0x3c   : > { %v817_v21 = vadd.f32 %v816_v18, %v815_v14  ;;  %v758_v35 = vadd.f32 %v757_v25, %v756_v20  ;;  %v824_v44 = vsel %vm587_vm2, %v510_v30, 0.0  ;;  %v761_v56 = vsel %vm587_vm2, %v519_v41, 0.0  ;;  %v532_v18 = vld [vmem:[%s6373_s30 + $0x398] sm:$0xff]  ;;  %v533_v19 = vld [vmem:[%s6373_s30 + $0x3a0] sm:$0xff]  ;;  %v534_v25 = vld [vmem:[%s6373_s30 + $0x3a8] sm:$0xff] }
  0x3d   : > { %v626_v37 = vadd.f32 %v625_v27, %v624_v23  ;;  %v693_v38 = vadd.f32 %v692_v28, %v691_v24  ;;  %v629_v59 = vsel %vm587_vm2, %v522_v46, 0.0  ;;  %v696_v60 = vsel %vm587_vm2, %v523_v47, 0.0  ;;  %v451_v24 = vld [vmem:[%s6373_s30 + $0x110] sm:$0x3]  ;;  %v456_v30 = vld [vmem:[%s6373_s30 + $0x138] sm:$0x3] }
  0x3e   : > { %v819_v33 = vadd.f32 %v818_v29, %v817_v21  ;;  %v760_v50 = vadd.f32 %v759_v39, %v758_v35  ;;  %v826_v61 = vsel %vm587_vm2, %v515_v45, 0.0  ;;  %v763_v1 = vsel %vm587_vm2, %v524_v49, 0.0  ;;  %v530_v35 = vld [vmem:[%s6373_s30 + $0x388] sm:$0xff] }
  0x3f   : > { %v628_v54 = vadd.f32 %v627_v42, %v626_v37  ;;  %v695_v55 = vadd.f32 %v694_v43, %v693_v38  ;;  %v631_v2 = vsel %vm587_vm2, %v527_v53, 0.0  ;;  %v857_v4 = vsel %vm856_vm3, %v421_v51, 0.0  ;;  %v538_v37 = vld [vmem:[%s6373_s30 + $0x3c8] sm:$0xff]  ;;  %v461_v42 = vld [vmem:[%s6373_s30 + $0x160] sm:$0x3]  ;;  %v539_v43 = vld [vmem:[%s6373_s30 + $0x3d0] sm:$0xff] }
  0x40   : > { %v821_v40 = vadd.f32 %v820_v34, %v819_v33  ;;  %v762_v3 = vadd.f32 %v761_v56, %v760_v50  ;;  %v858_v5 = vsel %vm856_vm3, %v426_v52, 0.0  ;;  %v698_v13 = vsel %vm587_vm2, %v528_v0, 0.0  ;;  %v535_v53 = vld [vmem:[%s6373_s30 + $0x3b0] sm:$0xff] }
  0x41   : > { %v630_v8 = vadd.f32 %v629_v59, %v628_v54  ;;  %v697_v9 = vadd.f32 %v696_v60, %v695_v55  ;;  %v859_v11 = vadd.f32 %v858_v5, %v857_v4  ;;  %v828_v14 = vsel %vm587_vm2, %v520_v63, 0.0  ;;  %v542_v54 = vld [vmem:[%s6373_s30 + $0x3e8] sm:$0xff]  ;;  %v543_v55 = vld [vmem:[%s6373_s30 + $0x3f0] sm:$0xff] }
  0x42   : > { %v823_v48 = vadd.f32 %v822_v36, %v821_v40  ;;  %v860_v15 = vsel %vm856_vm3, %v431_v58, 0.0  ;;  %v862_v16 = vsel %vm856_vm3, %v436_v62, 0.0  ;;  %v764_v21 = vadd.f32 %v763_v1, %v762_v3  ;;  %v537_v36 = vld [vmem:[%s6373_s30 + $0x3c0] sm:$0xff]  ;;  %v471_v60 = vld [vmem:[%s6373_s30 + $0x1b0] sm:$0x3] }
  0x43   : > { %v861_v20 = vadd.f32 %v860_v15, %v859_v11  ;;  %v765_v22 = vsel %vm587_vm2, %v529_v7, 0.0  ;;  %v864_v23 = vsel %vm856_vm3, %v441_v6, 0.0  ;;  %v632_v26 = vadd.f32 %v631_v2, %v630_v8  ;;  %v476_v2 = vld [vmem:[%s6373_s30 + $0x1d8] sm:$0x3]  ;;  %v547_v8 = vld [vmem:[%s6373_s30 + $0x410] sm:$0xff]  ;;  %v549_v15 = vld [vmem:[%s6373_s30 + $0x420] sm:$0xff] }
  0x44   : > { %v825_v57 = vadd.f32 %v824_v44, %v823_v48  ;;  %v699_v27 = vadd.f32 %v698_v13, %v697_v9  ;;  %v633_v31 = vsel %vm587_vm2, %v532_v18, 0.0  ;;  %v700_v32 = vsel %vm587_vm2, %v533_v19, 0.0  ;;  %v466_v48 = vld [vmem:[%s6373_s30 + $0x188] sm:$0x3]  ;;  %v540_v7 = vld [vmem:[%s6373_s30 + $0x3d8] sm:$0xff] }
  0x45   : > { %v863_v29 = vadd.f32 %v862_v16, %v861_v20  ;;  %v830_v33 = vsel %vm587_vm2, %v525_v17, 0.0  ;;  %v866_v34 = vsel %vm856_vm3, %v446_v12, 0.0  ;;  %v766_v39 = vadd.f32 %v765_v22, %v764_v21  ;;  %v548_v9 = vld [vmem:[%s6373_s30 + $0x418] sm:$0xff]  ;;  %v486_v20 = vld [vmem:[%s6373_s30 + $0x228] sm:$0x3] }
  0x46   : > { %v827_v10 = vadd.f32 %v826_v61, %v825_v57  ;;  %v767_v40 = vsel %vm587_vm2, %v534_v25, 0.0  ;;  %v868_v41 = vsel %vm856_vm3, %v451_v24, 0.0  ;;  %v634_v44 = vadd.f32 %v633_v31, %v632_v26  ;;  %v544_v61 = vld [vmem:[%s6373_s30 + $0x3f8] sm:$0xff]  ;;  %v545_v25 = vld [vmem:[%s6373_s30 + $0x400] sm:$0xff] }
  0x47   : > { %v865_v38 = vadd.f32 %v864_v23, %v863_v29  ;;  %v701_v45 = vadd.f32 %v700_v32, %v699_v27  ;;  %v635_v49 = vsel %vm587_vm2, %v537_v36, 0.0  ;;  %v702_v50 = vsel %vm587_vm2, %v538_v37, 0.0  ;;  %v552_v26 = vld [vmem:[%s6373_s30 + $0x438] sm:$0xff]  ;;  %v553_v27 = vld [vmem:[%s6373_s30 + $0x440] sm:$0xff]  ;;  %v491_v32 = vld [vmem:[%s6373_s30 + $0x250] sm:$0x3] }
  0x48   : > { %v829_v28 = vadd.f32 %v828_v14, %v827_v10  ;;  %v832_v51 = vsel %vm587_vm2, %v530_v35, 0.0  ;;  %v870_v52 = vsel %vm856_vm3, %v456_v30, 0.0  ;;  %v768_v57 = vadd.f32 %v767_v40, %v766_v39  ;;  %v481_v14 = vld [vmem:[%s6373_s30 + $0x200] sm:$0x3] }
  0x49   : > { %v867_v47 = vadd.f32 %v866_v34, %v865_v38  ;;  %v769_v58 = vsel %vm587_vm2, %v539_v43, 0.0  ;;  %v872_v59 = vsel %vm856_vm3, %v461_v42, 0.0  ;;  %v636_v62 = vadd.f32 %v635_v49, %v634_v44  ;;  %v496_v38 = vld [vmem:[%s6373_s30 + $0x278] sm:$0x3]  ;;  %v550_v43 = vld [vmem:[%s6373_s30 + $0x428] sm:$0xff]  ;;  %v557_v44 = vld [vmem:[%s6373_s30 + $0x460] sm:$0xff] }
  0x4a   : > { %v831_v46 = vadd.f32 %v830_v33, %v829_v28  ;;  %v703_v63 = vadd.f32 %v702_v50, %v701_v45  ;;  %v637_v3 = vsel %vm587_vm2, %v542_v54, 0.0  ;;  %v704_v4 = vsel %vm587_vm2, %v543_v55, 0.0  ;;  %v554_v33 = vld [vmem:[%s6373_s30 + $0x448] sm:$0xff]  ;;  %v501_v50 = vld [vmem:[%s6373_s30 + $0x2a0] sm:$0x3] }
  0x4b   : > { %v869_v56 = vadd.f32 %v868_v41, %v867_v47  ;;  %v834_v5 = vsel %vm587_vm2, %v535_v53, 0.0  ;;  %v874_v6 = vsel %vm856_vm3, %v466_v48, 0.0  ;;  %v770_v11 = vadd.f32 %v769_v58, %v768_v57  ;;  %v558_v45 = vld [vmem:[%s6373_s30 + $0x468] sm:$0xff] }
  0x4c   : > { %v833_v0 = vadd.f32 %v832_v51, %v831_v46  ;;  %v771_v12 = vsel %vm587_vm2, %v544_v61, 0.0  ;;  %v876_v13 = vsel %vm856_vm3, %v471_v60, 0.0  ;;  %v638_v16 = vadd.f32 %v637_v3, %v636_v62  ;;  %v559_v51 = vld [vmem:[%s6373_s30 + $0x470] sm:$0xff]  ;;  %v562_v62 = vld [vmem:[%s6373_s30 + $0x488] sm:$0xff] }
  0x4d   : > { %v871_v1 = vadd.f32 %v870_v52, %v869_v56  ;;  %v705_v17 = vadd.f32 %v704_v4, %v703_v63  ;;  %v639_v21 = vsel %vm587_vm2, %v547_v8, 0.0  ;;  %v706_v22 = vsel %vm587_vm2, %v548_v9, 0.0  ;;  %v506_v56 = vld [vmem:[%s6373_s30 + $0x2c8] sm:$0x3]  ;;  %v555_v61 = vld [vmem:[%s6373_s30 + $0x450] sm:$0xff] }
  0x4e   : > { %v835_v18 = vadd.f32 %v834_v5, %v833_v0  ;;  %v836_v23 = vsel %vm587_vm2, %v540_v7, 0.0  ;;  %v878_v24 = vsel %vm856_vm3, %v476_v2, 0.0  ;;  %v772_v29 = vadd.f32 %v771_v12, %v770_v11  ;;  %v563_v63 = vld [vmem:[%s6373_s30 + $0x490] sm:$0xff]  ;;  %v564_v5 = vld [vmem:[%s6373_s30 + $0x498] sm:$0xff] }
  0x4f   : > { %v873_v10 = vadd.f32 %v872_v59, %v871_v1  ;;  %v773_v30 = vsel %vm587_vm2, %v549_v15, 0.0  ;;  %v880_v31 = vsel %vm856_vm3, %v481_v14, 0.0  ;;  %v640_v34 = vadd.f32 %v639_v21, %v638_v16  ;;  %v511_v4 = vld [vmem:[%s6373_s30 + $0x2f0] sm:$0x3]  ;;  %v560_v15 = vld [vmem:[%s6373_s30 + $0x478] sm:$0xff] }
  0x50   : > { %v707_v35 = vadd.f32 %v706_v22, %v705_v17  ;;  %v837_v36 = vadd.f32 %v836_v23, %v835_v18  ;;  %v641_v39 = vsel %vm587_vm2, %v552_v26, 0.0  ;;  %v708_v40 = vsel %vm587_vm2, %v553_v27, 0.0  ;;  %v567_v16 = vld [vmem:[%s6373_s30 + $0x4b0] sm:$0xff]  ;;  %v568_v17 = vld [vmem:[%s6373_s30 + $0x4b8] sm:$0xff]  ;;  %v521_v22 = vld [vmem:[%s6373_s30 + $0x340] sm:$0x3] }
  0x51   : > { %v875_v19 = vadd.f32 %v874_v6, %v873_v10  ;;  %v838_v41 = vsel %vm587_vm2, %v545_v25, 0.0  ;;  %v882_v42 = vsel %vm856_vm3, %v486_v20, 0.0  ;;  %v774_v47 = vadd.f32 %v773_v30, %v772_v29  ;;  %v516_v10 = vld [vmem:[%s6373_s30 + $0x318] sm:$0x3]  ;;  %v569_v23 = vld [vmem:[%s6373_s30 + $0x4c0] sm:$0xff] }
  0x52   : > { %v775_v48 = vsel %vm587_vm2, %v554_v33, 0.0  ;;  %v884_v49 = vsel %vm856_vm3, %v491_v32, 0.0  ;;  %v642_v52 = vadd.f32 %v641_v39, %v640_v34  ;;  %v709_v53 = vadd.f32 %v708_v40, %v707_v35  ;;  %v565_v33 = vld [vmem:[%s6373_s30 + $0x4a0] sm:$0xff]  ;;  %v572_v34 = vld [vmem:[%s6373_s30 + $0x4d8] sm:$0xff]  ;;  %v531_v40 = vld [vmem:[%s6373_s30 + $0x390] sm:$0x3] }
  0x53   : > { %v877_v28 = vadd.f32 %v876_v13, %v875_v19  ;;  %v839_v54 = vadd.f32 %v838_v41, %v837_v36  ;;  %v643_v57 = vsel %vm587_vm2, %v557_v44, 0.0  ;;  %v710_v58 = vsel %vm587_vm2, %v558_v45, 0.0  ;;  %v573_v35 = vld [vmem:[%s6373_s30 + $0x4e0] sm:$0xff]  ;;  %v574_v41 = vld [vmem:[%s6373_s30 + $0x4e8] sm:$0xff] }
  0x54   : > { %v840_v59 = vsel %vm587_vm2, %v550_v43, 0.0  ;;  %v886_v60 = vsel %vm856_vm3, %v496_v38, 0.0  ;;  %v776_v1 = vadd.f32 %v775_v48, %v774_v47  ;;  %v777_v2 = vsel %vm587_vm2, %v559_v51, 0.0  ;;  %v570_v51 = vld [vmem:[%s6373_s30 + $0x4c8] sm:$0xff] }
  0x55   : > { %v879_v37 = vadd.f32 %v878_v24, %v877_v28  ;;  %v888_v3 = vsel %vm856_vm3, %v501_v50, 0.0  ;;  %v644_v6 = vadd.f32 %v643_v57, %v642_v52  ;;  %v711_v7 = vadd.f32 %v710_v58, %v709_v53  ;;  %v526_v28 = vld [vmem:[%s6373_s30 + $0x368] sm:$0x3]  ;;  %v577_v52 = vld [vmem:[%s6373_s30 + $0x500] sm:$0xff] }
  0x56   : > { %v841_v8 = vadd.f32 %v840_v59, %v839_v54  ;;  %v645_v11 = vsel %vm587_vm2, %v562_v62, 0.0  ;;  %v712_v12 = vsel %vm587_vm2, %v563_v63, 0.0  ;;  %v842_v13 = vsel %vm587_vm2, %v555_v61, 0.0  ;;  %v578_v53 = vld [vmem:[%s6373_s30 + $0x508] sm:$0xff]  ;;  %v541_v58 = vld [vmem:[%s6373_s30 + $0x3e0] sm:$0x3] }
  0x57   : > { %v881_v46 = vadd.f32 %v880_v31, %v879_v37  ;;  %v890_v14 = vsel %vm856_vm3, %v506_v56, 0.0  ;;  %v778_v19 = vadd.f32 %v777_v2, %v776_v1  ;;  %v779_v20 = vsel %vm587_vm2, %v564_v5, 0.0  ;;  %v579_v59 = vld [vmem:[%s6373_s30 + $0x510] sm:$0xff] }
  0x58   : > { %v892_v21 = vsel %vm856_vm3, %v511_v4, 0.0  ;;  %v646_v24 = vadd.f32 %v645_v11, %v644_v6  ;;  %v713_v25 = vadd.f32 %v712_v12, %v711_v7  ;;  %v843_v26 = vadd.f32 %v842_v13, %v841_v8  ;;  %v575_v5 = vld [vmem:[%s6373_s30 + $0x4f0] sm:$0xff]  ;;  %v582_v6 = vld [vmem:[%s6373_s30 + $0x528] sm:$0xff]  ;;  %v584_v13 = vld [vmem:[%s6373_s30 + $0x538] sm:$0xff] }
  0x59   : > { %v883_v55 = vadd.f32 %v882_v42, %v881_v46  ;;  %v647_v29 = vsel %vm587_vm2, %v567_v16, 0.0  ;;  %v714_v30 = vsel %vm587_vm2, %v568_v17, 0.0  ;;  %v844_v31 = vsel %vm587_vm2, %v560_v15, 0.0  ;;  %v536_v46 = vld [vmem:[%s6373_s30 + $0x3b8] sm:$0x3]  ;;  %v583_v7 = vld [vmem:[%s6373_s30 + $0x530] sm:$0xff] }
  0x5a   : > { %v894_v32 = vsel %vm856_vm3, %v516_v10, 0.0  ;;  %v780_v37 = vadd.f32 %v779_v20, %v778_v19  ;;  %v781_v38 = vsel %vm587_vm2, %v569_v23, 0.0  ;;  %v896_v39 = vsel %vm856_vm3, %v521_v22, 0.0  ;;  %v551_v12 = vld [vmem:[%s6373_s30 + $0x430] sm:$0x3]  ;;  %v580_v23 = vld [vmem:[%s6373_s30 + $0x518] sm:$0xff] }
  0x5b   : > { %v885_v0 = vadd.f32 %v884_v49, %v883_v55  ;;  %v648_v42 = vadd.f32 %v647_v29, %v646_v24  ;;  %v715_v43 = vadd.f32 %v714_v30, %v713_v25  ;;  %v845_v44 = vadd.f32 %v844_v31, %v843_v26  ;;  %v556_v22 = vld [vmem:[%s6373_s30 + $0x458] sm:$0x3] }
  0x5c   : > { %v649_v47 = vsel %vm587_vm2, %v572_v34, 0.0  ;;  %v716_v48 = vsel %vm587_vm2, %v573_v35, 0.0  ;;  %v846_v49 = vsel %vm587_vm2, %v565_v33, 0.0  ;;  %v898_v50 = vsel %vm856_vm3, %v526_v28, 0.0  ;;  %v561_v28 = vld [vmem:[%s6373_s30 + $0x480] sm:$0x3] }
  0x5d   : > { %v887_v9 = vadd.f32 %v886_v60, %v885_v0  ;;  %v782_v55 = vadd.f32 %v781_v38, %v780_v37  ;;  %v783_v56 = vsel %vm587_vm2, %v574_v41, 0.0  ;;  %v900_v57 = vsel %vm856_vm3, %v531_v40, 0.0  ;;  %v546_v0 = vld [vmem:[%s6373_s30 + $0x408] sm:$0x3]  ;;  %v571_v40 = vld [vmem:[%s6373_s30 + $0x4d0] sm:$0x3] }
  0x5e   : > { %v650_v60 = vadd.f32 %v649_v47, %v648_v42  ;;  %v717_v61 = vadd.f32 %v716_v48, %v715_v43  ;;  %v847_v62 = vadd.f32 %v846_v49, %v845_v44  ;;  %v651_v1 = vsel %vm587_vm2, %v577_v52, 0.0  ;;  %v566_v35 = vld [vmem:[%s6373_s30 + $0x4a8] sm:$0x3]  ;;  %v576_v47 = vld [vmem:[%s6373_s30 + $0x4f8] sm:$0x3] }
  0x5f   : > { %v889_v18 = vadd.f32 %v888_v3, %v887_v9  ;;  %v718_v2 = vsel %vm587_vm2, %v578_v53, 0.0  ;;  %v848_v3 = vsel %vm587_vm2, %v570_v51, 0.0  ;;  %v902_v4 = vsel %vm856_vm3, %v536_v46, 0.0  ;;  %v581_v51 = vld [vmem:[%s6373_s30 + $0x520] sm:$0x3] }
  0x60   : > { %v784_v9 = vadd.f32 %v783_v56, %v782_v55  ;;  %v785_v10 = vsel %vm587_vm2, %v579_v59, 0.0  ;;  %v904_v11 = vsel %vm856_vm3, %v541_v58, 0.0  ;;  %v719_v15 = vadd.f32 %v718_v2, %v717_v61  ;;  %v586_v56 = vld [vmem:[%s6373_s30 + $0x548] sm:$0x3] }
  0x61   : > { %v891_v27 = vadd.f32 %v890_v14, %v889_v18  ;;  %v652_v14 = vadd.f32 %v651_v1, %v650_v60  ;;  %v849_v16 = vadd.f32 %v848_v3, %v847_v62  ;;  %v653_v18 = vsel %vm587_vm2, %v582_v6, 0.0 }
  0x62   : > { %v720_v19 = vsel %vm587_vm2, %v583_v7, 0.0  ;;  %v850_v20 = vsel %vm587_vm2, %v575_v5, 0.0  ;;  %v786_v25 = vadd.f32 %v785_v10, %v784_v9  ;;  %v787_v26 = vsel %vm587_vm2, %v584_v13, 0.0 }
  0x63   : > { %v893_v36 = vadd.f32 %v892_v21, %v891_v27  ;;  %v906_v21 = vsel %vm856_vm3, %v546_v0, 0.0  ;;  %v908_v27 = vsel %vm856_vm3, %v551_v12, 0.0  ;;  %v654_v29 = vadd.f32 %v653_v18, %v652_v14  ;;  %v941_v12 = vld [vmem:[%s8940_s9] sm:$0x1] }
  0x64   : > { %v721_v30 = vadd.f32 %v720_v19, %v719_v15  ;;  %v851_v31 = vadd.f32 %v850_v20, %v849_v16  ;;  %v852_v33 = vsel %vm587_vm2, %v580_v23, 0.0  ;;  %v910_v34 = vsel %vm856_vm3, %v556_v22, 0.0 }
  0x65   : > { %v895_v45 = vadd.f32 %v894_v32, %v893_v36  ;;  %v585_v36 = vld [vmem:[%s6373_s30 + $0x540] sm:$0xff]  ;;  %v788_v38 = vadd.f32 %v787_v26, %v786_v25  ;;  %v924_v43 = vsel %vm587_vm2, %v654_v29, 0.0  ;;  %v914_v46 = vsel %vm856_vm3, %v566_v35, 0.0 }
  0x66   : > { %v853_v41 = vadd.f32 %v852_v33, %v851_v31  ;;  %v925_v44 = vsel %vm587_vm2, %v721_v30, 0.0  ;;  %v916_v49 = vsel %vm856_vm3, %v571_v40, 0.0  ;;  %v918_v55 = vsel %vm856_vm3, %v576_v47, 0.0 }
  0x67   : > { %v897_v54 = vadd.f32 %v896_v39, %v895_v45  ;;  %v912_v39 = vsel %vm856_vm3, %v561_v28, 0.0  ;;  %v854_v45 = vsel %vm587_vm2, %v585_v36, 0.0  ;;  %v920_v58 = vsel %vm856_vm3, %v581_v51, 0.0 }
  0x68   : > { %v855_v52 = vadd.f32 %v854_v45, %v853_v41  ;;  %v922_v62 = vsel %vm856_vm3, %v586_v56, 0.0 }
  0x69   : > { %v899_v63 = vadd.f32 %v898_v50, %v897_v54  ;;  %v926_v50 = vadd.f32 %v925_v44, %v924_v43  ;;  %v927_v54 = vsel %vm587_vm2, %v788_v38, 0.0 }
  0x6a   : > { %v929_v61 = vsel %vm587_vm2, %v855_v52, 0.0 }
  0x6b   : > { %v901_v8 = vadd.f32 %v900_v57, %v899_v63  ;;  %v928_v59 = vadd.f32 %v927_v54, %v926_v50 }
  0x6d   : > { %v903_v17 = vadd.f32 %v902_v4, %v901_v8  ;;  %v930_v0 = vadd.f32 %v929_v61, %v928_v59 }
  0x6f   : > { %v905_v24 = vadd.f32 %v904_v11, %v903_v17  ;;  %v1020_v11 = vld [vmem:[%s8941_s10] sm:$0xff] }
  0x70   : > { %5867 = vmatpush3.msra.mxu1 %v1020_v11 }
  0x71   : > { %v907_v32 = vadd.f32 %v906_v21, %v905_v24 }
  0x73   : > { %v909_v37 = vadd.f32 %v908_v27, %v907_v32 }
  0x75   : > { %v911_v42 = vadd.f32 %v910_v34, %v909_v37 }
  0x77   : > { %v913_v48 = vadd.f32 %v912_v39, %v911_v42 }
  0x79   : > { %v915_v53 = vadd.f32 %v914_v46, %v913_v48 }
  0x7b   : > { %v917_v57 = vadd.f32 %v916_v49, %v915_v53 }
  0x7d   : > { %v919_v60 = vadd.f32 %v918_v55, %v917_v57 }
  0x7f   : > { %v921_v63 = vadd.f32 %v920_v58, %v919_v60 }
  0x81   : > { %v923_v1 = vadd.f32 %v922_v62, %v921_v63 }
  0x83   : > { %v931_v2 = vsel %vm856_vm3, %v923_v1, 0.0 }
  0x84   : > { %v932_v3 = vadd.f32 %v931_v2, %v930_v0 }
  0x86   : > { %v933_v4 = vrot.slane %v932_v3, 4 }
  0x88   : > { %v934_v5 = vadd.f32 %v933_v4, %v932_v3 }
  0x8a   : > { %v935_v6 = vrot.slane %v934_v5, 2 }
  0x8c   : > { %v936_v7 = vadd.f32 %v935_v6, %v934_v5 }
  0x8e   : > { %v937_v8 = vrot.slane %v936_v7, 1 }
  0x90   : > { %v938_v9 = vadd.f32 %v937_v8, %v936_v7 }
  0x92   : > { %v939_v10 = vmul.f32 0.00390625, %v938_v9 }
  0x94   : > { %5864 = vmatmul.mubr.msk.f32.vlgmr.msra.gmra.mrb[0].mxu0 %vm587_vm2, %v939_v10 }
 0x167   : > { %v1015_v13 = vpop.f32.mrb[0].mxu0 }
 0x168   : > { %v1016_v14 = vadd.f32 %v1015_v13, %v941_v12  ;;  %v5865_v15 = vpop.f32.mrb[1].mxu0 }
 0x16a   : > { %v1019_v16 = vmax.f32 %v1016_v14, 0.0 }
 0x16c   : > { %5869 = vmatmul.mubr.msk.f32.vlgmr.msra.gmra.mrb[0].mxu1 %vm1021_vm4, %v1019_v16 }
 0x23f   : > { %v1091_v17 = vpop.f32.mrb[0].mxu1 }
 0x240   : > { %1096 = vst.msk [vmem:[#allocation2] sm:$0x1] %vm1095_vm5, %v1091_v17  ;;  %v5870_v18 = vpop.f32.mrb[1].mxu1 }
 0x241 PF: > { %s5205_s25 = smul.u32 320, %s6249_s17  ;;  %s6269_s27 = smov 4   ;;  %vm1122_vm6 = vcmask 31744   ;;  %v1116_v47 = vld [vmem:[%s8932_s1] sm:$0xf]  ;;  %vm1171_vm7 = vcmask 1043456  }
 0x242   : > { %s6270_s17 = smov 8   ;;  %5871 = vmatprep.subr.msk.mxu1 %vm1171_vm7, %v1116_v47  ;;  %v2102_v0 = vld [vmem:[%s8933_s2] sm:$0xff]  ;;  %s6272_s14 = smov 16   ;;  %v2103_v2 = vld [vmem:[%s8933_s2 + $0x8] sm:$0xff]  ;;  %v2104_v5 = vld [vmem:[%s8933_s2 + $0x10] sm:$0xff]  ;;  %vm1983_vm8 = vcmask 64512  }
 0x243   : > { %s6738_s26 = scalar_lea.vmem %s6373_s30, %s5205_s25  ;;  %5872 = vmatpush3.msk.msra.mxu1 %vm1171_vm7, %v1116_v47  ;;  %s6271_s30 = smov 12   ;;  %v6103_v3 = vpack.c.bf16 %v2103_v2, %v2102_v0  ;;  %v2105_v6 = vld [vmem:[%s8933_s2 + $0x18] sm:$0xff]  ;;  %v2106_v8 = vld [vmem:[%s8933_s2 + $0x20] sm:$0xf]  ;;  %vm2000_vm9 = vcmask 97280   ;;  %vm2017_vm10 = vcmask 130048  }
 0x244   : > { %v5260_v19 = vld [vmem:[%s6738_s26 + $0x121] sm:$0xff]  ;;  %v5258_v20 = vld [vmem:[%s6738_s26 + $0xf9] sm:$0xff]  ;;  %v5261_v21 = vld [vmem:[%s6738_s26 + $0x129] sm:$0xff]  ;;  %s6273_s22 = smov 20   ;;  %v6107_v7 = vpack.c.bf16 %v2105_v6, %v2104_v5  ;;  %s6274_s29 = smov 24   ;;  %vm2034_vm11 = vcmask 162816  }
 0x245   : > { %1491 = vrot.lane.b32.xlu1 %v5260_v19, %s6269_s27  ;;  %1487 = vrot.lane.b32.xlu0 %v5258_v20, %s6269_s27  ;;  %v5259_v22 = vld [vmem:[%s6738_s26 + $0x101] sm:$0xff]  ;;  %v6747_v23 = vld [vmem:[%s6738_s26 + $0x171] sm:$0xff]  ;;  %s6275_s15 = smov 28   ;;  %s6276_s18 = smov 32   ;;  %vm2051_vm12 = vcmask 195584   ;;  %vm2068_vm13 = vcmask 228352  }
 0x246   : > { %5873 = vmatprep.mubr.msk.f32.mxu1 %vm1122_vm6, %v6747_v23  ;;  %v5263_v24 = vld [vmem:[%s6738_s26 + $0x151] sm:$0xff]  ;;  %v5262_v25 = vld [vmem:[%s6738_s26 + $0x149] sm:$0xff]  ;;  %v6758_v26 = vld [vmem:[%s6738_s26 + $0x179] sm:$0xff]  ;;  %6104 = vmatprep.subr.bf16.mxu1 %v6103_v3  ;;  %vm2085_vm14 = vcmask 261120   ;;  %vm2112_vm15 = vcmask 293888  }
 0x247   : > { %v6765_v27 = vld [vmem:[%s6738_s26 + $0x1a1] sm:$0xff]  ;;  %v6768_v28 = vld [vmem:[%s6738_s26 + $0x199] sm:$0xff]  ;;  %v6775_v29 = vld [vmem:[%s6738_s26 + $0x1c9] sm:$0xff]  ;;  %5874 = vmatmul.mubr.msk.f32.vlgmr.msra.gmra.mrb[0].mxu1 %vm1122_vm6, %v6758_v26 }
 0x248   : > { %v6778_v30 = vld [vmem:[%s6738_s26 + $0x1c1] sm:$0xff]  ;;  %v6785_v31 = vld [vmem:[%s6738_s26 + $0x1f1] sm:$0xff]  ;;  %v6788_v32 = vld [vmem:[%s6738_s26 + $0x1e9] sm:$0xff]  ;;  %5876 = vmatprep.mubr.msk.f32.mxu1 %vm1122_vm6, %v6768_v28  ;;  %6106 = vmatpush3.bf16.msra.mxu1 %v6103_v3 }
 0x249   : > { %1493 = vrot.lane.b32.xlu1 %v5261_v21, %s6269_s27  ;;  %1489 = vrot.lane.b32.xlu0 %v5259_v22, %s6269_s27  ;;  %v6795_v33 = vld [vmem:[%s6738_s26 + $0x219] sm:$0xff]  ;;  %v6798_v34 = vld [vmem:[%s6738_s26 + $0x211] sm:$0xff] }
 0x24a   : > { %v5275_v35 = vld [vmem:[%s6738_s26 + $0x104] sm:$0xff]  ;;  %v5274_v36 = vld [vmem:[%s6738_s26 + $0xfc] sm:$0xff]  ;;  %v5277_v37 = vld [vmem:[%s6738_s26 + $0x12c] sm:$0xff]  ;;  %6108 = vmatprep.subr.bf16.mxu1 %v6107_v7 }
 0x24b   : > { %v5276_v38 = vld [vmem:[%s6738_s26 + $0x124] sm:$0xff]  ;;  %v5279_v39 = vld [vmem:[%s6738_s26 + $0x154] sm:$0xff]  ;;  %v5278_v40 = vld [vmem:[%s6738_s26 + $0x14c] sm:$0xff]  ;;  %5877 = vmatmul.mubr.msk.f32.gmra.mrb[2].mxu1 %vm1122_vm6, %v6765_v27 }
 0x24c   : > { %v6817_v41 = vld [vmem:[%s6738_s26 + $0x17c] sm:$0xff]  ;;  %v6820_v42 = vld [vmem:[%s6738_s26 + $0x174] sm:$0xff]  ;;  %v6827_v43 = vld [vmem:[%s6738_s26 + $0x1a4] sm:$0xff]  ;;  %5879 = vmatprep.mubr.msk.f32.mxu1 %vm1122_vm6, %v6778_v30  ;;  %6110 = vmatpush3.bf16.msra.mxu1 %v6107_v7 }
 0x24d   : > { %1497 = vrot.lane.b32.xlu1 %v5263_v24, %s6269_s27  ;;  %1495 = vrot.lane.b32.xlu0 %v5262_v25, %s6269_s27  ;;  %v6830_v44 = vld [vmem:[%s6738_s26 + $0x19c] sm:$0xff]  ;;  %v6837_v45 = vld [vmem:[%s6738_s26 + $0x1cc] sm:$0xff] }
 0x24e   : > { %v6840_v46 = vld [vmem:[%s6738_s26 + $0x1c4] sm:$0xff]  ;;  %v6850_v48 = vld [vmem:[%s6738_s26 + $0x1f4] sm:$0xff]  ;;  %v6853_v49 = vld [vmem:[%s6738_s26 + $0x1ec] sm:$0xff]  ;;  %5905 = vmatprep.subr.msk.mxu1 %vm1171_vm7, %v2106_v8 }
 0x24f   : > { %v6864_v50 = vld [vmem:[%s6738_s26 + $0x21c] sm:$0xff]  ;;  %v6867_v51 = vld [vmem:[%s6738_s26 + $0x214] sm:$0xff]  ;;  %5880 = vmatmul.mubr.msk.f32.gmra.mrb[4].mxu1 %vm1122_vm6, %v6775_v29  ;;  %v6906_v56 = vld [vmem:[%s6738_s26 + $0x1c6] sm:$0xff] }
 0x250   : > { %v6878_v52 = vld [vmem:[%s6738_s26 + $0x176] sm:$0xff]  ;;  %v6881_v53 = vld [vmem:[%s6738_s26 + $0x16e] sm:$0xff]  ;;  %v6892_v54 = vld [vmem:[%s6738_s26 + $0x19e] sm:$0xff]  ;;  %5882 = vmatprep.mubr.msk.f32.mxu1 %vm1122_vm6, %v6788_v32  ;;  %5906 = vmatpush3.msk.msra.mxu1 %vm1171_vm7, %v2106_v8 }
 0x251   : > { %1501 = vrot.lane.b32.xlu1 %v6758_v26, %s6269_s27  ;;  %1499 = vrot.lane.b32.xlu0 %v6747_v23, %s6269_s27  ;;  %v6895_v55 = vld [vmem:[%s6738_s26 + $0x196] sm:$0xff]  ;;  %v6909_v57 = vld [vmem:[%s6738_s26 + $0x1be] sm:$0xff] }
 0x252   : > { %v6920_v58 = vld [vmem:[%s6738_s26 + $0x239] sm:$0xff]  ;;  %v5297_v59 = vld [vmem:[%s6738_s26 + $0x1ee] sm:$0xff]  ;;  %v6924_v60 = vld [vmem:[%s6738_s26 + $0x1e6] sm:$0xff] }
 0x253   : > { %5883 = vmatmul.mubr.msk.f32.gmra.mrb[6].mxu1 %vm1122_vm6, %v6785_v31  ;;  %8949 = vst [vmem:[#allocation5_spill] sm:$0xff] %v6924_v60  ;;  %v6929_v61 = vld [vmem:[%s6738_s26 + $0x241] sm:$0xff]  ;;  %v6942_v63 = vld [vmem:[%s6738_s26 + $0x269] sm:$0xff]  ;;  %v6962_v4 = vld [vmem:[%s6738_s26 + $0x291] sm:$0xff] }
 0x254   : > { %5885 = vmatprep.mubr.msk.f32.mxu1 %vm1122_vm6, %v6798_v34  ;;  %v6937_v62 = vld [vmem:[%s6738_s26 + $0x261] sm:$0xff]  ;;  %v6954_v1 = vld [vmem:[%s6738_s26 + $0x289] sm:$0xff]  ;;  %v7001_v9 = vld [vmem:[%s6738_s26 + $0x216] sm:$0xff] }
 0x255   : > { %1505 = vrot.lane.b32.xlu1 %v6765_v27, %s6269_s27  ;;  %1503 = vrot.lane.b32.xlu0 %v6768_v28, %s6269_s27  ;;  %8950 = vst [vmem:[#allocation6_spill] sm:$0xff] %v7001_v9  ;;  %v7004_v10 = vld [vmem:[%s6738_s26 + $0x20e] sm:$0xff]  ;;  %v7039_v17 = vld [vmem:[%s6738_s26 + $0x23e] sm:$0xff] }
 0x256   : > { %8951 = vst [vmem:[#allocation7_spill] sm:$0xff] %v7004_v10  ;;  %v5328_v18 = vld [vmem:[%s6738_s26 + $0x236] sm:$0xff]  ;;  %v7166_v3 = vld [vmem:[%s6738_s26 + $0x28c] sm:$0xff] }
 0x257   : > { %5886 = vmatmul.mubr.msk.f32.gmra.mrb[8].mxu1 %vm1122_vm6, %v6795_v33  ;;  %v7184_v8 = vld [vmem:[%s6738_s26 + $0x294] sm:$0xff] }
 0x258   : > { %5888 = vmatprep.mubr.msk.f32.mxu1 %vm1122_vm6, %v6920_v58 }
 0x259   : > { %1509 = vrot.lane.b32.xlu1 %v6775_v29, %s6269_s27  ;;  %1507 = vrot.lane.b32.xlu0 %v6778_v30, %s6269_s27 }
 0x25b   : > { %5889 = vmatmul.mubr.msk.f32.gmra.mrb[10].mxu1 %vm1122_vm6, %v6929_v61 }
 0x25c   : > { %5891 = vmatprep.mubr.msk.f32.mxu1 %vm1122_vm6, %v6937_v62 }
 0x25d   : > { %1513 = vrot.lane.b32.xlu1 %v6785_v31, %s6269_s27  ;;  %1511 = vrot.lane.b32.xlu0 %v6788_v32, %s6269_s27 }
 0x25f   : > { %5892 = vmatmul.mubr.msk.f32.gmra.mrb[12].mxu1 %vm1122_vm6, %v6942_v63 }
 0x260   : > { %5894 = vmatprep.mubr.msk.f32.mxu1 %vm1122_vm6, %v6954_v1 }
 0x261   : > { %1517 = vrot.lane.b32.xlu1 %v6795_v33, %s6269_s27  ;;  %1515 = vrot.lane.b32.xlu0 %v6798_v34, %s6269_s27 }
 0x263   : > { %5895 = vmatmul.mubr.msk.f32.gmra.mrb[14].mxu1 %vm1122_vm6, %v6962_v4 }
 0x265   : > { %1553 = vrot.lane.b32.xlu1 %v5275_v35, %s6270_s17  ;;  %1551 = vrot.lane.b32.xlu0 %v5274_v36, %s6270_s17 }
 0x269   : > { %1557 = vrot.lane.b32.xlu1 %v5277_v37, %s6270_s17  ;;  %1555 = vrot.lane.b32.xlu0 %v5276_v38, %s6270_s17 }
 0x26d   : > { %1561 = vrot.lane.b32.xlu1 %v5279_v39, %s6270_s17  ;;  %1559 = vrot.lane.b32.xlu0 %v5278_v40, %s6270_s17 }
 0x271   : > { %1565 = vrot.lane.b32.xlu1 %v6817_v41, %s6270_s17  ;;  %1563 = vrot.lane.b32.xlu0 %v6820_v42, %s6270_s17 }
 0x275   : > { %1569 = vrot.lane.b32.xlu1 %v6827_v43, %s6270_s17  ;;  %1567 = vrot.lane.b32.xlu0 %v6830_v44, %s6270_s17 }
 0x279   : > { %1573 = vrot.lane.b32.xlu1 %v6837_v45, %s6270_s17  ;;  %1571 = vrot.lane.b32.xlu0 %v6840_v46, %s6270_s17 }
 0x27d   : > { %1577 = vrot.lane.b32.xlu1 %v6850_v48, %s6270_s17  ;;  %1575 = vrot.lane.b32.xlu0 %v6853_v49, %s6270_s17 }
 0x281   : > { %1581 = vrot.lane.b32.xlu1 %v6864_v50, %s6270_s17  ;;  %1579 = vrot.lane.b32.xlu0 %v6867_v51, %s6270_s17 }
 0x285   : > { %1617 = vrot.lane.b32.xlu1 %v6878_v52, %s6271_s30  ;;  %1615 = vrot.lane.b32.xlu0 %v6881_v53, %s6271_s30 }
 0x289   : > { %1621 = vrot.lane.b32.xlu1 %v6892_v54, %s6271_s30  ;;  %1619 = vrot.lane.b32.xlu0 %v6895_v55, %s6271_s30 }
 0x28d   : > { %1625 = vrot.lane.b32.xlu1 %v6906_v56, %s6271_s30  ;;  %1623 = vrot.lane.b32.xlu0 %v6909_v57, %s6271_s30 }
 0x291   : > { %1629 = vrot.lane.b32.xlu1 %v5297_v59, %s6271_s30  ;;  %1627 = vrot.lane.b32.xlu0 %v6924_v60, %s6271_s30 }
 0x295   : > { %1665 = vrot.lane.b32.xlu1 %v6758_v26, %s6272_s14  ;;  %1663 = vrot.lane.b32.xlu0 %v6747_v23, %s6272_s14  ;;  %v5360_v23 = vld [vmem:[%s6738_s26 + $0x23c] sm:$0xff] }
 0x299   : > { %1729 = vrot.lane.b32.xlu1 %v6817_v41, %s6273_s22  ;;  %1727 = vrot.lane.b32.xlu0 %v6820_v42, %s6273_s22  ;;  %v7109_v41 = vld [vmem:[%s6738_s26 + $0x264] sm:$0xff] }
 0x29d   : > { %1793 = vrot.lane.b32.xlu1 %v5297_v59, %s6274_s29  ;;  %1791 = vrot.lane.b32.xlu0 %v6924_v60, %s6274_s29 }
 0x2a1   : > { %1667 = vrot.lane.b32.xlu1 %v6768_v28, %s6272_s14  ;;  %1855 = vrot.lane.b32.xlu0 %v6788_v32, %s6275_s15  ;;  %v5361_v28 = vld [vmem:[%s6738_s26 + $0x244] sm:$0xff] }
 0x2a5   : > { %1919 = vrot.lane.b32.xlu1 %v6853_v49, %s6276_s18  ;;  %1857 = vrot.lane.b32.xlu0 %v6785_v31, %s6275_s15 }
 0x2a9   : > { %1731 = vrot.lane.b32.xlu1 %v6830_v44, %s6273_s22  ;;  %1669 = vrot.lane.b32.xlu0 %v6765_v27, %s6272_s14 }
 0x2ad   : > { %1733 = vrot.lane.b32.xlu1 %v6827_v43, %s6273_s22  ;;  %1921 = vrot.lane.b32.xlu0 %v6850_v48, %s6276_s18 }
 0x2b1   : > { %1797 = vrot.lane.b32.xlu1 %v7001_v9, %s6274_s29  ;;  %1795 = vrot.lane.b32.xlu0 %v7004_v10, %s6274_s29 }
 0x2b5   : > { %1671 = vrot.lane.b32.xlu1 %v6778_v30, %s6272_s14  ;;  %1859 = vrot.lane.b32.xlu0 %v6798_v34, %s6275_s15 }
 0x2b7   : > { %v7014_v11 = vpop.permute.xlu1 %1491  ;;  %v7016_v12 = vpop.permute.xlu0 %1487 }
 0x2b9   : > { %1923 = vrot.lane.b32.xlu1 %v6867_v51, %s6276_s18  ;;  %1861 = vrot.lane.b32.xlu0 %v6795_v33, %s6275_s15 }
 0x2bb   : > { %v7022_v13 = vpop.permute.xlu1 %1493  ;;  %v7024_v14 = vpop.permute.xlu0 %1489 }
 0x2bd   : > { %1735 = vrot.lane.b32.xlu1 %v6840_v46, %s6273_s22  ;;  %1673 = vrot.lane.b32.xlu0 %v6775_v29, %s6272_s14 }
 0x2bf   : > { %v7030_v15 = vpop.permute.xlu1 %1497  ;;  %v7032_v16 = vpop.permute.xlu0 %1495 }
 0x2c1   : > { %1737 = vrot.lane.b32.xlu1 %v6837_v45, %s6273_s22  ;;  %1925 = vrot.lane.b32.xlu0 %v6864_v50, %s6276_s18  ;;  %v7128_v45 = vld [vmem:[%s6738_s26 + $0x26c] sm:$0xff] }
 0x2c3   : > { %v7042_v19 = vpop.permute.xlu1 %1501  ;;  %v7044_v20 = vpop.permute.xlu0 %1499 }
 0x2c5   : > { %1801 = vrot.lane.b32.xlu1 %v7039_v17, %s6274_s29  ;;  %1799 = vrot.lane.b32.xlu0 %v5328_v18, %s6274_s29 }
 0x2c7   : > { %v7049_v21 = vpop.permute.xlu1 %1505  ;;  %v7051_v22 = vpop.permute.xlu0 %1503 }
 0x2c9   : > { %1675 = vrot.lane.b32.xlu1 %v6788_v32, %s6272_s14  ;;  %1863 = vrot.lane.b32.xlu0 %v6920_v58, %s6275_s15  ;;  %v5330_v32 = vld [vmem:[%s6738_s26 + $0x25e] sm:$0xff] }
 0x2cb   : > { %v7058_v24 = vpop.permute.xlu1 %1509  ;;  %v7060_v25 = vpop.permute.xlu0 %1507 }
 0x2cd   : > { %1927 = vrot.lane.b32.xlu1 %v5360_v23, %s6276_s18  ;;  %1865 = vrot.lane.b32.xlu0 %v6929_v61, %s6275_s15 }
 0x2cf   : > { %v7065_v26 = vpop.permute.xlu1 %1513  ;;  %v7067_v27 = vpop.permute.xlu0 %1511 }
 0x2d0   : > { %8952 = vst [vmem:[#allocation8_spill] sm:$0xff] %v7065_v26  ;;  %v7218_v26 = vld [vmem:[%s6738_s26 + $0x2b9] sm:$0xff] }
 0x2d1   : > { %1739 = vrot.lane.b32.xlu1 %v6853_v49, %s6273_s22  ;;  %1677 = vrot.lane.b32.xlu0 %v6785_v31, %s6272_s14  ;;  %v7090_v31 = vld [vmem:[%s6738_s26 + $0x266] sm:$0xff] }
 0x2d3   : > { %v7074_v29 = vpop.permute.xlu1 %1517  ;;  %v7076_v30 = vpop.permute.xlu0 %1515 }
 0x2d4   : > { %8953 = vst [vmem:[#allocation9_spill] sm:$0xff] %v7074_v29  ;;  %8954 = vst [vmem:[#allocation10_spill] sm:$0xff] %v7076_v30 }
 0x2d5   : > { %1741 = vrot.lane.b32.xlu1 %v6850_v48, %s6273_s22  ;;  %1929 = vrot.lane.b32.xlu0 %v5361_v28, %s6276_s18  ;;  %v7139_v48 = vld [vmem:[%s6738_s26 + $0x286] sm:$0xff] }
 0x2d7   : > { %v7082_v35 = vpop.permute.xlu1 %1553  ;;  %v7084_v36 = vpop.permute.xlu0 %1551 }
 0x2d9   : > { %1631 = vrot.lane.b32.xlu1 %v7004_v10, %s6271_s30  ;;  %1803 = vrot.lane.b32.xlu0 %v5330_v32, %s6274_s29 }
 0x2db   : > { %v7092_v37 = vpop.permute.xlu1 %1557  ;;  %v7094_v38 = vpop.permute.xlu0 %1555 }
 0x2dd   : > { %1867 = vrot.lane.b32.xlu1 %v6937_v62, %s6275_s15  ;;  %1805 = vrot.lane.b32.xlu0 %v7090_v31, %s6274_s29 }
 0x2df   : > { %v7100_v39 = vpop.permute.xlu1 %1561  ;;  %v7102_v40 = vpop.permute.xlu0 %1559 }
 0x2e1   : > { %1679 = vrot.lane.b32.xlu1 %v6798_v34, %s6272_s14  ;;  %1633 = vrot.lane.b32.xlu0 %v7001_v9, %s6271_s30 }
 0x2e3   : > { %v7111_v42 = vpop.permute.xlu1 %1565  ;;  %v7113_v43 = vpop.permute.xlu0 %1563 }
 0x2e5   : > { %1931 = vrot.lane.b32.xlu1 %v7109_v41, %s6276_s18  ;;  %1869 = vrot.lane.b32.xlu0 %v6942_v63, %s6275_s15 }
 0x2e7   : > { %v7119_v44 = vpop.permute.xlu1 %1569  ;;  %v7121_v34 = vpop.permute.xlu0 %1567 }
 0x2e9   : > { %1743 = vrot.lane.b32.xlu1 %v6867_v51, %s6273_s22  ;;  %1681 = vrot.lane.b32.xlu0 %v6795_v33, %s6272_s14  ;;  %v7149_v33 = vld [vmem:[%s6738_s26 + $0x28e] sm:$0xff] }
 0x2eb   : > { %v7130_v46 = vpop.permute.xlu1 %1573  ;;  %v7132_v47 = vpop.permute.xlu0 %1571 }
 0x2ed   : > { %1745 = vrot.lane.b32.xlu1 %v6864_v50, %s6273_s22  ;;  %1933 = vrot.lane.b32.xlu0 %v7128_v45, %s6276_s18 }
 0x2ef   : > { %v7141_v49 = vpop.permute.xlu1 %1577  ;;  %v7143_v51 = vpop.permute.xlu0 %1575 }
 0x2f0   : > { %8955 = vst [vmem:[#allocation11_spill] sm:$0xff] %v7141_v49  ;;  %8956 = vst [vmem:[#allocation12_spill] sm:$0xff] %v7143_v51 }
 0x2f1   : > { %1635 = vrot.lane.b32.xlu1 %v5328_v18, %s6271_s30  ;;  %1807 = vrot.lane.b32.xlu0 %v7139_v48, %s6274_s29 }
 0x2f3   : > { %v7151_v59 = vpop.permute.xlu1 %1581  ;;  %v7153_v50 = vpop.permute.xlu0 %1579 }
 0x2f4   : > { %8957 = vst [vmem:[#allocation13_spill] sm:$0xff] %v7151_v59  ;;  %8958 = vst [vmem:[#allocation14_spill] sm:$0xff] %v7153_v50  ;;  %v5334_v50 = vld [vmem:[%s6738_s26 + $0x2ae] sm:$0xff] }
 0x2f5   : > { %1871 = vrot.lane.b32.xlu1 %v6954_v1, %s6275_s15  ;;  %1809 = vrot.lane.b32.xlu0 %v7149_v33, %s6274_s29 }
 0x2f7   : > { %v7159_v0 = vpop.permute.xlu1 %1617  ;;  %v1616_v2 = vpop.permute.xlu0 %1615 }
 0x2f9   : > { %1683 = vrot.lane.b32.xlu1 %v6920_v58, %s6272_s14  ;;  %1637 = vrot.lane.b32.xlu0 %v7039_v17, %s6271_s30 }
 0x2fb   : > { %v7168_v5 = vpop.permute.xlu1 %1621  ;;  %v7170_v6 = vpop.permute.xlu0 %1619 }
 0x2fd   : > { %1935 = vrot.lane.b32.xlu1 %v7166_v3, %s6276_s18  ;;  %1873 = vrot.lane.b32.xlu0 %v6962_v4, %s6275_s15 }
 0x2ff   : > { %v7176_v7 = vpop.permute.xlu1 %1625  ;;  %v7178_v58 = vpop.permute.xlu0 %1623 }
 0x301   : > { %1747 = vrot.lane.b32.xlu1 %v5360_v23, %s6273_s22  ;;  %1685 = vrot.lane.b32.xlu0 %v6929_v61, %s6272_s14  ;;  %v7201_v61 = vld [vmem:[%s6738_s26 + $0x2b1] sm:$0xff] }
 0x302   : > { %8959 = vst [vmem:[#allocation15_spill] sm:$0xff] %v7201_v61  ;;  %v5335_v23 = vld [vmem:[%s6738_s26 + $0x2b6] sm:$0xff] }
 0x303   : > { %v7186_v17 = vpop.permute.xlu1 %1629  ;;  %v7188_v18 = vpop.permute.xlu0 %1627 }
 0x305   : > { %1749 = vrot.lane.b32.xlu1 %v5361_v28, %s6273_s22  ;;  %1937 = vrot.lane.b32.xlu0 %v7184_v8, %s6276_s18  ;;  %v5242_v28 = vld [vmem:[%s6738_s26 + $0xf6] sm:$0xff] }
 0x307   : > { %v7194_v59 = vpop.permute.xlu1 %1665  ;;  %v7196_v10 = vpop.permute.xlu0 %1663 }
 0x309   : > { %1639 = vrot.lane.b32.xlu1 %v5330_v32, %s6271_s30  ;;  %1811 = vrot.lane.b32.xlu0 %v5334_v50, %s6274_s29  ;;  %v1967_v32 = vsel %vm1122_vm6, %v5242_v28, %v7016_v12 }
 0x30a   : > { %v1984_v50 = vsel %vm1983_vm8, %v1967_v32, %v7084_v36  ;;  %v5243_v36 = vld [vmem:[%s6738_s26 + $0xfe] sm:$0xff] }
 0x30b   : > { %v1730_v30 = vpop.permute.xlu1 %1729  ;;  %v1728_v9 = vpop.permute.xlu0 %1727  ;;  %v2001_v51 = vsel %vm2000_vm9, %v1984_v50, %v1616_v2 }
 0x30c   : > { %v2018_v28 = vsel %vm2017_vm10, %v2001_v51, %v7196_v10 }
 0x30d   : > { %1875 = vrot.lane.b32.xlu1 %v7201_v61, %s6275_s15  ;;  %1813 = vrot.lane.b32.xlu0 %v5335_v23, %s6274_s29  ;;  %v5366_v23 = vld [vmem:[%s6738_s26 + $0x2b4] sm:$0xff]  ;;  %v2035_v60 = vsel %vm2034_vm11, %v2018_v28, %v1728_v9  ;;  %v1968_v9 = vsel %vm1122_vm6, %v5243_v36, %v7024_v14 }
 0x30e   : > { %v5336_v36 = vld [vmem:[%s6738_s26 + $0x2d6] sm:$0xff] }
 0x30f   : > { %v1794_v29 = vpop.permute.xlu1 %1793  ;;  %v1792_v49 = vpop.permute.xlu0 %1791 }
 0x311   : > { %1687 = vrot.lane.b32.xlu1 %v6937_v62, %s6272_s14  ;;  %1641 = vrot.lane.b32.xlu0 %v7090_v31, %s6271_s30  ;;  %v2052_v31 = vsel %vm2051_vm12, %v2035_v60, %v1792_v49  ;;  %v1985_v60 = vsel %vm1983_vm8, %v1968_v9, %v7082_v35  ;;  %v5367_v49 = vld [vmem:[%s6738_s26 + $0x2bc] sm:$0xff] }
 0x313   : > { %v7221_v61 = vpop.permute.xlu1 %1667  ;;  %v1856_v12 = vpop.permute.xlu0 %1855 }
 0x314   : > { %v2069_v2 = vsel %vm2068_vm13, %v2052_v31, %v1856_v12 }
 0x315   : > { %1939 = vrot.lane.b32.xlu1 %v5366_v23, %s6276_s18  ;;  %1877 = vrot.lane.b32.xlu0 %v7218_v26, %s6275_s15  ;;  %v2002_v23 = vsel %vm2000_vm9, %v1985_v60, %v7159_v0 }
 0x316   : > { %v2019_v14 = vsel %vm2017_vm10, %v2002_v23, %v7194_v59 }
 0x317   : > { %v1920_v32 = vpop.permute.xlu1 %1919  ;;  %v1858_v50 = vpop.permute.xlu0 %1857 }
 0x318   : > { %v2086_v51 = vsel %vm2085_vm14, %v2069_v2, %v1920_v32 }
 0x319   : > { %1751 = vrot.lane.b32.xlu1 %v7109_v41, %s6273_s22  ;;  %1689 = vrot.lane.b32.xlu0 %v6942_v63, %s6272_s14  ;;  %v2036_v41 = vsel %vm2034_vm11, %v2019_v14, %v1730_v30  ;;  %v5244_v30 = vld [vmem:[%s6738_s26 + $0x11e] sm:$0xff] }
 0x31a   : > { %5907 = vmatprep.mubr.msk.f32.mxu1 %vm2112_vm15, %v2086_v51  ;;  %v2053_v35 = vsel %vm2051_vm12, %v2036_v41, %v1794_v29  ;;  %v5337_v51 = vld [vmem:[%s6738_s26 + $0x2de] sm:$0xff]  ;;  %v1969_v9 = vsel %vm1122_vm6, %v5244_v30, %v7014_v11  ;;  %v5245_v11 = vld [vmem:[%s6738_s26 + $0x126] sm:$0xff] }
 0x31b   : > { %v1732_v12 = vpop.permute.xlu1 %1731  ;;  %v7245_v28 = vpop.permute.xlu0 %1669  ;;  %v2070_v0 = vsel %vm2068_vm13, %v2053_v35, %v1858_v50  ;;  %v5368_v35 = vld [vmem:[%s6738_s26 + $0x2dc] sm:$0xff] }
 0x31d   : > { %1753 = vrot.lane.b32.xlu1 %v7128_v45, %s6273_s22  ;;  %1941 = vrot.lane.b32.xlu0 %v5367_v49, %s6276_s18  ;;  %v7263_v45 = vld [vmem:[%s6738_s26 + $0x2d9] sm:$0xff] }
 0x31f   : > { %v1734_v31 = vpop.permute.xlu1 %1733  ;;  %v1922_v2 = vpop.permute.xlu0 %1921 }
 0x320   : > { %v2087_v32 = vsel %vm2085_vm14, %v2070_v0, %v1922_v2 }
 0x321   : > { %1643 = vrot.lane.b32.xlu1 %v7139_v48, %s6271_s30  ;;  %1815 = vrot.lane.b32.xlu0 %v5336_v36, %s6274_s29  ;;  %v1986_v48 = vsel %vm1983_vm8, %v1969_v9, %v7094_v38  ;;  %v7288_v36 = vld [vmem:[%s6738_s26 + $0x2e1] sm:$0xff] }
 0x322   : > { %5908 = vmatmul.mubr.msk.f32.vlgmr.msra.gmra.mrb[16].mxu1 %vm2112_vm15, %v2087_v32  ;;  %v2003_v60 = vsel %vm2000_vm9, %v1986_v48, %v7170_v6  ;;  %v5369_v48 = vld [vmem:[%s6738_s26 + $0x2e4] sm:$0xff] }
 0x323   : > { %v1798_v29 = vpop.permute.xlu1 %1797  ;;  %v1796_v50 = vpop.permute.xlu0 %1795  ;;  %v2020_v14 = vsel %vm2017_vm10, %v2003_v60, %v7221_v61 }
 0x324   : > { %v2037_v41 = vsel %vm2034_vm11, %v2020_v14, %v1732_v12  ;;  %v1970_v12 = vsel %vm1122_vm6, %v5245_v11, %v7022_v13 }
 0x325   : > { %1879 = vrot.lane.b32.xlu1 %v7263_v45, %s6275_s15  ;;  %1817 = vrot.lane.b32.xlu0 %v5337_v51, %s6274_s29  ;;  %v2054_v38 = vsel %vm2051_vm12, %v2037_v41, %v1796_v50  ;;  %v5338_v41 = vld [vmem:[%s6738_s26 + $0x2fe] sm:$0xff] }
 0x327   : > { %v7275_v49 = vpop.permute.xlu1 %1671  ;;  %v1860_v23 = vpop.permute.xlu0 %1859 }
 0x328   : > { %v2071_v6 = vsel %vm2068_vm13, %v2054_v38, %v1860_v23 }
 0x329   : > { %1691 = vrot.lane.b32.xlu1 %v6954_v1, %s6272_s14  ;;  %1645 = vrot.lane.b32.xlu0 %v7149_v33, %s6271_s30  ;;  %v1987_v33 = vsel %vm1983_vm8, %v1970_v12, %v7092_v37 }
 0x32a   : > { %v2004_v30 = vsel %vm2000_vm9, %v1987_v33, %v7168_v5 }
 0x32b   : > { %v1924_v0 = vpop.permute.xlu1 %1923  ;;  %v1862_v2 = vpop.permute.xlu0 %1861  ;;  %v2021_v13 = vsel %vm2017_vm10, %v2004_v30, %v7245_v28  ;;  %v5370_v30 = vld [vmem:[%s6738_s26 + $0x304] sm:$0xff] }
 0x32c   : > { %v2088_v32 = vsel %vm2085_vm14, %v2071_v6, %v1924_v0  ;;  %v2038_v9 = vsel %vm2034_vm11, %v2021_v13, %v1734_v31  ;;  %v5339_v31 = vld [vmem:[%s6738_s26 + $0x306] sm:$0xff] }
 0x32d   : > { %1943 = vrot.lane.b32.xlu1 %v5368_v35, %s6276_s18  ;;  %1881 = vrot.lane.b32.xlu0 %v7288_v36, %s6275_s15  ;;  %v2055_v37 = vsel %vm2051_vm12, %v2038_v9, %v1798_v29  ;;  %v7329_v35 = vld [vmem:[%s6738_s26 + $0x309] sm:$0xff]  ;;  %v7332_v6 = vld [vmem:[%s6738_s26 + $0x301] sm:$0xff] }
 0x32e   : > { %5910 = vmatprep.mubr.msk.f32.mxu1 %vm2112_vm15, %v2088_v32  ;;  %v2072_v5 = vsel %vm2068_vm13, %v2055_v37, %v1862_v2 }
 0x32f   : > { %v1736_v51 = vpop.permute.xlu1 %1735  ;;  %v7302_v50 = vpop.permute.xlu0 %1673 }
 0x331   : > { %1755 = vrot.lane.b32.xlu1 %v7166_v3, %s6273_s22  ;;  %1693 = vrot.lane.b32.xlu0 %v6962_v4, %s6272_s14  ;;  %v5246_v3 = vld [vmem:[%s6738_s26 + $0x146] sm:$0xff] }
 0x332   : > { %v1971_v38 = vsel %vm1122_vm6, %v5246_v3, %v7032_v16 }
 0x333   : > { %v1738_v60 = vpop.permute.xlu1 %1737  ;;  %v1926_v23 = vpop.permute.xlu0 %1925 }
 0x334   : > { %v2089_v14 = vsel %vm2085_vm14, %v2072_v5, %v1926_v23  ;;  %v5441_v23 = vld [vmem:[%s6738_s26 + $0x89] sm:$0xff] }
 0x335   : > { %1757 = vrot.lane.b32.xlu1 %v7184_v8, %s6273_s22  ;;  %1945 = vrot.lane.b32.xlu0 %v5369_v48, %s6276_s18  ;;  %v1988_v8 = vsel %vm1983_vm8, %v1971_v38, %v7102_v40  ;;  %v5247_v40 = vld [vmem:[%s6738_s26 + $0x14e] sm:$0xff] }
 0x336   : > { %5911 = vmatmul.mubr.msk.f32.gmra.mrb[18].mxu1 %vm2112_vm15, %v2089_v14  ;;  %v2005_v0 = vsel %vm2000_vm9, %v1988_v8, %v7178_v58  ;;  %v5371_v58 = vld [vmem:[%s6738_s26 + $0x30c] sm:$0xff]  ;;  %v5440_v14 = vld [vmem:[%s6738_s26 + $0x81] sm:$0xff] }
 0x337   : > { %v1802_v29 = vpop.permute.xlu1 %1801  ;;  %v1800_v11 = vpop.permute.xlu0 %1799  ;;  %v2022_v16 = vsel %vm2017_vm10, %v2005_v0, %v7275_v49  ;;  %v5457_v38 = vld [vmem:[%s6738_s26 + $0x8f] sm:$0xff] }
 0x338   : > { %v2039_v12 = vsel %vm2034_vm11, %v2022_v16, %v1736_v51  ;;  %v1972_v51 = vsel %vm1122_vm6, %v5247_v40, %v7030_v15 }
 0x339   : > { %1821 = vrot.lane.b32.xlu1 %v5339_v31, %s6274_s29  ;;  %1819 = vrot.lane.b32.xlu0 %v5338_v41, %s6274_s29  ;;  %v2056_v33 = vsel %vm2051_vm12, %v2039_v12, %v1800_v11  ;;  %v1989_v5 = vsel %vm1983_vm8, %v1972_v51, %v7100_v39  ;;  %v5443_v51 = vld [vmem:[%s6738_s26 + $0xb1] sm:$0xff] }
 0x33a   : > { %v2006_v3 = vsel %vm2000_vm9, %v1989_v5, %v7176_v7  ;;  %v5456_v7 = vld [vmem:[%s6738_s26 + $0x87] sm:$0xff] }
 0x33b   : > { %v7336_v2 = vpop.permute.xlu1 %1675  ;;  %v1864_v32 = vpop.permute.xlu0 %1863  ;;  %v2023_v15 = vsel %vm2017_vm10, %v2006_v3, %v7302_v50  ;;  %v7413_v3 = vld [vmem:[%s6738_s26 + $0x25b] sm:$0xff] }
 0x33c   : > { %v2073_v13 = vsel %vm2068_vm13, %v2056_v33, %v1864_v32  ;;  %v2040_v11 = vsel %vm2034_vm11, %v2023_v15, %v1738_v60  ;;  %v5473_v60 = vld [vmem:[%s6738_s26 + $0x173] sm:$0xff]  ;;  %v7416_v15 = vld [vmem:[%s6738_s26 + $0x17f] sm:$0xff] }
 0x33d   : > { %1885 = vrot.lane.b32.xlu1 %v7329_v35, %s6275_s15  ;;  %1883 = vrot.lane.b32.xlu0 %v7332_v6, %s6275_s15  ;;  %v2057_v39 = vsel %vm2051_vm12, %v2040_v11, %v1802_v29  ;;  %v5472_v29 = vld [vmem:[%s6738_s26 + $0x16b] sm:$0xff]  ;;  %v7384_v33 = vld [vmem:[%s6738_s26 + $0x177] sm:$0xff] }
 0x33f   : > { %v1928_v9 = vpop.permute.xlu1 %1927  ;;  %v1866_v37 = vpop.permute.xlu0 %1865 }
 0x340   : > { %v2090_v48 = vsel %vm2085_vm14, %v2073_v13, %v1928_v9  ;;  %v2074_v8 = vsel %vm2068_vm13, %v2057_v39, %v1866_v37  ;;  %v1973_v9 = vsel %vm1122_vm6, %v6881_v53, %v7044_v20 }
 0x341   : > { %1949 = vrot.lane.b32.xlu1 %v5371_v58, %s6276_s18  ;;  %1947 = vrot.lane.b32.xlu0 %v5370_v30, %s6276_s18  ;;  %v5442_v58 = vld [vmem:[%s6738_s26 + $0xa9] sm:$0xff]  ;;  %v1990_v37 = vsel %vm1983_vm8, %v1973_v9, %v7113_v43  ;;  %v3422_v43 = vld [vmem:[%s8934_s3] sm:$0xff] }
 0x342   : > { %5913 = vmatprep.mubr.msk.f32.mxu1 %vm2112_vm15, %v2090_v48  ;;  %v5458_v48 = vld [vmem:[%s6738_s26 + $0xaf] sm:$0xff]  ;;  %v2007_v5 = vsel %vm2000_vm9, %v1990_v37, %v7188_v18 }
 0x343   : > { %v1740_v31 = vpop.permute.xlu1 %1739  ;;  %v7362_v41 = vpop.permute.xlu0 %1677  ;;  %v2024_v53 = vsel %vm2017_vm10, %v2007_v5, %v7336_v2 }
 0x344   : > { %v2041_v20 = vsel %vm2034_vm11, %v2024_v53, %v1740_v31  ;;  %v3423_v31 = vld [vmem:[%s8934_s3 + $0x8] sm:$0xff] }
 0x345   : > { %2864 = vrot.lane.b32.xlu1 %v5441_v23, %s6269_s27  ;;  %2862 = vrot.lane.b32.xlu0 %v5440_v14, %s6269_s27 }
 0x347   : > { %v1742_v0 = vpop.permute.xlu1 %1741  ;;  %v1930_v32 = vpop.permute.xlu0 %1929 }
 0x348   : > { %v2091_v16 = vsel %vm2085_vm14, %v2074_v8, %v1930_v32  ;;  %v1974_v32 = vsel %vm1122_vm6, %v6878_v52, %v7042_v19  ;;  %v3425_v52 = vld [vmem:[%s8934_s3 + $0x18] sm:$0xff] }
 0x349   : > { %2928 = vrot.lane.b32.xlu1 %v5457_v38, %s6270_s17  ;;  %2926 = vrot.lane.b32.xlu0 %v5456_v7, %s6270_s17  ;;  %v6111_v7 = vpack.c.bf16 %v3423_v31, %v3422_v43  ;;  %v7471_v31 = vpop.f32.mrb[0].mxu1 }
 0x34a   : > { %5914 = vmatmul.mubr.msk.f32.gmra.mrb[20].mxu1 %vm2112_vm15, %v2091_v16  ;;  %v5474_v16 = vld [vmem:[%s6738_s26 + $0x193] sm:$0xff] }
 0x34b   : > { %v7379_v12 = vpop.permute.xlu1 %1631  ;;  %v1804_v40 = vpop.permute.xlu0 %1803  ;;  %6112 = vmatprep.subr.bf16.mxu1 %v6111_v7 }
 0x34c   : > { %v2058_v18 = vsel %vm2051_vm12, %v2041_v20, %v1804_v40  ;;  %v3424_v40 = vld [vmem:[%s8934_s3 + $0x10] sm:$0xff]  ;;  %6114 = vmatpush3.bf16.msra.mxu1 %v6111_v7 }
 0x34d   : > { %2992 = vrot.lane.b32.xlu1 %v5473_v60, %s6271_s30  ;;  %2990 = vrot.lane.b32.xlu0 %v5472_v29, %s6271_s30  ;;  %v1991_v60 = vsel %vm1983_vm8, %v1974_v32, %v7111_v42  ;;  %v5459_v29 = vld [vmem:[%s6738_s26 + $0xb7] sm:$0xff]  ;;  %v6115_v42 = vpack.c.bf16 %v3425_v52, %v3424_v40  ;;  %v7500_v40 = vld [vmem:[%s6738_s26 + $0x19f] sm:$0xff] }
 0x34e   : > { %v2008_v19 = vsel %vm2000_vm9, %v1991_v60, %v7186_v17 }
 0x34f   : > { %v1868_v30 = vpop.permute.xlu1 %1867  ;;  %v1806_v13 = vpop.permute.xlu0 %1805  ;;  %v2025_v9 = vsel %vm2017_vm10, %v2008_v19, %v7362_v41  ;;  %6116 = vmatprep.subr.bf16.mxu1 %v6115_v42 }
 0x350   : > { %v2075_v11 = vsel %vm2068_vm13, %v2058_v18, %v1868_v30  ;;  %v2042_v37 = vsel %vm2034_vm11, %v2025_v9, %v1742_v0  ;;  %6118 = vmatpush3.bf16.msra.mxu1 %v6115_v42  ;;  %v3426_v0 = vld [vmem:[%s8934_s3 + $0x20] sm:$0xf] }
 0x351   : > { %3054 = vrot.lane.b32.xlu1 %v7384_v33, %s6273_s22  ;;  %2866 = vrot.lane.b32.xlu0 %v5442_v58, %s6269_s27 }
 0x352   : > { %5991 = vmatprep.subr.msk.mxu1 %vm1171_vm7, %v3426_v0 }
 0x353   : > { %v7399_v23 = vpop.permute.xlu1 %1679  ;;  %v7401_v14 = vpop.permute.xlu0 %1633 }
 0x354   : > { %5992 = vmatpush3.msk.msra.mxu1 %vm1171_vm7, %v3426_v0 }
 0x355   : > { %2930 = vrot.lane.b32.xlu1 %v5458_v48, %s6270_s17  ;;  %2868 = vrot.lane.b32.xlu0 %v5443_v51, %s6269_s27  ;;  %v2059_v48 = vsel %vm2051_vm12, %v2042_v37, %v1806_v13  ;;  %v7452_v51 = vld [vmem:[%s6738_s26 + $0x263] sm:$0xff]  ;;  %v5475_v13 = vld [vmem:[%s6738_s26 + $0x19b] sm:$0xff] }
 0x357   : > { %v1932_v39 = vpop.permute.xlu1 %1931  ;;  %v1870_v38 = vpop.permute.xlu0 %1869 }
 0x358   : > { %v2092_v8 = vsel %vm2085_vm14, %v2075_v11, %v1932_v39  ;;  %v2076_v17 = vsel %vm2068_vm13, %v2059_v48, %v1870_v38  ;;  %v5444_v11 = vld [vmem:[%s6738_s26 + $0xd1] sm:$0xff]  ;;  %v7480_v39 = vld [vmem:[%s6738_s26 + $0x267] sm:$0xff] }
 0x359   : > { %3118 = vrot.lane.b32.xlu1 %v7413_v3, %s6274_s29  ;;  %3056 = vrot.lane.b32.xlu0 %v7416_v15, %s6273_s22  ;;  %v5460_v48 = vld [vmem:[%s6738_s26 + $0xd7] sm:$0xff] }
 0x35a   : > { %5916 = vmatprep.mubr.msk.f32.mxu1 %vm2112_vm15, %v2092_v8 }
 0x35b   : > { %v1744_v58 = vpop.permute.xlu1 %1743  ;;  %v7443_v30 = vpop.permute.xlu0 %1681 }
 0x35d   : > { %2994 = vrot.lane.b32.xlu1 %v5474_v16, %s6271_s30  ;;  %2932 = vrot.lane.b32.xlu0 %v5459_v29, %s6270_s17  ;;  %v1975_v16 = vsel %vm1122_vm6, %v6895_v55, %v7051_v22  ;;  %v7497_v29 = vld [vmem:[%s6738_s26 + $0x26f] sm:$0xff] }
 0x35e   : > { %v1992_v60 = vsel %vm1983_vm8, %v1975_v16, %v7121_v34  ;;  %v1976_v16 = vsel %vm1122_vm6, %v6892_v54, %v7049_v21 }
 0x35f   : > { %v7455_v5 = vpop.permute.xlu1 %1745  ;;  %v1934_v53 = vpop.permute.xlu0 %1933  ;;  %v2009_v55 = vsel %vm2000_vm9, %v1992_v60, %v7379_v12  ;;  %v7541_v60 = vld [vmem:[%s6738_s26 + $0x283] sm:$0xff] }
 0x360   : > { %v2093_v20 = vsel %vm2085_vm14, %v2076_v17, %v1934_v53  ;;  %v2026_v42 = vsel %vm2017_vm10, %v2009_v55, %v7399_v23  ;;  %v5445_v17 = vld [vmem:[%s6738_s26 + $0xd9] sm:$0xff]  ;;  %v7544_v55 = vld [vmem:[%s6738_s26 + $0x1a7] sm:$0xff] }
 0x361   : > { %3182 = vrot.lane.b32.xlu1 %v6937_v62, %s6275_s15  ;;  %3120 = vrot.lane.b32.xlu0 %v7452_v51, %s6274_s29  ;;  %v7476_v62 = vpop.f32.mrb[1].mxu1  ;;  %v2043_v34 = vsel %vm2034_vm11, %v2026_v42, %v1744_v58 }
 0x362   : > { %5917 = vmatmul.mubr.msk.f32.gmra.mrb[22].mxu1 %vm2112_vm15, %v2093_v20  ;;  %v7482_v38 = vpop.f32.mrb[2].mxu1 }
 0x363   : > { %v7468_v43 = vpop.permute.xlu1 %1635  ;;  %v1808_v18 = vpop.permute.xlu0 %1807 }
 0x364   : > { %v7484_v32 = vpop.f32.mrb[3].mxu1  ;;  %v2060_v12 = vsel %vm2051_vm12, %v2043_v34, %v1808_v18 }
 0x365   : > { %3184 = vrot.lane.b32.xlu1 %v6942_v63, %s6275_s15  ;;  %2996 = vrot.lane.b32.xlu0 %v5475_v13, %s6271_s30  ;;  %v7492_v63 = vpop.f32.mrb[4].mxu1 }
 0x366   : > { %v7502_v52 = vpop.f32.mrb[5].mxu1 }
 0x367   : > { %v1872_v7 = vpop.permute.xlu1 %1871  ;;  %v1810_v8 = vpop.permute.xlu0 %1809 }
 0x368   : > { %v7512_v9 = vpop.f32.mrb[6].mxu1  ;;  %v2077_v0 = vsel %vm2068_vm13, %v2060_v12, %v1872_v7  ;;  %v1993_v7 = vsel %vm1983_vm8, %v1976_v16, %v7119_v44 }
 0x369   : > { %2870 = vrot.lane.b32.xlu1 %v5444_v11, %s6269_s27  ;;  %3246 = vrot.lane.b32.xlu0 %v7480_v39, %s6276_s18  ;;  %v7519_v37 = vpop.f32.mrb[7].mxu1  ;;  %v2010_v54 = vsel %vm2000_vm9, %v1993_v7, %v7401_v14 }
 0x36a   : > { %v7524_v53 = vpop.f32.mrb[8].mxu1  ;;  %v2027_v12 = vsel %vm2017_vm10, %v2010_v54, %v7443_v30 }
 0x36b   : > { %v7506_v22 = vpop.permute.xlu1 %1683  ;;  %v7508_v19 = vpop.permute.xlu0 %1637  ;;  %8960 = vst [vmem:[#allocation16_spill] sm:$0xff] %v7524_v53  ;;  %v2044_v44 = vsel %vm2034_vm11, %v2027_v12, %v7455_v5 }
 0x36c   : > { %v7528_v11 = vpop.f32.mrb[9].mxu1  ;;  %v2061_v14 = vsel %vm2051_vm12, %v2044_v44, %v1810_v8  ;;  %v2325_v8 = vld [vmem:[%s8937_s6 + $0x8] sm:$0xff] }
 0x36d   : > { %3248 = vrot.lane.b32.xlu1 %v7497_v29, %s6276_s18  ;;  %3058 = vrot.lane.b32.xlu0 %v7500_v40, %s6273_s22  ;;  %v7535_v18 = vpop.f32.mrb[10].mxu1 }
 0x36e   : > { %8961 = vst [vmem:[#allocation17_spill] sm:$0xff] %v7535_v18  ;;  %v7546_v42 = vpop.f32.mrb[11].mxu1  ;;  %5931 = vmatprep.subr.mxu0 %v2325_v8 }
 0x36f   : > { %v1936_v20 = vpop.permute.xlu1 %1935  ;;  %v1874_v58 = vpop.permute.xlu0 %1873  ;;  %8962 = vst [vmem:[#allocation18_spill] sm:$0xff] %v7546_v42  ;;  %5932 = vmatpush3.msra.mxu0 %v2325_v8  ;;  %v7599_v8 = vld [vmem:[%s6738_s26 + $0x28f] sm:$0xff]  ;;  %v5546_v42 = vld [vmem:[%s6738_s26 + $0x307] sm:$0xff] }
 0x370   : > { %v2094_v13 = vsel %vm2085_vm14, %v2077_v0, %v1936_v20  ;;  %v5476_v0 = vld [vmem:[%s6738_s26 + $0x1bb] sm:$0xff]  ;;  %v2078_v16 = vsel %vm2068_vm13, %v2061_v14, %v1874_v58  ;;  %v7580_v58 = vld [vmem:[%s6738_s26 + $0x28b] sm:$0xff] }
 0x371   : > { %2934 = vrot.lane.b32.xlu1 %v5460_v48, %s6270_s17  ;;  %2872 = vrot.lane.b32.xlu0 %v5445_v17, %s6269_s27  ;;  %v7554_v48 = vpop.f32.mrb[12].mxu1  ;;  %v5461_v20 = vld [vmem:[%s6738_s26 + $0xdf] sm:$0xff] }
 0x372   : > { %5919 = vmatprep.mubr.msk.f32.mxu1 %vm2112_vm15, %v2094_v13  ;;  %8963 = vst [vmem:[#allocation19_spill] sm:$0xff] %v7554_v48  ;;  %v7562_v17 = vpop.f32.mrb[13].mxu1 }
 0x373   : > { %v1748_v21 = vpop.permute.xlu1 %1747  ;;  %v7550_v34 = vpop.permute.xlu0 %1685  ;;  %8964 = vst [vmem:[#allocation20_spill] sm:$0xff] %v7562_v17  ;;  %v8970_v17 = vld [vmem:[#allocation8_spill] sm:$0xff] }
 0x374   : > { %v7567_v13 = vpop.f32.mrb[14].mxu1 }
 0x375   : > { %3122 = vrot.lane.b32.xlu1 %v7541_v60, %s6274_s29  ;;  %3060 = vrot.lane.b32.xlu0 %v7544_v55, %s6273_s22  ;;  %8965 = vst [vmem:[#allocation21_spill] sm:$0xff] %v7567_v13  ;;  %v7571_v12 = vpop.f32.mrb[15].mxu1 }
 0x376   : > { %8966 = vst [vmem:[#allocation22_spill] sm:$0xff] %v7571_v12 }
 0x377   : > { %v1750_v7 = vpop.permute.xlu1 %1749  ;;  %v1938_v5 = vpop.permute.xlu0 %1937 }
 0x378   : > { %v2095_v54 = vsel %vm2085_vm14, %v2078_v16, %v1938_v5  ;;  %v1977_v5 = vsel %vm1122_vm6, %v6909_v57, %v7060_v25 }
 0x379   : > { %2998 = vrot.lane.b32.xlu1 %v5476_v0, %s6271_s30  ;;  %2936 = vrot.lane.b32.xlu0 %v5461_v20, %s6270_s17  ;;  %v5477_v0 = vld [vmem:[%s6738_s26 + $0x1c3] sm:$0xff] }
 0x37a   : > { %5920 = vmatmul.mubr.msk.f32.gmra.mrb[24].mxu1 %vm2112_vm15, %v2095_v54  ;;  %v5446_v54 = vld [vmem:[%s6738_s26 + $0xf9] sm:$0xff] }
 0x37b   : > { %v7582_v44 = vpop.permute.xlu1 %1639  ;;  %v1812_v14 = vpop.permute.xlu0 %1811 }
 0x37d   : > { %3186 = vrot.lane.b32.xlu1 %v6954_v1, %s6275_s15  ;;  %3124 = vrot.lane.b32.xlu0 %v7580_v58, %s6274_s29  ;;  %v1994_v1 = vsel %vm1983_vm8, %v1977_v5, %v7132_v47  ;;  %v7615_v47 = vld [vmem:[%s6738_s26 + $0x297] sm:$0xff] }
 0x37e   : > { %v2011_v13 = vsel %vm2000_vm9, %v1994_v1, %v7468_v43  ;;  %v5492_v43 = vld [vmem:[%s6738_s26 + $0x1c7] sm:$0xff] }
 0x37f   : > { %v1876_v20 = vpop.permute.xlu1 %1875  ;;  %v1814_v16 = vpop.permute.xlu0 %1813  ;;  %v2028_v57 = vsel %vm2017_vm10, %v2011_v13, %v7506_v22 }
 0x381   : > { %3188 = vrot.lane.b32.xlu1 %v6962_v4, %s6275_s15  ;;  %3000 = vrot.lane.b32.xlu0 %v5477_v0, %s6271_s30  ;;  %v2045_v4 = vsel %vm2034_vm11, %v2028_v57, %v1748_v21  ;;  %v1978_v21 = vsel %vm1122_vm6, %v6906_v56, %v7058_v24 }
 0x382   : > { %v2062_v25 = vsel %vm2051_vm12, %v2045_v4, %v1812_v14  ;;  %v1995_v14 = vsel %vm1983_vm8, %v1978_v21, %v7130_v46 }
 0x383   : > { %v7603_v12 = vpop.permute.xlu1 %1687  ;;  %v7605_v48 = vpop.permute.xlu0 %1641  ;;  %v2079_v0 = vsel %vm2068_vm13, %v2062_v25, %v1876_v20  ;;  %v5462_v20 = vld [vmem:[%s6738_s26 + $0xff] sm:$0xff]  ;;  %v2012_v57 = vsel %vm2000_vm9, %v1995_v14, %v7508_v19  ;;  %v5463_v14 = vld [vmem:[%s6738_s26 + $0x107] sm:$0xff] }
 0x384   : > { %v2029_v56 = vsel %vm2017_vm10, %v2012_v57, %v7550_v34 }
 0x385   : > { %2874 = vrot.lane.b32.xlu1 %v5446_v54, %s6269_s27  ;;  %3250 = vrot.lane.b32.xlu0 %v7599_v8, %s6276_s18  ;;  %v5447_v54 = vld [vmem:[%s6738_s26 + $0x101] sm:$0xff]  ;;  %v2046_v24 = vsel %vm2034_vm11, %v2029_v56, %v1750_v7 }
 0x386   : > { %v2063_v46 = vsel %vm2051_vm12, %v2046_v24, %v1814_v16  ;;  %v5478_v7 = vld [vmem:[%s6738_s26 + $0x1e3] sm:$0xff] }
 0x387   : > { %v1940_v5 = vpop.permute.xlu1 %1939  ;;  %v1878_v1 = vpop.permute.xlu0 %1877  ;;  %v8967_v56 = vld [vmem:[#allocation5_spill] sm:$0xff] }
 0x388   : > { %v2096_v13 = vsel %vm2085_vm14, %v2079_v0, %v1940_v5  ;;  %v5493_v0 = vld [vmem:[%s6738_s26 + $0x1cf] sm:$0xff]  ;;  %v2080_v19 = vsel %vm2068_vm13, %v2063_v46, %v1878_v1  ;;  %v1979_v24 = vsel %vm1122_vm6, %v8967_v56, %v7067_v27  ;;  %v5448_v56 = vld [vmem:[%s6738_s26 + $0x121] sm:$0xff] }
 0x389   : > { %3252 = vrot.lane.b32.xlu1 %v7615_v47, %s6276_s18  ;;  %3062 = vrot.lane.b32.xlu0 %v5492_v43, %s6273_s22  ;;  %v5510_v43 = vld [vmem:[%s6738_s26 + $0x2ab] sm:$0xff]  ;;  %v5511_v1 = vld [vmem:[%s6738_s26 + $0x2b3] sm:$0xff] }
 0x38a   : > { %5922 = vmatprep.mubr.msk.f32.mxu1 %vm2112_vm15, %v2096_v13  ;;  %v8968_v46 = vld [vmem:[#allocation15_spill] sm:$0xff] }
 0x38b   : > { %v1752_v4 = vpop.permute.xlu1 %1751  ;;  %v7633_v25 = vpop.permute.xlu0 %1689 }
 0x38d   : > { %2938 = vrot.lane.b32.xlu1 %v5462_v20, %s6270_s17  ;;  %2876 = vrot.lane.b32.xlu0 %v5447_v54, %s6269_s27 }
 0x38f   : > { %v1754_v5 = vpop.permute.xlu1 %1753  ;;  %v1942_v13 = vpop.permute.xlu0 %1941 }
 0x390   : > { %v2097_v21 = vsel %vm2085_vm14, %v2080_v19, %v1942_v13  ;;  %v5479_v19 = vld [vmem:[%s6738_s26 + $0x1eb] sm:$0xff] }
 0x391   : > { %3126 = vrot.lane.b32.xlu1 %v5510_v43, %s6274_s29  ;;  %3064 = vrot.lane.b32.xlu0 %v5493_v0, %s6273_s22  ;;  %v8969_v43 = vld [vmem:[#allocation12_spill] sm:$0xff] }
 0x392   : > { %5923 = vmatmul.mubr.msk.f32.gmra.mrb[26].mxu1 %vm2112_vm15, %v2097_v21  ;;  %v1996_v0 = vsel %vm1983_vm8, %v1979_v24, %v8969_v43  ;;  %v5542_v24 = vld [vmem:[%s6738_s26 + $0x2b7] sm:$0xff] }
 0x393   : > { %v7650_v20 = vpop.permute.xlu1 %1643  ;;  %v1816_v16 = vpop.permute.xlu0 %1815  ;;  %v2013_v13 = vsel %vm2000_vm9, %v1996_v0, %v7582_v44 }
 0x395   : > { %3002 = vrot.lane.b32.xlu1 %v5478_v7, %s6271_s30  ;;  %2940 = vrot.lane.b32.xlu0 %v5463_v14, %s6270_s17  ;;  %v2030_v14 = vsel %vm2017_vm10, %v2013_v13, %v7603_v12  ;;  %v6226_v13 = vld [vmem:[%s6738_s26 + $0x1ee] sm:$0xff] }
 0x396   : > { %v2047_v27 = vsel %vm2034_vm11, %v2030_v14, %v1752_v4  ;;  %v1980_v4 = vsel %vm1122_vm6, %v6226_v13, %v8970_v17 }
 0x397   : > { %v1880_v54 = vpop.permute.xlu1 %1879  ;;  %v1818_v57 = vpop.permute.xlu0 %1817 }
 0x399   : > { %3190 = vrot.lane.b32.xlu1 %v8968_v46, %s6275_s15  ;;  %3128 = vrot.lane.b32.xlu0 %v5511_v1, %s6274_s29  ;;  %v2064_v1 = vsel %vm2051_vm12, %v2047_v27, %v1816_v16 }
 0x39a   : > { %v2081_v44 = vsel %vm2068_vm13, %v2064_v1, %v1880_v54  ;;  %v5543_v54 = vld [vmem:[%s6738_s26 + $0x2bf] sm:$0xff] }
 0x39b   : > { %v7666_v21 = vpop.permute.xlu1 %1691  ;;  %v1646_v7 = vpop.permute.xlu0 %1645 }
 0x39d   : > { %3192 = vrot.lane.b32.xlu1 %v7218_v26, %s6275_s15  ;;  %3004 = vrot.lane.b32.xlu0 %v5479_v19, %s6271_s30  ;;  %v8971_v26 = vld [vmem:[#allocation11_spill] sm:$0xff] }
 0x39e   : > { %v1997_v16 = vsel %vm1983_vm8, %v1980_v4, %v8971_v26  ;;  %v5494_v19 = vld [vmem:[%s6738_s26 + $0x1ef] sm:$0xff]  ;;  %v5495_v26 = vld [vmem:[%s6738_s26 + $0x1f7] sm:$0xff] }
 0x39f   : > { %v1944_v46 = vpop.permute.xlu1 %1943  ;;  %v1882_v43 = vpop.permute.xlu0 %1881  ;;  %v2014_v14 = vsel %vm2000_vm9, %v1997_v16, %v7605_v48 }
 0x3a0   : > { %v2098_v0 = vsel %vm2085_vm14, %v2081_v44, %v1944_v46  ;;  %v2031_v17 = vsel %vm2017_vm10, %v2014_v14, %v7633_v25  ;;  %v5464_v44 = vld [vmem:[%s6738_s26 + $0x127] sm:$0xff] }
 0x3a1   : > { %2878 = vrot.lane.b32.xlu1 %v5448_v56, %s6269_s27  ;;  %3254 = vrot.lane.b32.xlu0 %v5542_v24, %s6276_s18  ;;  %v2048_v56 = vsel %vm2034_vm11, %v2031_v17, %v1754_v5  ;;  %v5449_v46 = vld [vmem:[%s6738_s26 + $0x129] sm:$0xff]  ;;  %v5512_v5 = vld [vmem:[%s6738_s26 + $0x2d3] sm:$0xff] }
 0x3a2   : > { %5925 = vmatprep.mubr.msk.f32.mxu1 %vm2112_vm15, %v2098_v0  ;;  %v2065_v24 = vsel %vm2051_vm12, %v2048_v56, %v1818_v57  ;;  %v8974_v14 = vld [vmem:[#allocation10_spill] sm:$0xff]  ;;  %v8975_v17 = vld [vmem:[#allocation7_spill] sm:$0xff] }
 0x3a3   : > { %v1756_v27 = vpop.permute.xlu1 %1755  ;;  %v7691_v1 = vpop.permute.xlu0 %1693  ;;  %v2082_v48 = vsel %vm2068_vm13, %v2065_v24, %v1882_v43  ;;  %v1981_v56 = vsel %vm1122_vm6, %v8975_v17, %v8974_v14  ;;  %v8976_v24 = vld [vmem:[#allocation13_spill] sm:$0xff] }
 0x3a5   : > { %3256 = vrot.lane.b32.xlu1 %v5543_v54, %s6276_s18  ;;  %3066 = vrot.lane.b32.xlu0 %v5494_v19, %s6273_s22  ;;  %v8972_v54 = vld [vmem:[#allocation9_spill] sm:$0xff]  ;;  %v8973_v19 = vld [vmem:[#allocation6_spill] sm:$0xff] }
 0x3a6   : > { %v1982_v43 = vsel %vm1122_vm6, %v8973_v19, %v8972_v54 }
 0x3a7   : > { %v1758_v0 = vpop.permute.xlu1 %1757  ;;  %v1946_v13 = vpop.permute.xlu0 %1945 }
 0x3a8   : > { %v2099_v4 = vsel %vm2085_vm14, %v2082_v48, %v1946_v13  ;;  %v5480_v13 = vld [vmem:[%s6738_s26 + $0x20b] sm:$0xff] }
 0x3a9   : > { %2942 = vrot.lane.b32.xlu1 %v5464_v44, %s6270_s17  ;;  %2880 = vrot.lane.b32.xlu0 %v5449_v46, %s6269_s27  ;;  %v1999_v44 = vsel %vm1983_vm8, %v1982_v43, %v8976_v24  ;;  %v8977_v46 = vld [vmem:[#allocation14_spill] sm:$0xff] }
 0x3aa   : > { %5926 = vmatmul.mubr.msk.f32.gmra.mrb[28].mxu1 %vm2112_vm15, %v2099_v4  ;;  %v1998_v48 = vsel %vm1983_vm8, %v1981_v56, %v8977_v46  ;;  %v5465_v4 = vld [vmem:[%s6738_s26 + $0x12f] sm:$0xff]  ;;  %v2016_v19 = vsel %vm2000_vm9, %v1999_v44, %v1646_v7  ;;  %v5513_v56 = vld [vmem:[%s6738_s26 + $0x2db] sm:$0xff] }
 0x3ab   : > { %v1822_v16 = vpop.permute.xlu1 %1821  ;;  %v1820_v57 = vpop.permute.xlu0 %1819  ;;  %v2015_v54 = vsel %vm2000_vm9, %v1998_v48, %v7650_v20 }
 0x3ad   : > { %3130 = vrot.lane.b32.xlu1 %v5512_v5, %s6274_s29  ;;  %3068 = vrot.lane.b32.xlu0 %v5495_v26, %s6273_s22  ;;  %v2032_v5 = vsel %vm2017_vm10, %v2015_v54, %v7666_v21  ;;  %v2033_v26 = vsel %vm2017_vm10, %v2016_v19, %v7691_v1  ;;  %v5545_v19 = vld [vmem:[%s6738_s26 + $0x2e7] sm:$0xff] }
 0x3ae   : > { %v2049_v43 = vsel %vm2034_vm11, %v2032_v5, %v1756_v27  ;;  %v2050_v17 = vsel %vm2034_vm11, %v2033_v26, %v1758_v0 }
 0x3af   : > { %v1886_v18 = vpop.permute.xlu1 %1885  ;;  %v1884_v14 = vpop.permute.xlu0 %1883  ;;  %v2067_v20 = vsel %vm2051_vm12, %v2050_v17, %v1822_v16  ;;  %v2066_v7 = vsel %vm2051_vm12, %v2049_v43, %v1820_v57  ;;  %v5481_v16 = vld [vmem:[%s6738_s26 + $0x213] sm:$0xff] }
 0x3b0   : > { %v2084_v24 = vsel %vm2068_vm13, %v2067_v20, %v1886_v18  ;;  %v2083_v44 = vsel %vm2068_vm13, %v2066_v7, %v1884_v14  ;;  %v5496_v14 = vld [vmem:[%s6738_s26 + $0x217] sm:$0xff] }
 0x3b1   : > { %3006 = vrot.lane.b32.xlu1 %v5480_v13, %s6271_s30  ;;  %2944 = vrot.lane.b32.xlu0 %v5465_v4, %s6270_s17  ;;  %v5450_v13 = vld [vmem:[%s6738_s26 + $0x149] sm:$0xff]  ;;  %v5544_v4 = vld [vmem:[%s6738_s26 + $0x2df] sm:$0xff] }
 0x3b2   : > { %v5451_v43 = vld [vmem:[%s6738_s26 + $0x151] sm:$0xff]  ;;  %v5514_v7 = vld [vmem:[%s6738_s26 + $0x2fb] sm:$0xff] }
 0x3b3   : > { %v1950_v46 = vpop.permute.xlu1 %1949  ;;  %v1948_v27 = vpop.permute.xlu0 %1947 }
 0x3b4   : > { %v2101_v48 = vsel %vm2085_vm14, %v2084_v24, %v1950_v46  ;;  %v2100_v0 = vsel %vm2085_vm14, %v2083_v44, %v1948_v27  ;;  %v5482_v46 = vld [vmem:[%s6738_s26 + $0x233] sm:$0xff] }
 0x3b5   : > { %3194 = vrot.lane.b32.xlu1 %v7263_v45, %s6275_s15  ;;  %3132 = vrot.lane.b32.xlu0 %v5513_v56, %s6274_s29  ;;  %v5497_v56 = vld [vmem:[%s6738_s26 + $0x21f] sm:$0xff]  ;;  %v5467_v27 = vld [vmem:[%s6738_s26 + $0x157] sm:$0xff] }
 0x3b6   : > { %5928 = vmatprep.mubr.msk.f32.mxu1 %vm2112_vm15, %v2100_v0 }
 0x3b7   : > { %5929 = vmatmul.mubr.msk.f32.gmra.mrb[30].mxu1 %vm2112_vm15, %v2101_v48  ;;  %v2865_v18 = vpop.permute.xlu1 %2864  ;;  %v2863_v57 = vpop.permute.xlu0 %2862 }
 0x3b9   : > { %3196 = vrot.lane.b32.xlu1 %v7288_v36, %s6275_s15  ;;  %3008 = vrot.lane.b32.xlu0 %v5481_v16, %s6271_s30  ;;  %v5466_v36 = vld [vmem:[%s6738_s26 + $0x14f] sm:$0xff]  ;;  %v5515_v16 = vld [vmem:[%s6738_s26 + $0x303] sm:$0xff] }
 0x3bb   : > { %v2929_v45 = vpop.permute.xlu1 %2928  ;;  %v2927_v54 = vpop.permute.xlu0 %2926 }
 0x3bd   : > { %2882 = vrot.lane.b32.xlu1 %v5450_v13, %s6269_s27  ;;  %3258 = vrot.lane.b32.xlu0 %v5544_v4, %s6276_s18 }
 0x3bf   : > { %v2993_v5 = vpop.permute.xlu1 %2992  ;;  %v2991_v26 = vpop.permute.xlu0 %2990 }
 0x3c1   : > { %3260 = vrot.lane.b32.xlu1 %v5545_v19, %s6276_s18  ;;  %3070 = vrot.lane.b32.xlu0 %v5496_v14, %s6273_s22  ;;  %v5424_v19 = vld [vmem:[%s6738_s26 + $0x7b] sm:$0xff] }
 0x3c2   : > { %v5483_v14 = vld [vmem:[%s6738_s26 + $0x23b] sm:$0xff] }
 0x3c3   : > { %v3055_v17 = vpop.permute.xlu1 %3054  ;;  %v7759_v20 = vpop.permute.xlu0 %2866 }
 0x3c5   : > { %2946 = vrot.lane.b32.xlu1 %v5466_v36, %s6270_s17  ;;  %2884 = vrot.lane.b32.xlu0 %v5451_v43, %s6269_s27  ;;  %v3294_v36 = vsel %vm1122_vm6, %v5424_v19, %v2863_v57 }
 0x3c7   : > { %v7765_v24 = vpop.permute.xlu1 %2930  ;;  %v7767_v44 = vpop.permute.xlu0 %2868 }
 0x3c9   : > { %3134 = vrot.lane.b32.xlu1 %v5514_v7, %s6274_s29  ;;  %3072 = vrot.lane.b32.xlu0 %v5497_v56, %s6273_s22  ;;  %v5425_v56 = vld [vmem:[%s6738_s26 + $0x83] sm:$0xff] }
 0x3cb   : > { %v3119_v48 = vpop.permute.xlu1 %3118  ;;  %v3057_v0 = vpop.permute.xlu0 %3056 }
 0x3cd   : > { %3010 = vrot.lane.b32.xlu1 %v5482_v46, %s6271_s30  ;;  %2948 = vrot.lane.b32.xlu0 %v5467_v27, %s6270_s17  ;;  %v3310_v46 = vsel %vm1983_vm8, %v3294_v36, %v2927_v54 }
 0x3ce   : > { %v3326_v27 = vsel %vm2000_vm9, %v3310_v46, %v2991_v26 }
 0x3cf   : > { %v7776_v13 = vpop.permute.xlu1 %2994  ;;  %v7778_v4 = vpop.permute.xlu0 %2932  ;;  %v3342_v54 = vsel %vm2017_vm10, %v3326_v27, %v7196_v10 }
 0x3d0   : > { %v3358_v36 = vsel %vm2034_vm11, %v3342_v54, %v3055_v17 }
 0x3d1   : > { %3198 = vrot.lane.b32.xlu1 %v7332_v6, %s6275_s15  ;;  %3136 = vrot.lane.b32.xlu0 %v5515_v16, %s6274_s29  ;;  %v5452_v6 = vld [vmem:[%s6738_s26 + $0x171] sm:$0xff]  ;;  %v3295_v16 = vsel %vm1122_vm6, %v5425_v56, %v2865_v18 }
 0x3d2   : > { %v3311_v19 = vsel %vm1983_vm8, %v3295_v16, %v2929_v45  ;;  %v5547_v18 = vld [vmem:[%s6738_s26 + $0x30f] sm:$0xff] }
 0x3d3   : > { %v3183_v43 = vpop.permute.xlu1 %3182  ;;  %v3121_v7 = vpop.permute.xlu0 %3120  ;;  %v3327_v26 = vsel %vm2000_vm9, %v3311_v19, %v2993_v5 }
 0x3d4   : > { %v3343_v5 = vsel %vm2017_vm10, %v3327_v26, %v7194_v59 }
 0x3d5   : > { %3200 = vrot.lane.b32.xlu1 %v7329_v35, %s6275_s15  ;;  %3012 = vrot.lane.b32.xlu0 %v5483_v14, %s6271_s30  ;;  %v3374_v35 = vsel %vm2051_vm12, %v3358_v36, %v3119_v48  ;;  %v5498_v14 = vld [vmem:[%s6738_s26 + $0x23f] sm:$0xff]  ;;  %v3359_v27 = vsel %vm2034_vm11, %v3343_v5, %v3057_v0 }
 0x3d6   : > { %v3390_v56 = vsel %vm2068_vm13, %v3374_v35, %v3183_v43  ;;  %v5453_v48 = vld [vmem:[%s6738_s26 + $0x179] sm:$0xff]  ;;  %v5516_v0 = vld [vmem:[%s6738_s26 + $0x323] sm:$0xff]  ;;  %v5517_v35 = vld [vmem:[%s6738_s26 + $0x32b] sm:$0xff] }
 0x3d7   : > { %v3185_v53 = vpop.permute.xlu1 %3184  ;;  %v7795_v57 = vpop.permute.xlu0 %2996 }
 0x3d9   : > { %2886 = vrot.lane.b32.xlu1 %v5452_v6, %s6269_s27  ;;  %3262 = vrot.lane.b32.xlu0 %v5546_v42, %s6276_s18  ;;  %v3375_v42 = vsel %vm2051_vm12, %v3359_v27, %v3121_v7  ;;  %v5499_v7 = vld [vmem:[%s6738_s26 + $0x247] sm:$0xff] }
 0x3da   : > { %v3391_v43 = vsel %vm2068_vm13, %v3375_v42, %v3185_v53  ;;  %v5427_v27 = vld [vmem:[%s6738_s26 + $0xab] sm:$0xff] }
 0x3db   : > { %v7808_v46 = vpop.permute.xlu1 %2870  ;;  %v3247_v45 = vpop.permute.xlu0 %3246 }
 0x3dc   : > { %v3406_v17 = vsel %vm2085_vm14, %v3390_v56, %v3247_v45  ;;  %v5426_v56 = vld [vmem:[%s6738_s26 + $0xa3] sm:$0xff]  ;;  %v7850_v45 = vld [vmem:[%s6738_s26 + $0x331] sm:$0xff] }
 0x3dd   : > { %3264 = vrot.lane.b32.xlu1 %v5547_v18, %s6276_s18  ;;  %3074 = vrot.lane.b32.xlu0 %v5498_v14, %s6273_s22 }
 0x3de   : > { %5993 = vmatprep.mubr.msk.f32.mxu1 %vm2112_vm15, %v3406_v17 }
 0x3df   : > { %v3249_v6 = vpop.permute.xlu1 %3248  ;;  %v3059_v16 = vpop.permute.xlu0 %3058 }
 0x3e0   : > { %v3407_v19 = vsel %vm2085_vm14, %v3391_v43, %v3249_v6  ;;  %v5548_v43 = vld [vmem:[%s6738_s26 + $0x32f] sm:$0xff] }
 0x3e1   : > { %2950 = vrot.lane.b32.xlu1 %v7384_v33, %s6270_s17  ;;  %2888 = vrot.lane.b32.xlu0 %v5453_v48, %s6269_s27  ;;  %v7838_v33 = vld [vmem:[%s6738_s26 + $0x329] sm:$0xff]  ;;  %v5454_v48 = vld [vmem:[%s6738_s26 + $0x199] sm:$0xff] }
 0x3e2   : > { %5994 = vmatmul.mubr.msk.f32.vlgmr.msra.gmra.mrb[32].mxu1 %vm2112_vm15, %v3407_v19 }
 0x3e3   : > { %v7827_v54 = vpop.permute.xlu1 %2934  ;;  %v7829_v53 = vpop.permute.xlu0 %2872 }
 0x3e5   : > { %3138 = vrot.lane.b32.xlu1 %v5516_v0, %s6274_s29  ;;  %3076 = vrot.lane.b32.xlu0 %v5499_v7, %s6273_s22 }
 0x3e7   : > { %v3123_v26 = vpop.permute.xlu1 %3122  ;;  %v3061_v36 = vpop.permute.xlu0 %3060 }
 0x3e9   : > { %3014 = vrot.lane.b32.xlu1 %v7413_v3, %s6271_s30  ;;  %2952 = vrot.lane.b32.xlu0 %v7416_v15, %s6270_s17  ;;  %v3296_v3 = vsel %vm1122_vm6, %v5426_v56, %v7759_v20  ;;  %v3297_v20 = vsel %vm1122_vm6, %v5427_v27, %v7767_v44 }
 0x3ea   : > { %v3312_v17 = vsel %vm1983_vm8, %v3296_v3, %v7765_v24  ;;  %v7872_v24 = vld [vmem:[%s8936_s5 + $0x1] ss:$0 sm:$0xff] }
 0x3eb   : > { %v7841_v18 = vpop.permute.xlu1 %2998  ;;  %v7843_v14 = vpop.permute.xlu0 %2936  ;;  %v3328_v42 = vsel %vm2000_vm9, %v3312_v17, %v7776_v13  ;;  %v3313_v13 = vsel %vm1983_vm8, %v3297_v20, %v7778_v4  ;;  %v5549_v4 = vld [vmem:[%s6738_s26 + $0x337] sm:$0xff] }
 0x3ec   : > { %v3329_v0 = vsel %vm2000_vm9, %v3313_v13, %v7795_v57  ;;  %v5455_v13 = vld [vmem:[%s6738_s26 + $0x1a1] sm:$0xff] }
 0x3ed   : > { %3202 = vrot.lane.b32.xlu1 %v7838_v33, %s6275_s15  ;;  %3140 = vrot.lane.b32.xlu0 %v5517_v35, %s6274_s29 }
 0x3ef   : > { %v3187_v15 = vpop.permute.xlu1 %3186  ;;  %v3125_v5 = vpop.permute.xlu0 %3124 }
 0x3f1   : > { %3204 = vrot.lane.b32.xlu1 %v7850_v45, %s6275_s15  ;;  %3016 = vrot.lane.b32.xlu0 %v7452_v51, %s6271_s30  ;;  %v3344_v51 = vsel %vm2017_vm10, %v3328_v42, %v7221_v61 }
 0x3f2   : > { %v3360_v7 = vsel %vm2034_vm11, %v3344_v51, %v3059_v16  ;;  %v3345_v16 = vsel %vm2017_vm10, %v3329_v0, %v7245_v28 }
 0x3f3   : > { %v3189_v6 = vpop.permute.xlu1 %3188  ;;  %v7867_v19 = vpop.permute.xlu0 %3000  ;;  %v3376_v35 = vsel %vm2051_vm12, %v3360_v7, %v3123_v26 }
 0x3f4   : > { %v3392_v17 = vsel %vm2068_vm13, %v3376_v35, %v3187_v15 }
 0x3f5   : > { %v5909_v44 = vpop.f32.mrb[16].mxu1  ;;  %2890 = vrot.lane.b32.xlu1 %v5454_v48, %s6269_s27  ;;  %3266 = vrot.lane.b32.xlu0 %v5548_v43, %s6276_s18  ;;  %v3361_v43 = vsel %vm2034_vm11, %v3345_v16, %v3061_v36 }
 0x3f6   : > { %v2236_v56 = vadd.f32 %v5909_v44, %v7872_v24  ;;  %v2230_v3 = vpop.f32.mrb[17].mxu1  ;;  %v3377_v15 = vsel %vm2051_vm12, %v3361_v43, %v3125_v5 }
 0x3f7   : > { %v2231_v27 = vadd.f32 %v7872_v24, %v2230_v3  ;;  %v7888_v42 = vpop.permute.xlu1 %2874  ;;  %v3251_v57 = vpop.permute.xlu0 %3250  ;;  %v3393_v51 = vsel %vm2068_vm13, %v3377_v15, %v3189_v6  ;;  %v5429_v15 = vld [vmem:[%s6738_s26 + $0xd3] sm:$0xff] }
 0x3f8   : > { %v3408_v48 = vsel %vm2085_vm14, %v3392_v17, %v3251_v57  ;;  %v2310_v20 = vmax.f32 %v2236_v56, 0.0  ;;  %v5519_v56 = vld [vmem:[%s6738_s26 + $0x353] sm:$0xff]  ;;  %v5428_v17 = vld [vmem:[%s6738_s26 + $0xcb] sm:$0xff] }
 0x3f9   : > { %v2309_v26 = vmax.f32 %v2231_v27, 0.0  ;;  %3268 = vrot.lane.b32.xlu1 %v5549_v4, %s6276_s18  ;;  %3078 = vrot.lane.b32.xlu0 %v7480_v39, %s6273_s22  ;;  %v5518_v39 = vld [vmem:[%s6738_s26 + $0x34b] sm:$0xff]  ;;  %v3298_v57 = vsel %vm1122_vm6, %v5428_v17, %v7808_v46 }
 0x3fa   : > { %5996 = vmatprep.mubr.msk.f32.mxu1 %vm2112_vm15, %v3408_v48  ;;  %v3872_v17 = vld [vmem:[%s6738_s26 + $0x9] sm:$0xff] }
 0x3fb   : > { %5933 = vmatprep.mubr.msk.f32.mxu0 %vm1983_vm8, %v2309_v26  ;;  %v3253_v0 = vpop.permute.xlu1 %3252  ;;  %v3063_v36 = vpop.permute.xlu0 %3062  ;;  %v3314_v26 = vsel %vm1983_vm8, %v3298_v57, %v7827_v54  ;;  %v5520_v57 = vld [vmem:[%s6738_s26 + $0x373] sm:$0xff] }
 0x3fc   : > { %v3409_v7 = vsel %vm2085_vm14, %v3393_v51, %v3253_v0  ;;  %5934 = vmatmul.mubr.msk.f32.vlgmr.msra.gmra.mrb[0].mxu0 %vm1983_vm8, %v2310_v20  ;;  %v3330_v20 = vsel %vm2000_vm9, %v3314_v26, %v7841_v18  ;;  %v5550_v51 = vld [vmem:[%s6738_s26 + $0x357] sm:$0xff]  ;;  %v3299_v0 = vsel %vm1122_vm6, %v5429_v15, %v7829_v53 }
 0x3fd   : > { %2954 = vrot.lane.b32.xlu1 %v7500_v40, %s6270_s17  ;;  %2892 = vrot.lane.b32.xlu0 %v5455_v13, %s6269_s27  ;;  %v7921_v40 = vld [vmem:[%s6738_s26 + $0x351] sm:$0xff]  ;;  %v3315_v18 = vsel %vm1983_vm8, %v3299_v0, %v7843_v14  ;;  %v5551_v14 = vld [vmem:[%s6738_s26 + $0x35f] sm:$0xff] }
 0x3fe   : > { %5997 = vmatmul.mubr.msk.f32.gmra.mrb[34].mxu1 %vm2112_vm15, %v3409_v7 }
 0x3ff   : > { %v7909_v5 = vpop.permute.xlu1 %2938  ;;  %v7911_v6 = vpop.permute.xlu0 %2876 }
 0x401   : > { %3142 = vrot.lane.b32.xlu1 %v5518_v39, %s6274_s29  ;;  %3080 = vrot.lane.b32.xlu0 %v7497_v29, %s6273_s22  ;;  %v3346_v39 = vsel %vm2017_vm10, %v3330_v20, %v7275_v49  ;;  %v3873_v20 = vld [vmem:[%s6738_s26 + $0x11] sm:$0xff] }
 0x403   : > { %v3127_v44 = vpop.permute.xlu1 %3126  ;;  %v3065_v35 = vpop.permute.xlu0 %3064 }
 0x405   : > { %3018 = vrot.lane.b32.xlu1 %v7541_v60, %s6271_s30  ;;  %2956 = vrot.lane.b32.xlu0 %v7544_v55, %s6270_s17  ;;  %v7934_v55 = vld [vmem:[%s6738_s26 + $0x359] sm:$0xff] }
 0x407   : > { %v7924_v3 = vpop.permute.xlu1 %3002  ;;  %v7926_v4 = vpop.permute.xlu0 %2940 }
 0x409   : > { %v5912_v27 = vpop.f32.mrb[18].mxu1  ;;  %3206 = vrot.lane.b32.xlu1 %v7921_v40, %s6275_s15  ;;  %3144 = vrot.lane.b32.xlu0 %v5519_v56, %s6274_s29  ;;  %v3362_v56 = vsel %vm2034_vm11, %v3346_v39, %v3063_v36 }
 0x40a   : > { %v2246_v29 = vadd.f32 %v5912_v27, %v7872_v24  ;;  %v2240_v60 = vpop.f32.mrb[19].mxu1  ;;  %v3378_v53 = vsel %vm2051_vm12, %v3362_v56, %v3127_v44 }
 0x40b   : > { %v2241_v16 = vadd.f32 %v7872_v24, %v2240_v60  ;;  %v3191_v48 = vpop.permute.xlu1 %3190  ;;  %v3129_v43 = vpop.permute.xlu0 %3128 }
 0x40c   : > { %v2312_v46 = vmax.f32 %v2246_v29, 0.0  ;;  %v3394_v27 = vsel %vm2068_vm13, %v3378_v53, %v3191_v48 }
 0x40d   : > { %v2311_v13 = vmax.f32 %v2241_v16, 0.0  ;;  %3208 = vrot.lane.b32.xlu1 %v7934_v55, %s6275_s15  ;;  %3020 = vrot.lane.b32.xlu0 %v7580_v58, %s6271_s30  ;;  %v3331_v58 = vsel %vm2000_vm9, %v3315_v18, %v7867_v19  ;;  %v5521_v18 = vld [vmem:[%s6738_s26 + $0x37b] sm:$0xff] }
 0x40e   : > { %v3347_v19 = vsel %vm2017_vm10, %v3331_v58, %v7302_v50 }
 0x40f   : > { %5936 = vmatprep.mubr.msk.f32.mxu0 %vm1983_vm8, %v2311_v13  ;;  %v3193_v54 = vpop.permute.xlu1 %3192  ;;  %v7952_v7 = vpop.permute.xlu0 %3004 }
 0x410   : > { %5937 = vmatmul.mubr.msk.f32.gmra.mrb[2].mxu0 %vm1983_vm8, %v2312_v46 }
 0x411   : > { %3082 = vrot.lane.b32.xlu1 %v7599_v8, %s6273_s22  ;;  %3270 = vrot.lane.b32.xlu0 %v5550_v51, %s6276_s18  ;;  %v3363_v8 = vsel %vm2034_vm11, %v3347_v19, %v3065_v35  ;;  %v1336_v35 = vld [vmem:[%s8937_s6] sm:$0xff] }
 0x412   : > { %v3379_v44 = vsel %vm2051_vm12, %v3363_v8, %v3129_v43  ;;  %v3888_v43 = vld [vmem:[%s6738_s26 + $0x12] sm:$0xff]  ;;  %5957 = vmatprep.subr.mxu0 %v1336_v35  ;;  %v5552_v8 = vld [vmem:[%s6738_s26 + $0x37f] sm:$0xff] }
 0x413   : > { %v7969_v29 = vpop.permute.xlu1 %2878  ;;  %v3255_v60 = vpop.permute.xlu0 %3254  ;;  %v3395_v16 = vsel %vm2068_vm13, %v3379_v44, %v3193_v54  ;;  %5958 = vmatpush3.msra.mxu0 %v1336_v35  ;;  %v7999_v54 = vld [vmem:[%s6738_s26 + $0x379] sm:$0xff]  ;;  %v8019_v44 = vld [vmem:[%s6738_s26 + $0x381] sm:$0xff] }
 0x414   : > { %v3410_v36 = vsel %vm2085_vm14, %v3394_v27, %v3255_v60  ;;  %v3889_v27 = vld [vmem:[%s6738_s26 + $0x1a] sm:$0xff] }
 0x415   : > { %4003 = vrot.lane.b32.xlu1 %v3872_v17, %s6269_s27  ;;  %3272 = vrot.lane.b32.xlu0 %v5551_v14, %s6276_s18  ;;  %v5589_v14 = vld [vmem:[%s6738_s26 + $0x168] sm:$0xff]  ;;  %v5431_v35 = vld [vmem:[%s6738_s26 + $0xfb] sm:$0xff] }
 0x416   : > { %5999 = vmatprep.mubr.msk.f32.mxu1 %vm2112_vm15, %v3410_v36  ;;  %v5430_v36 = vld [vmem:[%s6738_s26 + $0xf3] sm:$0xff] }
 0x417   : > { %v3257_v48 = vpop.permute.xlu1 %3256  ;;  %v3067_v26 = vpop.permute.xlu0 %3066 }
 0x418   : > { %v3411_v15 = vsel %vm2085_vm14, %v3395_v16, %v3257_v48 }
 0x419   : > { %3146 = vrot.lane.b32.xlu1 %v5520_v57, %s6274_s29  ;;  %3084 = vrot.lane.b32.xlu0 %v7615_v47, %s6273_s22  ;;  %v3300_v57 = vsel %vm1122_vm6, %v5430_v36, %v7888_v42  ;;  %v3301_v42 = vsel %vm1122_vm6, %v5431_v35, %v7911_v6 }
 0x41a   : > { %6000 = vmatmul.mubr.msk.f32.gmra.mrb[36].mxu1 %vm2112_vm15, %v3411_v15  ;;  %v3316_v15 = vsel %vm1983_vm8, %v3300_v57, %v7909_v5  ;;  %v3317_v5 = vsel %vm1983_vm8, %v3301_v42, %v7926_v4  ;;  %v3875_v57 = vld [vmem:[%s6738_s26 + $0x39] sm:$0xff]  ;;  %v5606_v42 = vld [vmem:[%s6738_s26 + $0x182] sm:$0xff] }
 0x41b   : > { %v7991_v13 = vpop.permute.xlu1 %2942  ;;  %v7993_v46 = vpop.permute.xlu0 %2880 }
 0x41d   : > { %v5915_v51 = vpop.f32.mrb[20].mxu1  ;;  %4067 = vrot.lane.b32.xlu1 %v3888_v43, %s6270_s17  ;;  %4005 = vrot.lane.b32.xlu0 %v3873_v20, %s6269_s27  ;;  %v3332_v43 = vsel %vm2000_vm9, %v3316_v15, %v7924_v3  ;;  %v5553_v20 = vld [vmem:[%s6738_s26 + $0x387] sm:$0xff] }
 0x41e   : > { %v2256_v47 = vadd.f32 %v5915_v51, %v7872_v24  ;;  %v2250_v0 = vpop.f32.mrb[21].mxu1  ;;  %v5590_v51 = vld [vmem:[%s6738_s26 + $0x170] sm:$0xff]  ;;  %v3348_v3 = vsel %vm2017_vm10, %v3332_v43, %v7336_v2 }
 0x41f   : > { %v2251_v39 = vadd.f32 %v7872_v24, %v2250_v0  ;;  %v3131_v58 = vpop.permute.xlu1 %3130  ;;  %v3069_v56 = vpop.permute.xlu0 %3068 }
 0x420   : > { %v2314_v17 = vmax.f32 %v2256_v47, 0.0 }
 0x421   : > { %v2313_v53 = vmax.f32 %v2251_v39, 0.0  ;;  %3210 = vrot.lane.b32.xlu1 %v7999_v54, %s6275_s15  ;;  %3148 = vrot.lane.b32.xlu0 %v5521_v18, %s6274_s29  ;;  %v3333_v18 = vsel %vm2000_vm9, %v3317_v5, %v7952_v7  ;;  %v3364_v39 = vsel %vm2034_vm11, %v3348_v3, %v3067_v26  ;;  %v4564_v5 = vld [vmem:[%s8935_s4 + $0x8] sm:$0xff] }
 0x422   : > { %v3380_v6 = vsel %vm2051_vm12, %v3364_v39, %v3131_v58  ;;  %v3349_v7 = vsel %vm2017_vm10, %v3333_v18, %v7362_v41 }
 0x423   : > { %5939 = vmatprep.mubr.msk.f32.mxu0 %vm1983_vm8, %v2313_v53  ;;  %v8009_v60 = vpop.permute.xlu1 %3006  ;;  %v8011_v19 = vpop.permute.xlu0 %2944  ;;  %v5605_v53 = vld [vmem:[%s6738_s26 + $0x17a] sm:$0xff]  ;;  %v3365_v36 = vsel %vm2034_vm11, %v3349_v7, %v3069_v56  ;;  %v5623_v56 = vld [vmem:[%s6738_s26 + $0x2d0] sm:$0xff] }
 0x424   : > { %5940 = vmatmul.mubr.msk.f32.gmra.mrb[4].mxu0 %vm1983_vm8, %v2314_v17  ;;  %v3874_v17 = vld [vmem:[%s6738_s26 + $0x31] sm:$0xff] }
 0x425   : > { %4131 = vrot.lane.b32.xlu1 %v5589_v14, %s6271_s30  ;;  %4069 = vrot.lane.b32.xlu0 %v3889_v27, %s6270_s17  ;;  %v8090_v7 = vld [vmem:[%s8937_s6 + $0x10] sm:$0xff] }
 0x426   : > { %6017 = vmatprep.subr.mxu0 %v8090_v7 }
 0x427   : > { %v3195_v16 = vpop.permute.xlu1 %3194  ;;  %v3133_v48 = vpop.permute.xlu0 %3132 }
 0x428   : > { %v3396_v4 = vsel %vm2068_vm13, %v3380_v6, %v3195_v16  ;;  %v3381_v58 = vsel %vm2051_vm12, %v3365_v36, %v3133_v48  ;;  %v4566_v36 = vld [vmem:[%s8935_s4 + $0x18] sm:$0xff] }
 0x429   : > { %3274 = vrot.lane.b32.xlu1 %v5552_v8, %s6276_s18  ;;  %3212 = vrot.lane.b32.xlu0 %v8019_v44, %s6275_s15  ;;  %v3890_v8 = vld [vmem:[%s6738_s26 + $0x3a] sm:$0xff] }
 0x42b   : > { %v3197_v47 = vpop.permute.xlu1 %3196  ;;  %v8035_v0 = vpop.permute.xlu0 %3008 }
 0x42c   : > { %v3397_v16 = vsel %vm2068_vm13, %v3381_v58, %v3197_v47  ;;  %v4563_v47 = vld [vmem:[%s8935_s4] sm:$0xff] }
 0x42d   : > { %3276 = vrot.lane.b32.xlu1 %v5553_v20, %s6276_s18  ;;  %4133 = vrot.lane.b32.xlu0 %v5590_v51, %s6271_s30  ;;  %v6119_v6 = vpack.c.bf16 %v4564_v5, %v4563_v47 }
 0x42f   : > { %v8050_v14 = vpop.permute.xlu1 %2882  ;;  %v3259_v27 = vpop.permute.xlu0 %3258  ;;  %6120 = vmatprep.subr.bf16.mxu1 %v6119_v6 }
 0x430   : > { %v3412_v26 = vsel %vm2085_vm14, %v3396_v4, %v3259_v27  ;;  %v3891_v4 = vld [vmem:[%s6738_s26 + $0x42] sm:$0xff]  ;;  %6122 = vmatpush3.bf16.msra.mxu1 %v6119_v6 }
 0x431   : > { %4195 = vrot.lane.b32.xlu1 %v5605_v53, %s6273_s22  ;;  %4007 = vrot.lane.b32.xlu0 %v3874_v17, %s6269_s27  ;;  %v5591_v17 = vld [vmem:[%s6738_s26 + $0x190] sm:$0xff] }
 0x432   : > { %6002 = vmatprep.mubr.msk.f32.mxu1 %vm2112_vm15, %v3412_v26  ;;  %v4565_v26 = vld [vmem:[%s8935_s4 + $0x10] sm:$0xff] }
 0x433   : > { %v3261_v15 = vpop.permute.xlu1 %3260  ;;  %v8063_v35 = vpop.permute.xlu0 %3070 }
 0x434   : > { %v3413_v43 = vsel %vm2085_vm14, %v3397_v16, %v3261_v15  ;;  %v5639_v16 = vld [vmem:[%s6738_s26 + $0x2d9] sm:$0xff] }
 0x435   : > { %v5918_v20 = vpop.f32.mrb[22].mxu1  ;;  %4071 = vrot.lane.b32.xlu1 %v3890_v8, %s6270_s17  ;;  %4009 = vrot.lane.b32.xlu0 %v3875_v57, %s6269_s27  ;;  %v6123_v57 = vpack.c.bf16 %v4566_v36, %v4565_v26  ;;  %v5624_v15 = vld [vmem:[%s6738_s26 + $0x2d8] sm:$0xff] }
 0x436   : > { %v2266_v48 = vadd.f32 %v5918_v20, %v7872_v24  ;;  %v2260_v51 = vpop.f32.mrb[23].mxu1  ;;  %6003 = vmatmul.mubr.msk.f32.gmra.mrb[38].mxu1 %vm2112_vm15, %v3413_v43 }
 0x437   : > { %v2261_v3 = vadd.f32 %v7872_v24, %v2260_v51  ;;  %v8079_v18 = vpop.permute.xlu1 %2946  ;;  %v8081_v39 = vpop.permute.xlu0 %2884  ;;  %6124 = vmatprep.subr.bf16.mxu1 %v6123_v57  ;;  %v5640_v51 = vld [vmem:[%s6738_s26 + $0x2e1] sm:$0xff] }
 0x438   : > { %v2316_v27 = vmax.f32 %v2266_v48, 0.0  ;;  %6126 = vmatpush3.bf16.msra.mxu1 %v6123_v57  ;;  %v5432_v48 = vld [vmem:[%s6738_s26 + $0x11b] sm:$0xff] }
 0x439   : > { %v2315_v53 = vmax.f32 %v2261_v3, 0.0  ;;  %4259 = vrot.lane.b32.xlu1 %v5623_v56, %s6274_s29  ;;  %4197 = vrot.lane.b32.xlu0 %v5606_v42, %s6273_s22  ;;  %v4567_v56 = vld [vmem:[%s8935_s4 + $0x20] sm:$0xf]  ;;  %v5592_v42 = vld [vmem:[%s6738_s26 + $0x198] sm:$0xff]  ;;  %v3302_v47 = vsel %vm1122_vm6, %v5432_v48, %v7969_v29 }
 0x43a   : > { %6051 = vmatprep.subr.msk.mxu1 %vm1171_vm7, %v4567_v56  ;;  %v3318_v6 = vsel %vm1983_vm8, %v3302_v47, %v7991_v13 }
 0x43b   : > { %5942 = vmatprep.mubr.msk.f32.mxu0 %vm1983_vm8, %v2315_v53  ;;  %v3135_v58 = vpop.permute.xlu1 %3134  ;;  %v3073_v8 = vpop.permute.xlu0 %3072  ;;  %v5433_v53 = vld [vmem:[%s6738_s26 + $0x123] sm:$0xff] }
 0x43c   : > { %5943 = vmatmul.mubr.msk.f32.gmra.mrb[6].mxu0 %vm1983_vm8, %v2316_v27  ;;  %6052 = vmatpush3.msk.msra.mxu1 %vm1171_vm7, %v4567_v56  ;;  %v5655_v27 = vld [vmem:[%s6738_s26 + $0x2e2] sm:$0xff]  ;;  %v3303_v29 = vsel %vm1122_vm6, %v5433_v53, %v7993_v46 }
 0x43d   : > { %4135 = vrot.lane.b32.xlu1 %v5591_v17, %s6271_s30  ;;  %4073 = vrot.lane.b32.xlu0 %v3891_v4, %s6270_s17  ;;  %v3334_v17 = vsel %vm2000_vm9, %v3318_v6, %v8009_v60  ;;  %v3876_v4 = vld [vmem:[%s6738_s26 + $0x59] sm:$0xff]  ;;  %v3319_v13 = vsel %vm1983_vm8, %v3303_v29, %v8011_v19  ;;  %v5607_v56 = vld [vmem:[%s6738_s26 + $0x1a2] sm:$0xff] }
 0x43e   : > { %v3350_v57 = vsel %vm2017_vm10, %v3334_v17, %v7399_v23  ;;  %v3335_v60 = vsel %vm2000_vm9, %v3319_v13, %v8035_v0  ;;  %v3892_v53 = vld [vmem:[%s6738_s26 + $0x62] sm:$0xff] }
 0x43f   : > { %v8105_v43 = vpop.permute.xlu1 %3010  ;;  %v8107_v20 = vpop.permute.xlu0 %2948  ;;  %v3351_v0 = vsel %vm2017_vm10, %v3335_v60, %v7443_v30  ;;  %v3877_v17 = vld [vmem:[%s6738_s26 + $0x61] sm:$0xff]  ;;  %v5625_v60 = vld [vmem:[%s6738_s26 + $0x2f8] sm:$0xff] }
 0x441   : > { %4323 = vrot.lane.b32.xlu1 %v5639_v16, %s6275_s15  ;;  %4261 = vrot.lane.b32.xlu0 %v5624_v15, %s6274_s29  ;;  %v3366_v16 = vsel %vm2034_vm11, %v3350_v57, %v8063_v35  ;;  %v5656_v15 = vld [vmem:[%s6738_s26 + $0x2ea] sm:$0xff] }
 0x442   : > { %v3382_v46 = vsel %vm2051_vm12, %v3366_v16, %v3135_v58 }
 0x443   : > { %v3199_v5 = vpop.permute.xlu1 %3198  ;;  %v3137_v3 = vpop.permute.xlu0 %3136 }
 0x444   : > { %v3398_v19 = vsel %vm2068_vm13, %v3382_v46, %v3199_v5 }
 0x445   : > { %4325 = vrot.lane.b32.xlu1 %v5640_v51, %s6275_s15  ;;  %4137 = vrot.lane.b32.xlu0 %v5592_v42, %s6271_s30  ;;  %v3367_v42 = vsel %vm2034_vm11, %v3351_v0, %v3073_v8  ;;  %v5641_v0 = vld [vmem:[%s6738_s26 + $0x301] sm:$0xff] }
 0x446   : > { %v3383_v58 = vsel %vm2051_vm12, %v3367_v42, %v3137_v3 }
 0x447   : > { %v3201_v26 = vpop.permute.xlu1 %3200  ;;  %v8132_v36 = vpop.permute.xlu0 %3012 }
 0x449   : > { %4011 = vrot.lane.b32.xlu1 %v3876_v4, %s6269_s27  ;;  %4387 = vrot.lane.b32.xlu0 %v5655_v27, %s6276_s18  ;;  %v3399_v4 = vsel %vm2068_vm13, %v3383_v58, %v3201_v26  ;;  %v5608_v26 = vld [vmem:[%s6738_s26 + $0x1aa] sm:$0xff] }
 0x44a   : > { %v5434_v58 = vld [vmem:[%s6738_s26 + $0x143] sm:$0xff] }
 0x44b   : > { %v8148_v48 = vpop.permute.xlu1 %2886  ;;  %v3263_v51 = vpop.permute.xlu0 %3262 }
 0x44c   : > { %v3414_v35 = vsel %vm2085_vm14, %v3398_v19, %v3263_v51 }
 0x44d   : > { %v5921_v47 = vpop.f32.mrb[24].mxu1  ;;  %4389 = vrot.lane.b32.xlu1 %v5656_v15, %s6276_s18  ;;  %4199 = vrot.lane.b32.xlu0 %v5607_v56, %s6273_s22  ;;  %v5593_v15 = vld [vmem:[%s6738_s26 + $0x1b8] sm:$0xff]  ;;  %v3893_v56 = vld [vmem:[%s6738_s26 + $0x6a] sm:$0xff] }
 0x44e   : > { %v2276_v5 = vadd.f32 %v5921_v47, %v7872_v24  ;;  %v2270_v6 = vpop.f32.mrb[25].mxu1  ;;  %6005 = vmatprep.mubr.msk.f32.mxu1 %vm2112_vm15, %v3414_v35  ;;  %v5626_v35 = vld [vmem:[%s6738_s26 + $0x300] sm:$0xff] }
 0x44f   : > { %v2271_v8 = vadd.f32 %v7872_v24, %v2270_v6  ;;  %v3265_v27 = vpop.permute.xlu1 %3264  ;;  %v3075_v29 = vpop.permute.xlu0 %3074  ;;  %v5594_v6 = vld [vmem:[%s6738_s26 + $0x1c0] sm:$0xff] }
 0x450   : > { %v3415_v13 = vsel %vm2085_vm14, %v3399_v4, %v3265_v27  ;;  %v2318_v57 = vmax.f32 %v2276_v5, 0.0  ;;  %v5642_v5 = vld [vmem:[%s6738_s26 + $0x309] sm:$0xff] }
 0x451   : > { %v2317_v3 = vmax.f32 %v2271_v8, 0.0  ;;  %4075 = vrot.lane.b32.xlu1 %v3892_v53, %s6270_s17  ;;  %4013 = vrot.lane.b32.xlu0 %v3877_v17, %s6269_s27  ;;  %v3304_v53 = vsel %vm1122_vm6, %v5434_v58, %v8050_v14  ;;  %v5435_v27 = vld [vmem:[%s6738_s26 + $0x14b] sm:$0xff] }
 0x452   : > { %6006 = vmatmul.mubr.msk.f32.gmra.mrb[40].mxu1 %vm2112_vm15, %v3415_v13  ;;  %v3320_v8 = vsel %vm1983_vm8, %v3304_v53, %v8079_v18  ;;  %v3305_v14 = vsel %vm1122_vm6, %v5435_v27, %v8081_v39 }
 0x453   : > { %5945 = vmatprep.mubr.msk.f32.mxu0 %vm1983_vm8, %v2317_v3  ;;  %v8170_v16 = vpop.permute.xlu1 %2950  ;;  %v8172_v46 = vpop.permute.xlu0 %2888  ;;  %v3336_v13 = vsel %vm2000_vm9, %v3320_v8, %v8105_v43  ;;  %v3878_v3 = vld [vmem:[%s6738_s26 + $0x81] sm:$0xff]  ;;  %v3321_v18 = vsel %vm1983_vm8, %v3305_v14, %v8107_v20  ;;  %v5658_v20 = vld [vmem:[%s6738_s26 + $0x312] sm:$0xff]  ;;  %v3879_v14 = vld [vmem:[%s6738_s26 + $0x89] sm:$0xff] }
 0x454   : > { %5946 = vmatmul.mubr.msk.f32.gmra.mrb[8].mxu0 %vm1983_vm8, %v2318_v57  ;;  %v5657_v57 = vld [vmem:[%s6738_s26 + $0x30a] sm:$0xff]  ;;  %v3352_v43 = vsel %vm2017_vm10, %v3336_v13, %v7506_v22 }
 0x455   : > { %4263 = vrot.lane.b32.xlu1 %v5625_v60, %s6274_s29  ;;  %4201 = vrot.lane.b32.xlu0 %v5608_v26, %s6273_s22 }
 0x457   : > { %v3139_v19 = vpop.permute.xlu1 %3138  ;;  %v3077_v51 = vpop.permute.xlu0 %3076 }
 0x459   : > { %4139 = vrot.lane.b32.xlu1 %v5593_v15, %s6271_s30  ;;  %4077 = vrot.lane.b32.xlu0 %v3893_v56, %s6270_s17  ;;  %v3337_v15 = vsel %vm2000_vm9, %v3321_v18, %v8132_v36  ;;  %v3368_v56 = vsel %vm2034_vm11, %v3352_v43, %v3075_v29 }
 0x45a   : > { %v3384_v39 = vsel %vm2051_vm12, %v3368_v56, %v3139_v19  ;;  %v3353_v8 = vsel %vm2017_vm10, %v3337_v15, %v7550_v34  ;;  %v5610_v56 = vld [vmem:[%s6738_s26 + $0x1d2] sm:$0xff] }
 0x45b   : > { %v8183_v42 = vpop.permute.xlu1 %3014  ;;  %v8185_v47 = vpop.permute.xlu0 %2952  ;;  %v3369_v19 = vsel %vm2034_vm11, %v3353_v8, %v3077_v51  ;;  %v5596_v8 = vld [vmem:[%s6738_s26 + $0x1e8] sm:$0xff] }
 0x45d   : > { %4327 = vrot.lane.b32.xlu1 %v5641_v0, %s6275_s15  ;;  %4265 = vrot.lane.b32.xlu0 %v5626_v35, %s6274_s29 }
 0x45f   : > { %v3203_v17 = vpop.permute.xlu1 %3202  ;;  %v3141_v4 = vpop.permute.xlu0 %3140 }
 0x461   : > { %4329 = vrot.lane.b32.xlu1 %v5642_v5, %s6275_s15  ;;  %4141 = vrot.lane.b32.xlu0 %v5594_v6, %s6271_s30  ;;  %v5609_v5 = vld [vmem:[%s6738_s26 + $0x1ca] sm:$0xff]  ;;  %v3400_v6 = vsel %vm2068_vm13, %v3384_v39, %v3203_v17  ;;  %v3385_v17 = vsel %vm2051_vm12, %v3369_v19, %v3141_v4  ;;  %v5627_v4 = vld [vmem:[%s6738_s26 + $0x320] sm:$0xff] }
 0x462   : > { %v5595_v39 = vld [vmem:[%s6738_s26 + $0x1e0] sm:$0xff] }
 0x463   : > { %v3205_v60 = vpop.permute.xlu1 %3204  ;;  %v8205_v26 = vpop.permute.xlu0 %3016 }
 0x464   : > { %v3401_v18 = vsel %vm2068_vm13, %v3385_v17, %v3205_v60 }
 0x465   : > { %v5924_v0 = vpop.f32.mrb[26].mxu1  ;;  %4015 = vrot.lane.b32.xlu1 %v3878_v3, %s6269_s27  ;;  %4391 = vrot.lane.b32.xlu0 %v5657_v57, %s6276_s18  ;;  %v3894_v57 = vld [vmem:[%s6738_s26 + $0x8a] sm:$0xff] }
 0x466   : > { %v2286_v35 = vadd.f32 %v5924_v0, %v7872_v24  ;;  %v2280_v58 = vpop.f32.mrb[27].mxu1 }
 0x467   : > { %v2281_v36 = vadd.f32 %v7872_v24, %v2280_v58  ;;  %v8222_v53 = vpop.permute.xlu1 %2890  ;;  %v3267_v29 = vpop.permute.xlu0 %3266 }
 0x468   : > { %v3416_v27 = vsel %vm2085_vm14, %v3400_v6, %v3267_v29  ;;  %v2320_v3 = vmax.f32 %v2286_v35, 0.0  ;;  %v3895_v35 = vld [vmem:[%s6738_s26 + $0x92] sm:$0xff] }
 0x469   : > { %v2319_v13 = vmax.f32 %v2281_v36, 0.0  ;;  %4393 = vrot.lane.b32.xlu1 %v5658_v20, %s6276_s18  ;;  %4203 = vrot.lane.b32.xlu0 %v5609_v5, %s6273_s22  ;;  %v5628_v5 = vld [vmem:[%s6738_s26 + $0x328] sm:$0xff] }
 0x46a   : > { %6008 = vmatprep.mubr.msk.f32.mxu1 %vm2112_vm15, %v3416_v27  ;;  %v5436_v29 = vld [vmem:[%s6738_s26 + $0x16b] sm:$0xff] }
 0x46b   : > { %5948 = vmatprep.mubr.msk.f32.mxu0 %vm1983_vm8, %v2319_v13  ;;  %v3269_v51 = vpop.permute.xlu1 %3268  ;;  %v3079_v43 = vpop.permute.xlu0 %3078  ;;  %v3306_v27 = vsel %vm1122_vm6, %v5436_v29, %v8148_v48  ;;  %v3880_v48 = vld [vmem:[%s6738_s26 + $0xa9] sm:$0xff] }
 0x46c   : > { %v3417_v15 = vsel %vm2085_vm14, %v3401_v18, %v3269_v51  ;;  %5949 = vmatmul.mubr.msk.f32.gmra.mrb[10].mxu0 %vm1983_vm8, %v2320_v3  ;;  %v3322_v17 = vsel %vm1983_vm8, %v3306_v27, %v8170_v16  ;;  %v5437_v3 = vld [vmem:[%s6738_s26 + $0x173] sm:$0xff] }
 0x46d   : > { %4079 = vrot.lane.b32.xlu1 %v3894_v57, %s6270_s17  ;;  %4017 = vrot.lane.b32.xlu0 %v3879_v14, %s6269_s27  ;;  %v3338_v57 = vsel %vm2000_vm9, %v3322_v17, %v8183_v42  ;;  %v5659_v51 = vld [vmem:[%s6738_s26 + $0x332] sm:$0xff]  ;;  %v3307_v16 = vsel %vm1122_vm6, %v5437_v3, %v8172_v46 }
 0x46e   : > { %6009 = vmatmul.mubr.msk.f32.gmra.mrb[42].mxu1 %vm2112_vm15, %v3417_v15 }
 0x46f   : > { %v8243_v60 = vpop.permute.xlu1 %2954  ;;  %v8245_v0 = vpop.permute.xlu0 %2892 }
 0x471   : > { %4267 = vrot.lane.b32.xlu1 %v5627_v4, %s6274_s29  ;;  %4205 = vrot.lane.b32.xlu0 %v5610_v56, %s6273_s22  ;;  %v3354_v56 = vsel %vm2017_vm10, %v3338_v57, %v7603_v12  ;;  %v3896_v57 = vld [vmem:[%s6738_s26 + $0xb2] sm:$0xff] }
 0x473   : > { %v3143_v58 = vpop.permute.xlu1 %3142  ;;  %v3081_v20 = vpop.permute.xlu0 %3080 }
 0x475   : > { %4143 = vrot.lane.b32.xlu1 %v5595_v39, %s6271_s30  ;;  %4081 = vrot.lane.b32.xlu0 %v3895_v35, %s6270_s17  ;;  %v3370_v35 = vsel %vm2034_vm11, %v3354_v56, %v3079_v43 }
 0x476   : > { %v3386_v46 = vsel %vm2051_vm12, %v3370_v35, %v3143_v58 }
 0x477   : > { %v8254_v6 = vpop.permute.xlu1 %3018  ;;  %v8256_v36 = vpop.permute.xlu0 %2956 }
 0x479   : > { %4331 = vrot.lane.b32.xlu1 %v7838_v33, %s6275_s15  ;;  %4269 = vrot.lane.b32.xlu0 %v5628_v5, %s6274_s29 }
 0x47b   : > { %v3207_v19 = vpop.permute.xlu1 %3206  ;;  %v3145_v13 = vpop.permute.xlu0 %3144 }
 0x47c   : > { %v3402_v27 = vsel %vm2068_vm13, %v3386_v46, %v3207_v19 }
 0x47d   : > { %v5927_v14 = vpop.f32.mrb[28].mxu1  ;;  %4333 = vrot.lane.b32.xlu1 %v7850_v45, %s6275_s15  ;;  %4145 = vrot.lane.b32.xlu0 %v5596_v8, %s6271_s30  ;;  %v3323_v45 = vsel %vm1983_vm8, %v3307_v16, %v8185_v47  ;;  %v5660_v8 = vld [vmem:[%s6738_s26 + $0x33a] sm:$0xff]  ;;  %v5611_v47 = vld [vmem:[%s6738_s26 + $0x1f2] sm:$0xff] }
 0x47e   : > { %v2296_v33 = vadd.f32 %v5927_v14, %v7872_v24  ;;  %v2290_v18 = vpop.f32.mrb[29].mxu1  ;;  %v3339_v39 = vsel %vm2000_vm9, %v3323_v45, %v8205_v26  ;;  %v3881_v14 = vld [vmem:[%s6738_s26 + $0xb1] sm:$0xff]  ;;  %v5612_v45 = vld [vmem:[%s6738_s26 + $0x1fa] sm:$0xff] }
 0x47f   : > { %v2291_v15 = vadd.f32 %v7872_v24, %v2290_v18  ;;  %v3209_v4 = vpop.permute.xlu1 %3208  ;;  %v8279_v42 = vpop.permute.xlu0 %3020  ;;  %v3355_v43 = vsel %vm2017_vm10, %v3339_v39, %v7633_v25 }
 0x480   : > { %v2322_v29 = vmax.f32 %v2296_v33, 0.0  ;;  %v3371_v58 = vsel %vm2034_vm11, %v3355_v43, %v3081_v20  ;;  %v8311_v33 = vld [vmem:[%s8936_s5] ss:$0 sm:$0xff]  ;;  %v5438_v43 = vld [vmem:[%s6738_s26 + $0x193] sm:$0xff] }
 0x481   : > { %v2321_v5 = vmax.f32 %v2291_v15, 0.0  ;;  %4019 = vrot.lane.b32.xlu1 %v3880_v48, %s6269_s27  ;;  %4395 = vrot.lane.b32.xlu0 %v5659_v51, %s6276_s18  ;;  %v3387_v19 = vsel %vm2051_vm12, %v3371_v58, %v3145_v13  ;;  %v1242_v13 = vadd.f32 %v8311_v33, %v7476_v62  ;;  %v5629_v15 = vld [vmem:[%s6738_s26 + $0x348] sm:$0xff]  ;;  %v1247_v46 = vadd.f32 %v7471_v31, %v8311_v33 }
 0x482   : > { %v3403_v18 = vsel %vm2068_vm13, %v3387_v19, %v3209_v4  ;;  %v1257_v58 = vadd.f32 %v7482_v38, %v8311_v33  ;;  %v1262_v19 = vadd.f32 %v8311_v33, %v7502_v52  ;;  %v1267_v52 = vadd.f32 %v7492_v63, %v8311_v33 }
 0x483   : > { %5951 = vmatprep.mubr.msk.f32.mxu0 %vm1983_vm8, %v2321_v5  ;;  %v8295_v17 = vpop.permute.xlu1 %3082  ;;  %v3271_v26 = vpop.permute.xlu0 %3270  ;;  %v1320_v62 = vmax.f32 %v1242_v13, 0.0  ;;  %v1321_v31 = vmax.f32 %v1247_v46, 0.0 }
 0x484   : > { %v3418_v3 = vsel %vm2085_vm14, %v3402_v27, %v3271_v26  ;;  %5952 = vmatmul.mubr.msk.f32.gmra.mrb[12].mxu0 %vm1983_vm8, %v2322_v29  ;;  %v1252_v29 = vadd.f32 %v8311_v33, %v7484_v32  ;;  %v1323_v13 = vmax.f32 %v1257_v58, 0.0  ;;  %v8979_v58 = vld [vmem:[#allocation18_spill] sm:$0xff] }
 0x485   : > { %4397 = vrot.lane.b32.xlu1 %v5660_v8, %s6276_s18  ;;  %4207 = vrot.lane.b32.xlu0 %v5611_v47, %s6273_s22  ;;  %v5597_v47 = vld [vmem:[%s6738_s26 + $0x208] sm:$0xff] }
 0x486   : > { %6011 = vmatprep.mubr.msk.f32.mxu1 %vm2112_vm15, %v3418_v3  ;;  %v1322_v32 = vmax.f32 %v1252_v29, 0.0 }
 0x487   : > { %v8314_v20 = vpop.permute.xlu1 %4003  ;;  %v3273_v48 = vpop.permute.xlu0 %3272 }
 0x488   : > { %v3419_v51 = vsel %vm2085_vm14, %v3403_v18, %v3273_v48  ;;  %v5630_v18 = vld [vmem:[%s6738_s26 + $0x350] sm:$0xff]  ;;  %v5439_v48 = vld [vmem:[%s6738_s26 + $0x19b] sm:$0xff] }
 0x489   : > { %4083 = vrot.lane.b32.xlu1 %v3896_v57, %s6270_s17  ;;  %4021 = vrot.lane.b32.xlu0 %v3881_v14, %s6269_s27  ;;  %v3308_v57 = vsel %vm1122_vm6, %v5438_v43, %v8222_v53  ;;  %v1324_v53 = vmax.f32 %v1262_v19, 0.0  ;;  %v5662_v43 = vld [vmem:[%s6738_s26 + $0x362] sm:$0xff] }
 0x48a   : > { %v5930_v16 = vpop.f32.mrb[30].mxu1  ;;  %6012 = vmatmul.mubr.msk.f32.gmra.mrb[44].mxu1 %vm2112_vm15, %v3419_v51  ;;  %v3324_v38 = vsel %vm1983_vm8, %v3308_v57, %v8243_v60  ;;  %v1272_v60 = vadd.f32 %v8311_v33, %v7519_v37  ;;  %v5613_v57 = vld [vmem:[%s6738_s26 + $0x21a] sm:$0xff] }
 0x48b   : > { %v2306_v4 = vadd.f32 %v5930_v16, %v7872_v24  ;;  %v2300_v56 = vpop.f32.mrb[31].mxu1  ;;  %v3147_v39 = vpop.permute.xlu1 %3146  ;;  %v3340_v16 = vsel %vm2000_vm9, %v3324_v38, %v8254_v6  ;;  %v3309_v6 = vsel %vm1122_vm6, %v5439_v48, %v8245_v0  ;;  %v8980_v48 = vld [vmem:[#allocation17_spill] sm:$0xff] }
 0x48c   : > { %v2301_v35 = vadd.f32 %v7872_v24, %v2300_v56  ;;  %v8326_v5 = vpop.permute.xlu0 %3084  ;;  %v3897_v24 = vld [vmem:[%s6738_s26 + $0xba] sm:$0xff]  ;;  %v3325_v63 = vsel %vm1983_vm8, %v3309_v6, %v8256_v36  ;;  %v1277_v36 = vadd.f32 %v7512_v9, %v8311_v33 }
 0x48d   : > { %4271 = vrot.lane.b32.xlu1 %v5629_v15, %s6274_s29  ;;  %4209 = vrot.lane.b32.xlu0 %v5612_v45, %s6273_s22  ;;  %v2324_v27 = vmax.f32 %v2306_v4, 0.0  ;;  %v3356_v45 = vsel %vm2017_vm10, %v3340_v16, %v7666_v21  ;;  %v3341_v37 = vsel %vm2000_vm9, %v3325_v63, %v8279_v42  ;;  %v1326_v42 = vmax.f32 %v1272_v60, 0.0  ;;  %v3883_v6 = vld [vmem:[%s6738_s26 + $0xd9] sm:$0xff] }
 0x48e   : > { %v2323_v8 = vmax.f32 %v2301_v35, 0.0  ;;  %v3372_v0 = vsel %vm2034_vm11, %v3356_v45, %v8295_v17  ;;  %v3882_v35 = vld [vmem:[%s6738_s26 + $0xd1] sm:$0xff]  ;;  %v1282_v17 = vadd.f32 %v8311_v33, %v7528_v11  ;;  %v3357_v29 = vsel %vm2017_vm10, %v3341_v37, %v7691_v1  ;;  %v8978_v11 = vld [vmem:[#allocation16_spill] sm:$0xff] }
 0x48f   : > { %v8335_v26 = vpop.permute.xlu1 %4067  ;;  %v3388_v56 = vsel %vm2051_vm12, %v3372_v0, %v3147_v39  ;;  %v8982_v45 = vld [vmem:[#allocation19_spill] sm:$0xff] }
 0x490   : > { %v8339_v3 = vpop.permute.xlu0 %4005  ;;  %5954 = vmatprep.mubr.msk.f32.mxu0 %vm1983_vm8, %v2323_v8  ;;  %v3373_v8 = vsel %vm2034_vm11, %v3357_v29, %v8326_v5  ;;  %v1292_v5 = vadd.f32 %v8311_v33, %v8979_v58  ;;  %v1307_v37 = vadd.f32 %v8982_v45, %v8311_v33  ;;  %v5631_v0 = vld [vmem:[%s6738_s26 + $0x370] sm:$0xff]  ;;  %v8471_v58 = vld [vmem:[%s8936_s5 + $0x2] ss:$0 sm:$0xff] }
 0x491   : > { %5955 = vmatmul.mubr.msk.f32.gmra.mrb[14].mxu0 %vm1983_vm8, %v2324_v27  ;;  %4147 = vrot.lane.b32.xlu1 %v5597_v47, %s6271_s30  ;;  %v1327_v47 = vmax.f32 %v1277_v36, 0.0  ;;  %v1287_v27 = vadd.f32 %v8978_v11, %v8311_v33  ;;  %v8983_v36 = vld [vmem:[#allocation22_spill] sm:$0xff] }
 0x492   : > { %4085 = vrot.lane.b32.xlu0 %v3897_v24, %s6270_s17  ;;  %5959 = vmatprep.mubr.msk.f32.mxu0 %vm1983_vm8, %v1320_v62  ;;  %v5661_v62 = vld [vmem:[%s6738_s26 + $0x35a] sm:$0xff]  ;;  %v1330_v16 = vmax.f32 %v1292_v5, 0.0  ;;  %v5599_v29 = vld [vmem:[%s6738_s26 + $0x230] sm:$0xff] }
 0x493   : > { %v3211_v14 = vpop.permute.xlu1 %3210  ;;  %v1329_v38 = vmax.f32 %v1287_v27, 0.0  ;;  %v5632_v27 = vld [vmem:[%s6738_s26 + $0x378] sm:$0xff] }
 0x494   : > { %v3149_v51 = vpop.permute.xlu0 %3148  ;;  %v5600_v5 = vld [vmem:[%s6738_s26 + $0x238] sm:$0xff] }
 0x495   : > { %4335 = vrot.lane.b32.xlu1 %v7921_v40, %s6275_s15  ;;  %5960 = vmatmul.mubr.msk.f32.vlgmr.msra.gmra.mrb[0].mxu0 %vm1983_vm8, %v1321_v31  ;;  %v5598_v40 = vld [vmem:[%s6738_s26 + $0x210] sm:$0xff]  ;;  %v3389_v24 = vsel %vm2051_vm12, %v3373_v8, %v3149_v51  ;;  %v1328_v31 = vmax.f32 %v1282_v17, 0.0  ;;  %v1297_v51 = vadd.f32 %v8980_v48, %v8311_v33  ;;  %v3899_v8 = vld [vmem:[%s6738_s26 + $0xe2] sm:$0xff] }
 0x496   : > { %4273 = vrot.lane.b32.xlu0 %v5630_v18, %s6274_s29  ;;  %5962 = vmatprep.mubr.msk.f32.mxu0 %vm1983_vm8, %v1322_v32 }
 0x497   : > { %v8369_v15 = vpop.permute.xlu1 %4131  ;;  %6018 = vmatpush3.msra.mxu0 %v8090_v7  ;;  %v1325_v7 = vmax.f32 %v1267_v52, 0.0  ;;  %v8981_v52 = vld [vmem:[#allocation20_spill] sm:$0xff]  ;;  %v1331_v63 = vmax.f32 %v1297_v51, 0.0 }
 0x498   : > { %v8377_v4 = vpop.permute.xlu0 %4069 }
 0x499   : > { %4337 = vrot.lane.b32.xlu1 %v7934_v55, %s6275_s15  ;;  %5963 = vmatmul.mubr.msk.f32.gmra.mrb[2].mxu0 %vm1983_vm8, %v1323_v13  ;;  %v3404_v55 = vsel %vm2068_vm13, %v3388_v56, %v3211_v14  ;;  %v3898_v13 = vld [vmem:[%s6738_s26 + $0xda] sm:$0xff]  ;;  %v1312_v56 = vadd.f32 %v8311_v33, %v8983_v36 }
 0x49a   : > { %4149 = vrot.lane.b32.xlu0 %v5598_v40, %s6271_s30  ;;  %5965 = vmatprep.mubr.msk.f32.mxu0 %vm1983_vm8, %v1324_v53  ;;  %v1302_v53 = vadd.f32 %v8311_v33, %v8981_v52  ;;  %v5663_v52 = vld [vmem:[%s6738_s26 + $0x382] sm:$0xff] }
 0x49b   : > { %v3275_v46 = vpop.permute.xlu1 %3274 }
 0x49c   : > { %v3420_v9 = vsel %vm2085_vm14, %v3404_v55, %v3275_v46  ;;  %v3213_v39 = vpop.permute.xlu0 %3212  ;;  %v1333_v55 = vmax.f32 %v1307_v37, 0.0  ;;  %v8984_v46 = vld [vmem:[#allocation21_spill] sm:$0xff]  ;;  %v5664_v37 = vld [vmem:[%s6738_s26 + $0x38a] sm:$0xff] }
 0x49d   : > { %4023 = vrot.lane.b32.xlu1 %v3882_v35, %s6269_s27  ;;  %6014 = vmatprep.mubr.msk.f32.mxu1 %vm2112_vm15, %v3420_v9  ;;  %v3405_v32 = vsel %vm2068_vm13, %v3389_v24, %v3213_v39  ;;  %v1334_v9 = vmax.f32 %v1312_v56, 0.0 }
 0x49e   : > { %4399 = vrot.lane.b32.xlu0 %v5661_v62, %s6276_s18  ;;  %5966 = vmatmul.mubr.msk.f32.gmra.mrb[4].mxu0 %vm1983_vm8, %v1325_v7  ;;  %v1332_v7 = vmax.f32 %v1302_v53, 0.0  ;;  %v1317_v62 = vadd.f32 %v8984_v46, %v8311_v33 }
 0x49f   : > { %v3277_v19 = vpop.permute.xlu1 %3276  ;;  %5968 = vmatprep.mubr.msk.f32.mxu0 %vm1983_vm8, %v1326_v42  ;;  %v5614_v42 = vld [vmem:[%s6738_s26 + $0x222] sm:$0xff] }
 0x4a0   : > { %v3421_v14 = vsel %vm2085_vm14, %v3405_v32, %v3277_v19  ;;  %v8415_v18 = vpop.permute.xlu0 %4133  ;;  %v1335_v11 = vmax.f32 %v1317_v62, 0.0  ;;  %v3857_v19 = vld [vmem:[%s6738_s26 + $0x8] sm:$0xff] }
 0x4a1   : > { %4401 = vrot.lane.b32.xlu1 %v5662_v43, %s6276_s18  ;;  %6015 = vmatmul.mubr.msk.f32.gmra.mrb[46].mxu1 %vm2112_vm15, %v3421_v14  ;;  %v3856_v43 = vld [vmem:[%s6738_s26] sm:$0xff] }
 0x4a2   : > { %4211 = vrot.lane.b32.xlu0 %v5613_v57, %s6273_s22  ;;  %5969 = vmatmul.mubr.msk.f32.gmra.mrb[6].mxu0 %vm1983_vm8, %v1327_v47  ;;  %v4435_v32 = vsel %vm1122_vm6, %v3856_v43, %v8314_v20  ;;  %v4436_v20 = vsel %vm1122_vm6, %v3857_v19, %v8339_v3  ;;  %v3885_v62 = vld [vmem:[%s6738_s26 + $0x101] sm:$0xff] }
 0x4a3   : > { %v8426_v60 = vpop.permute.xlu1 %4195  ;;  %5971 = vmatprep.mubr.msk.f32.mxu0 %vm1983_vm8, %v1328_v31 }
 0x4a4   : > { %v8430_v40 = vpop.permute.xlu0 %4007 }
 0x4a5   : > { %4087 = vrot.lane.b32.xlu1 %v3898_v13, %s6270_s17  ;;  %v3884_v13 = vld [vmem:[%s6738_s26 + $0xf9] sm:$0xff] }
 0x4a6   : > { %4025 = vrot.lane.b32.xlu0 %v3883_v6, %s6269_s27  ;;  %5972 = vmatmul.mubr.msk.f32.gmra.mrb[8].mxu0 %vm1983_vm8, %v1329_v38 }
 0x4a7   : > { %v8440_v35 = vpop.permute.xlu1 %4071  ;;  %5974 = vmatprep.mubr.msk.f32.mxu0 %vm1983_vm8, %v1330_v16 }
 0x4a8   : > { %v8444_v17 = vpop.permute.xlu0 %4009 }
 0x4a9   : > { %4275 = vrot.lane.b32.xlu1 %v5631_v0, %s6274_s29  ;;  %v5615_v0 = vld [vmem:[%s6738_s26 + $0x242] sm:$0xff] }
 0x4aa   : > { %4213 = vrot.lane.b32.xlu0 %v5614_v42, %s6273_s22  ;;  %5975 = vmatmul.mubr.msk.f32.gmra.mrb[10].mxu0 %vm1983_vm8, %v1331_v63 }
 0x4ab   : > { %v4260_v39 = vpop.permute.xlu1 %4259  ;;  %5977 = vmatprep.mubr.msk.f32.mxu0 %vm1983_vm8, %v1332_v7 }
 0x4ac   : > { %v4198_v47 = vpop.permute.xlu0 %4197 }
 0x4ad   : > { %4151 = vrot.lane.b32.xlu1 %v5599_v29, %s6271_s30 }
 0x4ae   : > { %4089 = vrot.lane.b32.xlu0 %v3899_v8, %s6270_s17  ;;  %5978 = vmatmul.mubr.msk.f32.gmra.mrb[12].mxu0 %vm1983_vm8, %v1333_v55 }
 0x4af   : > { %v8457_v33 = vpop.permute.xlu1 %4135  ;;  %5980 = vmatprep.mubr.msk.f32.mxu0 %vm1983_vm8, %v1334_v9 }
 0x4b0   : > { %v8461_v24 = vpop.permute.xlu0 %4073 }
 0x4b1   : > { %4339 = vrot.lane.b32.xlu1 %v7999_v54, %s6275_s15  ;;  %v4451_v54 = vsel %vm1983_vm8, %v4435_v32, %v8335_v26  ;;  %v5649_v32 = vld [vmem:[%s6738_s26 + $0x3a1] sm:$0xff] }
 0x4b2   : > { %4277 = vrot.lane.b32.xlu0 %v5632_v27, %s6274_s29  ;;  %5981 = vmatmul.mubr.msk.f32.gmra.mrb[14].mxu0 %vm1983_vm8, %v1335_v11  ;;  %v4467_v38 = vsel %vm2000_vm9, %v4451_v54, %v8369_v15  ;;  %v5601_v27 = vld [vmem:[%s6738_s26 + $0x258] sm:$0xff] }
 0x4b3   : > { %v4324_v31 = vpop.permute.xlu1 %4323  ;;  %v4483_v6 = vsel %vm2017_vm10, %v4467_v38, %v7196_v10  ;;  %v5650_v38 = vld [vmem:[%s6738_s26 + $0x3a9] sm:$0xff] }
 0x4b4   : > { %v4262_v57 = vpop.permute.xlu0 %4261  ;;  %v4499_v3 = vsel %vm2034_vm11, %v4483_v6, %v8426_v60 }
 0x4b5   : > { %v5995_v14 = vpop.f32.mrb[32].mxu1  ;;  %4341 = vrot.lane.b32.xlu1 %v8019_v44, %s6275_s15  ;;  %v4452_v44 = vsel %vm1983_vm8, %v4436_v20, %v8377_v4  ;;  %v4515_v4 = vsel %vm2051_vm12, %v4499_v3, %v4260_v39  ;;  %v5633_v39 = vld [vmem:[%s6738_s26 + $0x398] sm:$0xff]  ;;  %v3859_v20 = vld [vmem:[%s6738_s26 + $0x30] sm:$0xff] }
 0x4b6   : > { %v3555_v48 = vadd.f32 %v5995_v14, %v8471_v58  ;;  %4153 = vrot.lane.b32.xlu0 %v5600_v5, %s6271_s30  ;;  %v3549_v51 = vpop.f32.mrb[33].mxu1  ;;  %v4468_v15 = vsel %vm2000_vm9, %v4452_v44, %v8415_v18  ;;  %v4531_v7 = vsel %vm2068_vm13, %v4515_v4, %v4324_v31  ;;  %v3901_v31 = vld [vmem:[%s6738_s26 + $0x10a] sm:$0xff] }
 0x4b7   : > { %v3550_v16 = vadd.f32 %v8471_v58, %v3549_v51  ;;  %v4326_v26 = vpop.permute.xlu1 %4325  ;;  %v4484_v10 = vsel %vm2017_vm10, %v4468_v15, %v7194_v59  ;;  %v3900_v59 = vld [vmem:[%s6738_s26 + $0x102] sm:$0xff] }
 0x4b8   : > { %v8492_v53 = vpop.permute.xlu0 %4137  ;;  %v3629_v45 = vmax.f32 %v3555_v48, 0.0  ;;  %v4500_v60 = vsel %vm2034_vm11, %v4484_v10, %v4198_v47  ;;  %v5616_v47 = vld [vmem:[%s6738_s26 + $0x24a] sm:$0xff]  ;;  %v5602_v51 = vld [vmem:[%s6738_s26 + $0x260] sm:$0xff] }
 0x4b9   : > { %v3628_v63 = vmax.f32 %v3550_v16, 0.0  ;;  %4027 = vrot.lane.b32.xlu1 %v3884_v13, %s6269_s27  ;;  %v4516_v42 = vsel %vm2051_vm12, %v4500_v60, %v4262_v57  ;;  %v5634_v57 = vld [vmem:[%s6738_s26 + $0x3a0] sm:$0xff]  ;;  %v3858_v14 = vld [vmem:[%s6738_s26 + $0x28] sm:$0xff] }
 0x4ba   : > { %4403 = vrot.lane.b32.xlu0 %v5663_v52, %s6276_s18  ;;  %v4532_v55 = vsel %vm2068_vm13, %v4516_v42, %v4326_v26  ;;  %v4437_v13 = vsel %vm1122_vm6, %v3858_v14, %v8430_v40  ;;  %v4438_v40 = vsel %vm1122_vm6, %v3859_v20, %v8444_v17  ;;  %v3903_v14 = vld [vmem:[%s6738_s26 + $0x132] sm:$0xff] }
 0x4bb   : > { %6019 = vmatprep.mubr.msk.f32.mxu0 %vm1983_vm8, %v3628_v63  ;;  %v8505_v18 = vpop.permute.xlu1 %4011  ;;  %v4453_v26 = vsel %vm1983_vm8, %v4437_v13, %v8440_v35  ;;  %v3886_v63 = vld [vmem:[%s6738_s26 + $0x121] sm:$0xff] }
 0x4bc   : > { %v4388_v36 = vpop.permute.xlu0 %4387  ;;  %6020 = vmatmul.mubr.msk.f32.vlgmr.msra.gmra.mrb[0].mxu0 %vm1983_vm8, %v3629_v45  ;;  %v4469_v44 = vsel %vm2000_vm9, %v4453_v26, %v8457_v33  ;;  %v5665_v45 = vld [vmem:[%s6738_s26 + $0x3aa] sm:$0xff] }
 0x4bd   : > { %v4547_v56 = vsel %vm2085_vm14, %v4531_v7, %v4388_v36  ;;  %4405 = vrot.lane.b32.xlu1 %v5664_v37, %s6276_s18  ;;  %v4454_v37 = vsel %vm1983_vm8, %v4438_v40, %v8461_v24  ;;  %v5666_v36 = vld [vmem:[%s6738_s26 + $0x3b2] sm:$0xff]  ;;  %v5636_v13 = vld [vmem:[%s6738_s26 + $0x3c8] sm:$0xff] }
 0x4be   : > { %4215 = vrot.lane.b32.xlu0 %v5615_v0, %s6273_s22  ;;  %6053 = vmatprep.mubr.msk.f32.mxu1 %vm2112_vm15, %v4547_v56  ;;  %v4470_v33 = vsel %vm2000_vm9, %v4454_v37, %v8492_v53  ;;  %v4485_v0 = vsel %vm2017_vm10, %v4469_v44, %v7221_v61  ;;  %v5617_v53 = vld [vmem:[%s6738_s26 + $0x26a] sm:$0xff] }
 0x4bf   : > { %v4390_v46 = vpop.permute.xlu1 %4389  ;;  %v4486_v61 = vsel %vm2017_vm10, %v4470_v33, %v7245_v28  ;;  %v3902_v28 = vld [vmem:[%s6738_s26 + $0x12a] sm:$0xff]  ;;  %v5619_v33 = vld [vmem:[%s6738_s26 + $0x292] sm:$0xff] }
 0x4c0   : > { %v4548_v29 = vsel %vm2085_vm14, %v4532_v55, %v4390_v46  ;;  %v4200_v9 = vpop.permute.xlu0 %4199  ;;  %v5652_v26 = vld [vmem:[%s6738_s26 + $0x3d1] sm:$0xff]  ;;  %v5604_v44 = vld [vmem:[%s6738_s26 + $0x288] sm:$0xff] }
 0x4c1   : > { %4091 = vrot.lane.b32.xlu1 %v3900_v59, %s6270_s17  ;;  %6054 = vmatmul.mubr.msk.f32.vlgmr.msra.gmra.mrb[48].mxu1 %vm2112_vm15, %v4548_v29  ;;  %v4501_v17 = vsel %vm2034_vm11, %v4485_v0, %v4200_v9  ;;  %v3887_v9 = vld [vmem:[%s6738_s26 + $0x129] sm:$0xff] }
 0x4c2   : > { %4029 = vrot.lane.b32.xlu0 %v3885_v62, %s6269_s27 }
 0x4c3   : > { %v8526_v8 = vpop.permute.xlu1 %4075 }
 0x4c4   : > { %v8529_v11 = vpop.permute.xlu0 %4013 }
 0x4c5   : > { %4279 = vrot.lane.b32.xlu1 %v5633_v39, %s6274_s29 }
 0x4c6   : > { %4217 = vrot.lane.b32.xlu0 %v5616_v47, %s6273_s22 }
 0x4c7   : > { %v4264_v43 = vpop.permute.xlu1 %4263 }
 0x4c8   : > { %v4202_v5 = vpop.permute.xlu0 %4201  ;;  %v4517_v24 = vsel %vm2051_vm12, %v4501_v17, %v4264_v43 }
 0x4c9   : > { %4155 = vrot.lane.b32.xlu1 %v5601_v27, %s6271_s30  ;;  %v4502_v59 = vsel %vm2034_vm11, %v4486_v61, %v4202_v5  ;;  %v5635_v27 = vld [vmem:[%s6738_s26 + $0x3c0] sm:$0xff] }
 0x4ca   : > { %4093 = vrot.lane.b32.xlu0 %v3901_v31, %s6270_s17  ;;  %v5618_v31 = vld [vmem:[%s6738_s26 + $0x272] sm:$0xff]  ;;  %v5620_v61 = vld [vmem:[%s6738_s26 + $0x29a] sm:$0xff] }
 0x4cb   : > { %v8538_v19 = vpop.permute.xlu1 %4139 }
 0x4cc   : > { %v8541_v54 = vpop.permute.xlu0 %4077 }
 0x4cd   : > { %4343 = vrot.lane.b32.xlu1 %v5649_v32, %s6275_s15  ;;  %v5603_v32 = vld [vmem:[%s6738_s26 + $0x280] sm:$0xff] }
 0x4ce   : > { %4281 = vrot.lane.b32.xlu0 %v5634_v57, %s6274_s29 }
 0x4cf   : > { %v4328_v48 = vpop.permute.xlu1 %4327 }
 0x4d0   : > { %v4266_v16 = vpop.permute.xlu0 %4265  ;;  %v4533_v56 = vsel %vm2068_vm13, %v4517_v24, %v4328_v48  ;;  %v5651_v48 = vld [vmem:[%s6738_s26 + $0x3c9] sm:$0xff] }
 0x4d1   : > { %v5998_v52 = vpop.f32.mrb[34].mxu1  ;;  %4345 = vrot.lane.b32.xlu1 %v5650_v38, %s6275_s15  ;;  %v4518_v46 = vsel %vm2051_vm12, %v4502_v59, %v4266_v16  ;;  %v3860_v16 = vld [vmem:[%s6738_s26 + $0x50] sm:$0xff] }
 0x4d2   : > { %v3565_v15 = vadd.f32 %v5998_v52, %v8471_v58  ;;  %4157 = vrot.lane.b32.xlu0 %v5602_v51, %s6271_s30  ;;  %v3559_v6 = vpop.f32.mrb[35].mxu1 }
 0x4d3   : > { %v3560_v3 = vadd.f32 %v8471_v58, %v3559_v6  ;;  %v4330_v35 = vpop.permute.xlu1 %4329  ;;  %v3861_v6 = vld [vmem:[%s6738_s26 + $0x58] sm:$0xff] }
 0x4d4   : > { %v8565_v4 = vpop.permute.xlu0 %4141  ;;  %v3631_v7 = vmax.f32 %v3565_v15, 0.0  ;;  %v4534_v62 = vsel %vm2068_vm13, %v4518_v46, %v4330_v35  ;;  %v4439_v15 = vsel %vm1122_vm6, %v3860_v16, %v8505_v18  ;;  %v4440_v18 = vsel %vm1122_vm6, %v3861_v6, %v8529_v11  ;;  %v3863_v6 = vld [vmem:[%s6738_s26 + $0x80] sm:$0xff] }
 0x4d5   : > { %v3630_v10 = vmax.f32 %v3560_v3, 0.0  ;;  %4031 = vrot.lane.b32.xlu1 %v3886_v63, %s6269_s27  ;;  %v4455_v40 = vsel %vm1983_vm8, %v4439_v15, %v8526_v8  ;;  %v4456_v17 = vsel %vm1983_vm8, %v4440_v18, %v8541_v54 }
 0x4d6   : > { %4407 = vrot.lane.b32.xlu0 %v5665_v45, %s6276_s18  ;;  %v4471_v35 = vsel %vm2000_vm9, %v4455_v40, %v8538_v19  ;;  %v4472_v19 = vsel %vm2000_vm9, %v4456_v17, %v8565_v4  ;;  %v5668_v4 = vld [vmem:[%s6738_s26 + $0x3da] sm:$0xff] }
 0x4d7   : > { %6022 = vmatprep.mubr.msk.f32.mxu0 %vm1983_vm8, %v3630_v10  ;;  %v8577_v60 = vpop.permute.xlu1 %4015  ;;  %v5667_v10 = vld [vmem:[%s6738_s26 + $0x3d2] sm:$0xff] }
 0x4d8   : > { %v4392_v42 = vpop.permute.xlu0 %4391  ;;  %6023 = vmatmul.mubr.msk.f32.gmra.mrb[2].mxu0 %vm1983_vm8, %v3631_v7 }
 0x4d9   : > { %v4549_v55 = vsel %vm2085_vm14, %v4533_v56, %v4392_v42  ;;  %4409 = vrot.lane.b32.xlu1 %v5666_v36, %s6276_s18  ;;  %v4487_v36 = vsel %vm2017_vm10, %v4471_v35, %v7275_v49  ;;  %v4488_v49 = vsel %vm2017_vm10, %v4472_v19, %v7302_v50  ;;  %v5638_v50 = vld [vmem:[%s6738_s26 + $0x3f0] sm:$0xff] }
 0x4da   : > { %4219 = vrot.lane.b32.xlu0 %v5617_v53, %s6273_s22  ;;  %6056 = vmatprep.mubr.msk.f32.mxu1 %vm2112_vm15, %v4549_v55 }
 0x4db   : > { %v4394_v29 = vpop.permute.xlu1 %4393 }
 0x4dc   : > { %v4550_v39 = vsel %vm2085_vm14, %v4534_v62, %v4394_v29  ;;  %v4204_v47 = vpop.permute.xlu0 %4203 }
 0x4dd   : > { %4095 = vrot.lane.b32.xlu1 %v3902_v28, %s6270_s17  ;;  %6057 = vmatmul.mubr.msk.f32.gmra.mrb[50].mxu1 %vm2112_vm15, %v4550_v39  ;;  %v4503_v11 = vsel %vm2034_vm11, %v4487_v36, %v4204_v47 }
 0x4de   : > { %4033 = vrot.lane.b32.xlu0 %v3887_v9, %s6269_s27  ;;  %v5637_v9 = vld [vmem:[%s6738_s26 + $0x3e8] sm:$0xff] }
 0x4df   : > { %v8598_v43 = vpop.permute.xlu1 %4079 }
 0x4e0   : > { %v8601_v5 = vpop.permute.xlu0 %4017 }
 0x4e1   : > { %4283 = vrot.lane.b32.xlu1 %v5635_v27, %s6274_s29  ;;  %v5654_v27 = vld [vmem:[%s6738_s26 + $0x3f9] sm:$0xff] }
 0x4e2   : > { %4221 = vrot.lane.b32.xlu0 %v5618_v31, %s6273_s22 }
 0x4e3   : > { %v4268_v57 = vpop.permute.xlu1 %4267 }
 0x4e4   : > { %v4206_v38 = vpop.permute.xlu0 %4205  ;;  %v4519_v56 = vsel %vm2051_vm12, %v4503_v11, %v4268_v57 }
 0x4e5   : > { %4159 = vrot.lane.b32.xlu1 %v5603_v32, %s6271_s30  ;;  %v4504_v55 = vsel %vm2034_vm11, %v4488_v49, %v4206_v38  ;;  %v5653_v32 = vld [vmem:[%s6738_s26 + $0x3f1] sm:$0xff] }
 0x4e6   : > { %4097 = vrot.lane.b32.xlu0 %v3903_v14, %s6270_s17  ;;  %v5670_v14 = vld [vmem:[%s6738_s26 + $0x402] sm:$0xff] }
 0x4e7   : > { %v8610_v51 = vpop.permute.xlu1 %4143 }
 0x4e8   : > { %v8613_v20 = vpop.permute.xlu0 %4081 }
 0x4e9   : > { %4347 = vrot.lane.b32.xlu1 %v5651_v48, %s6275_s15  ;;  %v5669_v48 = vld [vmem:[%s6738_s26 + $0x3fa] sm:$0xff] }
 0x4ea   : > { %4285 = vrot.lane.b32.xlu0 %v5636_v13, %s6274_s29 }
 0x4eb   : > { %v4332_v52 = vpop.permute.xlu1 %4331 }
 0x4ec   : > { %v4270_v63 = vpop.permute.xlu0 %4269  ;;  %v4535_v42 = vsel %vm2068_vm13, %v4519_v56, %v4332_v52  ;;  %v3862_v52 = vld [vmem:[%s6738_s26 + $0x78] sm:$0xff] }
 0x4ed   : > { %v6001_v3 = vpop.f32.mrb[36].mxu1  ;;  %4349 = vrot.lane.b32.xlu1 %v5652_v26, %s6275_s15  ;;  %v4520_v28 = vsel %vm2051_vm12, %v4504_v55, %v4270_v63  ;;  %v4441_v15 = vsel %vm1122_vm6, %v3862_v52, %v8577_v60 }
 0x4ee   : > { %v3575_v45 = vadd.f32 %v6001_v3, %v8471_v58  ;;  %4161 = vrot.lane.b32.xlu0 %v5604_v44, %s6271_s30  ;;  %v3569_v37 = vpop.f32.mrb[37].mxu1  ;;  %v4457_v40 = vsel %vm1983_vm8, %v4441_v15, %v8598_v43 }
 0x4ef   : > { %v3570_v0 = vadd.f32 %v8471_v58, %v3569_v37  ;;  %v4334_v8 = vpop.permute.xlu1 %4333  ;;  %v4473_v35 = vsel %vm2000_vm9, %v4457_v40, %v8610_v51 }
 0x4f0   : > { %v4146_v7 = vpop.permute.xlu0 %4145  ;;  %v3633_v53 = vmax.f32 %v3575_v45, 0.0  ;;  %v4536_v62 = vsel %vm2068_vm13, %v4520_v28, %v4334_v8  ;;  %v4489_v43 = vsel %vm2017_vm10, %v4473_v35, %v7336_v2 }
 0x4f1   : > { %v3632_v24 = vmax.f32 %v3570_v0, 0.0  ;;  %4223 = vrot.lane.b32.xlu1 %v5619_v33, %s6273_s22  ;;  %v4442_v33 = vsel %vm1122_vm6, %v3863_v6, %v8601_v5 }
 0x4f2   : > { %4411 = vrot.lane.b32.xlu0 %v5667_v10, %s6276_s18  ;;  %v4458_v60 = vsel %vm1983_vm8, %v4442_v33, %v8613_v20 }
 0x4f3   : > { %6025 = vmatprep.mubr.msk.f32.mxu0 %vm1983_vm8, %v3632_v24  ;;  %v8647_v54 = vpop.permute.xlu1 %4019  ;;  %v4474_v10 = vsel %vm2000_vm9, %v4458_v60, %v4146_v7 }
 0x4f4   : > { %v4396_v59 = vpop.permute.xlu0 %4395  ;;  %6026 = vmatmul.mubr.msk.f32.gmra.mrb[4].mxu0 %vm1983_vm8, %v3633_v53  ;;  %v4490_v24 = vsel %vm2017_vm10, %v4474_v10, %v7362_v41 }
 0x4f5   : > { %v4551_v46 = vsel %vm2085_vm14, %v4535_v42, %v4396_v59  ;;  %4225 = vrot.lane.b32.xlu1 %v5620_v61, %s6273_s22  ;;  %v4785_v59 = vld [vmem:[%s8937_s6 + $0x18] sm:$0xff] }
 0x4f6   : > { %4413 = vrot.lane.b32.xlu0 %v5668_v4, %s6276_s18  ;;  %6059 = vmatprep.mubr.msk.f32.mxu1 %vm2112_vm15, %v4551_v46 }
 0x4f7   : > { %v4398_v29 = vpop.permute.xlu1 %4397  ;;  %6077 = vmatprep.subr.mxu0 %v4785_v59 }
 0x4f8   : > { %v4552_v39 = vsel %vm2085_vm14, %v4536_v62, %v4398_v29  ;;  %v4208_v47 = vpop.permute.xlu0 %4207  ;;  %6078 = vmatpush3.msra.mxu0 %v4785_v59  ;;  %v3864_v62 = vld [vmem:[%s6738_s26 + $0xa0] sm:$0xff] }
 0x4f9   : > { %4289 = vrot.lane.b32.xlu1 %v5638_v50, %s6274_s29  ;;  %6060 = vmatmul.mubr.msk.f32.gmra.mrb[52].mxu1 %vm2112_vm15, %v4552_v39  ;;  %v4505_v51 = vsel %vm2034_vm11, %v4489_v43, %v4208_v47  ;;  %v3865_v39 = vld [vmem:[%s6738_s26 + $0xa8] sm:$0xff] }
 0x4fa   : > { %4287 = vrot.lane.b32.xlu0 %v5637_v9, %s6274_s29  ;;  %v4443_v9 = vsel %vm1122_vm6, %v3864_v62, %v8647_v54 }
 0x4fb   : > { %v8668_v31 = vpop.permute.xlu1 %4083 }
 0x4fc   : > { %v8671_v57 = vpop.permute.xlu0 %4021 }
 0x4fd   : > { %4353 = vrot.lane.b32.xlu1 %v5654_v27, %s6275_s15  ;;  %v4459_v27 = vsel %vm1983_vm8, %v4443_v9, %v8668_v31 }
 0x4fe   : > { %4351 = vrot.lane.b32.xlu0 %v5653_v32, %s6275_s15 }
 0x4ff   : > { %v4272_v38 = vpop.permute.xlu1 %4271 }
 0x500   : > { %v4210_v13 = vpop.permute.xlu0 %4209  ;;  %v4521_v36 = vsel %vm2051_vm12, %v4505_v51, %v4272_v38 }
 0x501   : > { %4417 = vrot.lane.b32.xlu1 %v5670_v14, %s6276_s18  ;;  %v4506_v2 = vsel %vm2034_vm11, %v4490_v24, %v4210_v13  ;;  %v4444_v13 = vsel %vm1122_vm6, %v3865_v39, %v8671_v57 }
 0x502   : > { %4415 = vrot.lane.b32.xlu0 %v5669_v48, %s6276_s18 }
 0x503   : > { %v4148_v16 = vpop.permute.xlu1 %4147 }
 0x504   : > { %v4086_v26 = vpop.permute.xlu0 %4085  ;;  %v4475_v14 = vsel %vm2000_vm9, %v4459_v27, %v4148_v16 }
 0x505   : > { %v4460_v15 = vsel %vm1983_vm8, %v4444_v13, %v4086_v26  ;;  %v4491_v31 = vsel %vm2017_vm10, %v4475_v14, %v7399_v23 }
 0x507   : > { %v4336_v44 = vpop.permute.xlu1 %4335 }
 0x508   : > { %v4274_v63 = vpop.permute.xlu0 %4273  ;;  %v4537_v20 = vsel %vm2068_vm13, %v4521_v36, %v4336_v44  ;;  %v3866_v36 = vld [vmem:[%s6738_s26 + $0xc8] sm:$0xff] }
 0x509   : > { %v6004_v3 = vpop.f32.mrb[38].mxu1  ;;  %v4522_v53 = vsel %vm2051_vm12, %v4506_v2, %v4274_v63 }
 0x50a   : > { %v3585_v45 = vadd.f32 %v6004_v3, %v8471_v58  ;;  %v3579_v37 = vpop.f32.mrb[39].mxu1 }
 0x50b   : > { %v3580_v18 = vadd.f32 %v8471_v58, %v3579_v37  ;;  %v4338_v0 = vpop.permute.xlu1 %4337 }
 0x50c   : > { %v4150_v8 = vpop.permute.xlu0 %4149  ;;  %v3635_v19 = vmax.f32 %v3585_v45, 0.0  ;;  %v4538_v61 = vsel %vm2068_vm13, %v4522_v53, %v4338_v0 }
 0x50d   : > { %v3634_v17 = vmax.f32 %v3580_v18, 0.0  ;;  %v4476_v6 = vsel %vm2000_vm9, %v4460_v15, %v4150_v8 }
 0x50e   : > { %v4492_v35 = vsel %vm2017_vm10, %v4476_v6, %v7443_v30 }
 0x50f   : > { %6028 = vmatprep.mubr.msk.f32.mxu0 %vm1983_vm8, %v3634_v17  ;;  %v8699_v5 = vpop.permute.xlu1 %4023 }
 0x510   : > { %v4400_v11 = vpop.permute.xlu0 %4399  ;;  %6029 = vmatmul.mubr.msk.f32.gmra.mrb[6].mxu0 %vm1983_vm8, %v3635_v19 }
 0x511   : > { %v4553_v7 = vsel %vm2085_vm14, %v4537_v20, %v4400_v11  ;;  %v4445_v20 = vsel %vm1122_vm6, %v3866_v36, %v8699_v5  ;;  %v3867_v11 = vld [vmem:[%s6738_s26 + $0xd0] sm:$0xff] }
 0x512   : > { %6062 = vmatprep.mubr.msk.f32.mxu1 %vm2112_vm15, %v4553_v7 }
 0x513   : > { %v4402_v56 = vpop.permute.xlu1 %4401 }
 0x514   : > { %v4554_v41 = vsel %vm2085_vm14, %v4538_v61, %v4402_v56  ;;  %v4212_v4 = vpop.permute.xlu0 %4211 }
 0x515   : > { %6063 = vmatmul.mubr.msk.f32.gmra.mrb[54].mxu1 %vm2112_vm15, %v4554_v41  ;;  %v4507_v16 = vsel %vm2034_vm11, %v4491_v31, %v4212_v4 }
 0x517   : > { %v4088_v49 = vpop.permute.xlu1 %4087 }
 0x518   : > { %v4026_v42 = vpop.permute.xlu0 %4025  ;;  %v4461_v7 = vsel %vm1983_vm8, %v4445_v20, %v4088_v49 }
 0x519   : > { %v4446_v4 = vsel %vm1122_vm6, %v3867_v11, %v4026_v42 }
 0x51b   : > { %v4276_v55 = vpop.permute.xlu1 %4275 }
 0x51c   : > { %v4214_v46 = vpop.permute.xlu0 %4213  ;;  %v4523_v3 = vsel %vm2051_vm12, %v4507_v16, %v4276_v55 }
 0x51d   : > { %v4508_v23 = vsel %vm2034_vm11, %v4492_v35, %v4214_v46 }
 0x51f   : > { %v4152_v28 = vpop.permute.xlu1 %4151 }
 0x520   : > { %v4090_v50 = vpop.permute.xlu0 %4089  ;;  %v4477_v61 = vsel %vm2000_vm9, %v4461_v7, %v4152_v28 }
 0x521   : > { %v4462_v46 = vsel %vm1983_vm8, %v4446_v4, %v4090_v50  ;;  %v3870_v4 = vld [vmem:[%s6738_s26 + $0x118] sm:$0xff] }
 0x523   : > { %v4340_v29 = vpop.permute.xlu1 %4339 }
 0x524   : > { %v4278_v47 = vpop.permute.xlu0 %4277  ;;  %v4539_v26 = vsel %vm2068_vm13, %v4523_v3, %v4340_v29  ;;  %v4493_v29 = vsel %vm2017_vm10, %v4477_v61, %v7506_v22  ;;  %v3871_v61 = vld [vmem:[%s6738_s26 + $0x120] sm:$0xff] }
 0x525   : > { %v6007_v32 = vpop.f32.mrb[40].mxu1  ;;  %v4524_v33 = vsel %vm2051_vm12, %v4508_v23, %v4278_v47 }
 0x526   : > { %v3595_v38 = vadd.f32 %v6007_v32, %v8471_v58  ;;  %v3589_v48 = vpop.f32.mrb[41].mxu1 }
 0x527   : > { %v3590_v52 = vadd.f32 %v8471_v58, %v3589_v48  ;;  %v4342_v44 = vpop.permute.xlu1 %4341 }
 0x528   : > { %v4154_v54 = vpop.permute.xlu0 %4153  ;;  %v3637_v40 = vmax.f32 %v3595_v38, 0.0  ;;  %v4540_v18 = vsel %vm2068_vm13, %v4524_v33, %v4342_v44 }
 0x529   : > { %v3636_v63 = vmax.f32 %v3590_v52, 0.0  ;;  %v4478_v5 = vsel %vm2000_vm9, %v4462_v46, %v4154_v54 }
 0x52a   : > { %v4494_v47 = vsel %vm2017_vm10, %v4478_v5, %v7550_v34 }
 0x52b   : > { %6031 = vmatprep.mubr.msk.f32.mxu0 %vm1983_vm8, %v3636_v63  ;;  %v8733_v57 = vpop.permute.xlu1 %4027  ;;  %v3868_v63 = vld [vmem:[%s6738_s26 + $0xf0] sm:$0xff] }
 0x52c   : > { %v4404_v45 = vpop.permute.xlu0 %4403  ;;  %6032 = vmatmul.mubr.msk.f32.gmra.mrb[8].mxu0 %vm1983_vm8, %v3637_v40  ;;  %v4447_v40 = vsel %vm1122_vm6, %v3868_v63, %v8733_v57 }
 0x52d   : > { %v4555_v37 = vsel %vm2085_vm14, %v4539_v26, %v4404_v45  ;;  %v3869_v26 = vld [vmem:[%s6738_s26 + $0xf8] sm:$0xff] }
 0x52e   : > { %6065 = vmatprep.mubr.msk.f32.mxu1 %vm2112_vm15, %v4555_v37 }
 0x52f   : > { %v4406_v0 = vpop.permute.xlu1 %4405 }
 0x530   : > { %v4556_v30 = vsel %vm2085_vm14, %v4540_v18, %v4406_v0  ;;  %v4216_v60 = vpop.permute.xlu0 %4215 }
 0x531   : > { %6066 = vmatmul.mubr.msk.f32.gmra.mrb[56].mxu1 %vm2112_vm15, %v4556_v30  ;;  %v4509_v9 = vsel %vm2034_vm11, %v4493_v29, %v4216_v60 }
 0x533   : > { %v4092_v8 = vpop.permute.xlu1 %4091 }
 0x534   : > { %v4030_v10 = vpop.permute.xlu0 %4029  ;;  %v4463_v35 = vsel %vm1983_vm8, %v4447_v40, %v4092_v8 }
 0x535   : > { %v4448_v30 = vsel %vm1122_vm6, %v3869_v26, %v4030_v10 }
 0x537   : > { %v4280_v43 = vpop.permute.xlu1 %4279 }
 0x538   : > { %v4218_v17 = vpop.permute.xlu0 %4217  ;;  %v4525_v39 = vsel %vm2051_vm12, %v4509_v9, %v4280_v43 }
 0x539   : > { %v4510_v22 = vsel %vm2034_vm11, %v4494_v47, %v4218_v17 }
 0x53b   : > { %v4156_v51 = vpop.permute.xlu1 %4155 }
 0x53c   : > { %v4094_v19 = vpop.permute.xlu0 %4093  ;;  %v4479_v23 = vsel %vm2000_vm9, %v4463_v35, %v4156_v51 }
 0x53d   : > { %v4464_v43 = vsel %vm1983_vm8, %v4448_v30, %v4094_v19  ;;  %v4495_v57 = vsel %vm2017_vm10, %v4479_v23, %v7603_v12 }
 0x53f   : > { %v4344_v24 = vpop.permute.xlu1 %4343 }
 0x540   : > { %v4282_v2 = vpop.permute.xlu0 %4281  ;;  %v4541_v50 = vsel %vm2068_vm13, %v4525_v39, %v4344_v24 }
 0x541   : > { %v6010_v53 = vpop.f32.mrb[42].mxu1  ;;  %v4526_v14 = vsel %vm2051_vm12, %v4510_v22, %v4282_v2 }
 0x542   : > { %v3605_v56 = vadd.f32 %v6010_v53, %v8471_v58  ;;  %v3599_v41 = vpop.f32.mrb[43].mxu1 }
 0x543   : > { %v3600_v59 = vadd.f32 %v8471_v58, %v3599_v41  ;;  %v4346_v55 = vpop.permute.xlu1 %4345 }
 0x544   : > { %v4158_v62 = vpop.permute.xlu0 %4157  ;;  %v3639_v28 = vmax.f32 %v3605_v56, 0.0  ;;  %v4542_v38 = vsel %vm2068_vm13, %v4526_v14, %v4346_v55 }
 0x545   : > { %v3638_v49 = vmax.f32 %v3600_v59, 0.0  ;;  %v4480_v8 = vsel %vm2000_vm9, %v4464_v43, %v4158_v62 }
 0x546   : > { %v4496_v12 = vsel %vm2017_vm10, %v4480_v8, %v7633_v25 }
 0x547   : > { %6034 = vmatprep.mubr.msk.f32.mxu0 %vm1983_vm8, %v3638_v49  ;;  %v4032_v42 = vpop.permute.xlu1 %4031 }
 0x548   : > { %v4408_v27 = vpop.permute.xlu0 %4407  ;;  %6035 = vmatmul.mubr.msk.f32.gmra.mrb[10].mxu0 %vm1983_vm8, %v3639_v28  ;;  %v4449_v46 = vsel %vm1122_vm6, %v3870_v4, %v4032_v42 }
 0x549   : > { %v4557_v32 = vsel %vm2085_vm14, %v4541_v50, %v4408_v27 }
 0x54a   : > { %6068 = vmatprep.mubr.msk.f32.mxu1 %vm2112_vm15, %v4557_v32 }
 0x54b   : > { %v4410_v48 = vpop.permute.xlu1 %4409 }
 0x54c   : > { %v4558_v34 = vsel %vm2085_vm14, %v4542_v38, %v4410_v48  ;;  %v4220_v13 = vpop.permute.xlu0 %4219 }
 0x54d   : > { %6069 = vmatmul.mubr.msk.f32.gmra.mrb[58].mxu1 %vm2112_vm15, %v4558_v34  ;;  %v4511_v51 = vsel %vm2034_vm11, %v4495_v57, %v4220_v13 }
 0x54f   : > { %v4096_v52 = vpop.permute.xlu1 %4095 }
 0x550   : > { %v4034_v44 = vpop.permute.xlu0 %4033  ;;  %v4465_v29 = vsel %vm1983_vm8, %v4449_v46, %v4096_v52 }
 0x551   : > { %v4450_v25 = vsel %vm1122_vm6, %v3871_v61, %v4034_v44 }
 0x553   : > { %v4284_v15 = vpop.permute.xlu1 %4283 }
 0x554   : > { %v4222_v54 = vpop.permute.xlu0 %4221  ;;  %v4527_v24 = vsel %vm2051_vm12, %v4511_v51, %v4284_v15 }
 0x555   : > { %v4512_v2 = vsel %vm2034_vm11, %v4496_v12, %v4222_v54 }
 0x557   : > { %v4160_v6 = vpop.permute.xlu1 %4159 }
 0x558   : > { %v4098_v31 = vpop.permute.xlu0 %4097  ;;  %v4481_v9 = vsel %vm2000_vm9, %v4465_v29, %v4160_v6 }
 0x559   : > { %v4466_v62 = vsel %vm1983_vm8, %v4450_v25, %v4098_v31  ;;  %v4497_v50 = vsel %vm2017_vm10, %v4481_v9, %v7666_v21  ;;  %v5671_v31 = vld [vmem:[%s8936_s5 + $0x3] ss:$0 sm:$0xff] }
 0x55b   : > { %v4348_v16 = vpop.permute.xlu1 %4347 }
 0x55c   : > { %v4286_v3 = vpop.permute.xlu0 %4285  ;;  %v4543_v10 = vsel %vm2068_vm13, %v4527_v24, %v4348_v16 }
 0x55d   : > { %v6013_v45 = vpop.f32.mrb[44].mxu1  ;;  %v4528_v7 = vsel %vm2051_vm12, %v4512_v2, %v4286_v3 }
 0x55e   : > { %v3615_v37 = vadd.f32 %v6013_v45, %v8471_v58  ;;  %v3609_v33 = vpop.f32.mrb[45].mxu1 }
 0x55f   : > { %v3610_v18 = vadd.f32 %v8471_v58, %v3609_v33  ;;  %v4350_v0 = vpop.permute.xlu1 %4349 }
 0x560   : > { %v4162_v60 = vpop.permute.xlu0 %4161  ;;  %v3641_v36 = vmax.f32 %v3615_v37, 0.0  ;;  %v4544_v56 = vsel %vm2068_vm13, %v4528_v7, %v4350_v0 }
 0x561   : > { %v3640_v17 = vmax.f32 %v3610_v18, 0.0  ;;  %v4482_v49 = vsel %vm2000_vm9, %v4466_v62, %v4162_v60 }
 0x562   : > { %v4498_v39 = vsel %vm2017_vm10, %v4482_v49, %v7691_v1 }
 0x563   : > { %6037 = vmatprep.mubr.msk.f32.mxu0 %vm1983_vm8, %v3640_v17  ;;  %v4224_v20 = vpop.permute.xlu1 %4223 }
 0x564   : > { %v4412_v11 = vpop.permute.xlu0 %4411  ;;  %6038 = vmatmul.mubr.msk.f32.gmra.mrb[12].mxu0 %vm1983_vm8, %v3641_v36  ;;  %v4513_v42 = vsel %vm2034_vm11, %v4497_v50, %v4224_v20 }
 0x565   : > { %v4559_v19 = vsel %vm2085_vm14, %v4543_v10, %v4412_v11 }
 0x566   : > { %6071 = vmatprep.mubr.msk.f32.mxu1 %vm2112_vm15, %v4559_v19 }
 0x567   : > { %v4226_v53 = vpop.permute.xlu1 %4225 }
 0x568   : > { %v4414_v41 = vpop.permute.xlu0 %4413  ;;  %v4514_v27 = vsel %vm2034_vm11, %v4498_v39, %v4226_v53 }
 0x569   : > { %v4560_v59 = vsel %vm2085_vm14, %v4544_v56, %v4414_v41 }
 0x56a   : > { %6072 = vmatmul.mubr.msk.f32.gmra.mrb[60].mxu1 %vm2112_vm15, %v4560_v59 }
 0x56b   : > { %v4290_v55 = vpop.permute.xlu1 %4289 }
 0x56c   : > { %v4288_v5 = vpop.permute.xlu0 %4287  ;;  %v4530_v22 = vsel %vm2051_vm12, %v4514_v27, %v4290_v55 }
 0x56d   : > { %v4529_v32 = vsel %vm2051_vm12, %v4513_v42, %v4288_v5  ;;  %v8845_v42 = vld [vmem:[#allocation2] ss:$0 sm:$0xff] }
 0x56f   : > { %v4354_v28 = vpop.permute.xlu1 %4353 }
 0x570   : > { %v4352_v47 = vpop.permute.xlu0 %4351  ;;  %v4546_v14 = vsel %vm2068_vm13, %v4530_v22, %v4354_v28 }
 0x571   : > { %v4545_v48 = vsel %vm2068_vm13, %v4529_v32, %v4352_v47  ;;  %v8850_v32 = vld [vmem:[%s8938_s7] ss:$0 sm:$0xff] }
 0x573   : > { %v4418_v38 = vpop.permute.xlu1 %4417 }
 0x574   : > { %v4562_v34 = vsel %vm2085_vm14, %v4546_v14, %v4418_v38  ;;  %v4416_v1 = vpop.permute.xlu0 %4415  ;;  %v6016_v13 = vpop.f32.mrb[46].mxu1 }
 0x575   : > { %v4561_v52 = vsel %vm2085_vm14, %v4545_v48, %v4416_v1  ;;  %v3625_v21 = vadd.f32 %v6016_v13, %v8471_v58  ;;  %v3619_v44 = vpop.f32.mrb[47].mxu1 }
 0x576   : > { %v3620_v15 = vadd.f32 %v8471_v58, %v3619_v44  ;;  %6074 = vmatprep.mubr.msk.f32.mxu1 %vm2112_vm15, %v4561_v52 }
 0x577   : > { %6075 = vmatmul.mubr.msk.f32.gmra.mrb[62].mxu1 %vm2112_vm15, %v4562_v34  ;;  %v3643_v6 = vmax.f32 %v3625_v21, 0.0 }
 0x578   : > { %v3642_v54 = vmax.f32 %v3620_v15, 0.0 }
 0x57a   : > { %6040 = vmatprep.mubr.msk.f32.mxu0 %vm1983_vm8, %v3642_v54 }
 0x57b   : > { %6041 = vmatmul.mubr.msk.f32.gmra.mrb[14].mxu0 %vm1983_vm8, %v3643_v6 }
 0x594   : > { %v6055_v63 = vpop.f32.mrb[48].mxu1 }
 0x595   : > { %v4696_v16 = vadd.f32 %v6055_v63, %v5671_v31  ;;  %v4690_v40 = vpop.f32.mrb[49].mxu1 }
 0x596   : > { %v4691_v3 = vadd.f32 %v5671_v31, %v4690_v40 }
 0x597   : > { %v4770_v58 = vmax.f32 %v4696_v16, 0.0 }
 0x598   : > { %v4769_v35 = vmax.f32 %v4691_v3, 0.0 }
 0x59a   : > { %6079 = vmatprep.mubr.msk.f32.mxu0 %vm1983_vm8, %v4769_v35 }
 0x59b   : > { %6080 = vmatmul.mubr.msk.f32.vlgmr.msra.gmra.mrb[0].mxu0 %vm1983_vm8, %v4770_v58 }
 0x5b0   : > { %v6058_v26 = vpop.f32.mrb[50].mxu1 }
 0x5b1   : > { %v4706_v45 = vadd.f32 %v6058_v26, %v5671_v31  ;;  %v4700_v23 = vpop.f32.mrb[51].mxu1 }
 0x5b2   : > { %v4701_v37 = vadd.f32 %v5671_v31, %v4700_v23 }
 0x5b3   : > { %v4772_v18 = vmax.f32 %v4706_v45, 0.0 }
 0x5b4   : > { %v4771_v33 = vmax.f32 %v4701_v37, 0.0 }
 0x5b6   : > { %6082 = vmatprep.mubr.msk.f32.mxu0 %vm1983_vm8, %v4771_v33 }
 0x5b7   : > { %6083 = vmatmul.mubr.msk.f32.gmra.mrb[2].mxu0 %vm1983_vm8, %v4772_v18 }
 0x5cc   : > { %v6061_v0 = vpop.f32.mrb[52].mxu1 }
 0x5cd   : > { %v4716_v30 = vadd.f32 %v6061_v0, %v5671_v31  ;;  %v4710_v60 = vpop.f32.mrb[53].mxu1 }
 0x5ce   : > { %v4711_v43 = vadd.f32 %v5671_v31, %v4710_v60 }
 0x5cf   : > { %v4774_v17 = vmax.f32 %v4716_v30, 0.0 }
 0x5d0   : > { %v4773_v57 = vmax.f32 %v4711_v43, 0.0 }
 0x5d2   : > { %6085 = vmatprep.mubr.msk.f32.mxu0 %vm1983_vm8, %v4773_v57 }
 0x5d3   : > { %6086 = vmatmul.mubr.msk.f32.gmra.mrb[4].mxu0 %vm1983_vm8, %v4774_v17 }
 0x5e8   : > { %v6064_v8 = vpop.f32.mrb[54].mxu1 }
 0x5e9   : > { %v4726_v51 = vadd.f32 %v6064_v8, %v5671_v31  ;;  %v4720_v36 = vpop.f32.mrb[55].mxu1 }
 0x5ea   : > { %v4721_v24 = vadd.f32 %v5671_v31, %v4720_v36 }
 0x5eb   : > { %v4776_v10 = vmax.f32 %v4726_v51, 0.0 }
 0x5ec   : > { %v4775_v20 = vmax.f32 %v4721_v24, 0.0 }
 0x5ee   : > { %6088 = vmatprep.mubr.msk.f32.mxu0 %vm1983_vm8, %v4775_v20 }
 0x5ef   : > { %6089 = vmatmul.mubr.msk.f32.gmra.mrb[6].mxu0 %vm1983_vm8, %v4776_v10 }
 0x604   : > { %v6067_v11 = vpop.f32.mrb[56].mxu1 }
 0x605   : > { %v4736_v12 = vadd.f32 %v6067_v11, %v5671_v31  ;;  %v4730_v19 = vpop.f32.mrb[57].mxu1 }
 0x606   : > { %v4731_v2 = vadd.f32 %v5671_v31, %v4730_v19 }
 0x607   : > { %v4778_v53 = vmax.f32 %v4736_v12, 0.0 }
 0x608   : > { %v4777_v7 = vmax.f32 %v4731_v2, 0.0 }
 0x60a   : > { %6091 = vmatprep.mubr.msk.f32.mxu0 %vm1983_vm8, %v4777_v7 }
 0x60b   : > { %6092 = vmatmul.mubr.msk.f32.gmra.mrb[8].mxu0 %vm1983_vm8, %v4778_v53 }
 0x620   : > { %v6070_v61 = vpop.f32.mrb[58].mxu1 }
 0x621   : > { %v4746_v56 = vadd.f32 %v6070_v61, %v5671_v31  ;;  %v4740_v41 = vpop.f32.mrb[59].mxu1 }
 0x622   : > { %v4741_v4 = vadd.f32 %v5671_v31, %v4740_v41 }
 0x623   : > { %v4780_v25 = vmax.f32 %v4746_v56, 0.0 }
 0x624   : > { %v4779_v59 = vmax.f32 %v4741_v4, 0.0 }
 0x626   : > { %6094 = vmatprep.mubr.msk.f32.mxu0 %vm1983_vm8, %v4779_v59 }
 0x627   : > { %6095 = vmatmul.mubr.msk.f32.gmra.mrb[10].mxu0 %vm1983_vm8, %v4780_v25 }
 0x63d   : > { %v6073_v55 = vpop.f32.mrb[60].mxu1 }
 0x63e   : > { %v4756_v46 = vadd.f32 %v6073_v55, %v5671_v31  ;;  %v4750_v62 = vpop.f32.mrb[61].mxu1 }
 0x63f   : > { %v4751_v5 = vadd.f32 %v5671_v31, %v4750_v62 }
 0x640   : > { %v4782_v49 = vmax.f32 %v4756_v46, 0.0 }
 0x641   : > { %v4781_v29 = vmax.f32 %v4751_v5, 0.0 }
 0x643   : > { %6097 = vmatprep.mubr.msk.f32.mxu0 %vm1983_vm8, %v4781_v29 }
 0x644   : > { %6098 = vmatmul.mubr.msk.f32.gmra.mrb[12].mxu0 %vm1983_vm8, %v4782_v49 }
 0x64a   : > { %v6076_v9 = vpop.f32.mrb[62].mxu1 }
 0x64b   : > { %v4766_v28 = vadd.f32 %v6076_v9, %v5671_v31  ;;  %v4760_v39 = vpop.f32.mrb[63].mxu1 }
 0x64c   : > { %v4761_v47 = vadd.f32 %v5671_v31, %v4760_v39 }
 0x64d   : > { %v4784_v27 = vmax.f32 %v4766_v28, 0.0 }
 0x64e   : > { %v4783_v50 = vmax.f32 %v4761_v47, 0.0 }
 0x650   : > { %6100 = vmatprep.mubr.msk.f32.mxu0 %vm1983_vm8, %v4783_v50 }
 0x651   : > { %6101 = vmatmul.mubr.msk.f32.gmra.mrb[14].mxu0 %vm1983_vm8, %v4784_v27 }
 0x66e   : > { %v6081_v22 = vpop.f32.mrb[0].mxu0 }
 0x66f   : > { %v5003_v14 = vadd.f32 %v6081_v22, %v8845_v42  ;;  %v4900_v38 = vpop.f32.mrb[1].mxu0 }
 0x670   : > { %v5002_v48 = vadd.f32 %v8845_v42, %v4900_v38 }
 0x671   : > { %v5026_v34 = vadd.f32 %v8850_v32, %v5003_v14 }
 0x672   : > { %v5025_v1 = vadd.f32 %v8850_v32, %v5002_v48 }
 0x673   : > { %v5042_v13 = vmax.f32 %v5026_v34, 0.0 }
 0x674   : > { %v5041_v52 = vmax.f32 %v5025_v1, 0.0 }
 0x675   : > { %5058 = vst.msk [vmem:[%s6378_s16 + $0x8] sm:$0xff] %vm1983_vm8, %v5042_v13 }
 0x676   : > { %5057 = vst.msk [vmem:[%s6378_s16] sm:$0xff] %vm1983_vm8, %v5041_v52 }
 0x68a   : > { %v6084_v21 = vpop.f32.mrb[2].mxu0 }
 0x68b   : > { %v5005_v44 = vadd.f32 %v6084_v21, %v8845_v42  ;;  %v4910_v15 = vpop.f32.mrb[3].mxu0 }
 0x68c   : > { %v5004_v54 = vadd.f32 %v8845_v42, %v4910_v15 }
 0x68d   : > { %v5028_v6 = vadd.f32 %v8850_v32, %v5005_v44 }
 0x68e   : > { %v5027_v31 = vadd.f32 %v8850_v32, %v5004_v54 }
 0x68f   : > { %v5044_v63 = vmax.f32 %v5028_v6, 0.0 }
 0x690   : > { %v5043_v16 = vmax.f32 %v5027_v31, 0.0 }
 0x691   : > { %5060 = vst.msk [vmem:[%s6378_s16 + $0x18] sm:$0xff] %vm1983_vm8, %v5044_v63 }
 0x692   : > { %5059 = vst.msk [vmem:[%s6378_s16 + $0x10] sm:$0xff] %vm1983_vm8, %v5043_v16 }
 0x6a6   : > { %v6087_v40 = vpop.f32.mrb[4].mxu0 }
 0x6a7   : > { %v5007_v3 = vadd.f32 %v6087_v40, %v8845_v42  ;;  %v4920_v35 = vpop.f32.mrb[5].mxu0 }
 0x6a8   : > { %v5006_v58 = vadd.f32 %v8845_v42, %v4920_v35 }
 0x6a9   : > { %v5030_v26 = vadd.f32 %v8850_v32, %v5007_v3 }
 0x6aa   : > { %v5029_v45 = vadd.f32 %v8850_v32, %v5006_v58 }
 0x6ab   : > { %v5046_v23 = vmax.f32 %v5030_v26, 0.0 }
 0x6ac   : > { %v5045_v37 = vmax.f32 %v5029_v45, 0.0 }
 0x6ad   : > { %5062 = vst.msk [vmem:[%s6378_s16 + $0x28] sm:$0xff] %vm1983_vm8, %v5046_v23 }
 0x6ae   : > { %5061 = vst.msk [vmem:[%s6378_s16 + $0x20] sm:$0xff] %vm1983_vm8, %v5045_v37 }
 0x6c2   : > { %v6090_v33 = vpop.f32.mrb[6].mxu0 }
 0x6c3   : > { %v5009_v18 = vadd.f32 %v6090_v33, %v8845_v42  ;;  %v4930_v0 = vpop.f32.mrb[7].mxu0 }
 0x6c4   : > { %v5008_v30 = vadd.f32 %v8845_v42, %v4930_v0 }
 0x6c5   : > { %v5032_v60 = vadd.f32 %v8850_v32, %v5009_v18 }
 0x6c6   : > { %v5031_v43 = vadd.f32 %v8850_v32, %v5008_v30 }
 0x6c7   : > { %v5048_v57 = vmax.f32 %v5032_v60, 0.0 }
 0x6c8   : > { %v5047_v17 = vmax.f32 %v5031_v43, 0.0 }
 0x6c9   : > { %5064 = vst.msk [vmem:[%s6378_s16 + $0x38] sm:$0xff] %vm1983_vm8, %v5048_v57 }
 0x6ca   : > { %5063 = vst.msk [vmem:[%s6378_s16 + $0x30] sm:$0xff] %vm1983_vm8, %v5047_v17 }
 0x6de   : > { %v6093_v8 = vpop.f32.mrb[8].mxu0 }
 0x6df   : > { %v5011_v51 = vadd.f32 %v6093_v8, %v8845_v42  ;;  %v4940_v36 = vpop.f32.mrb[9].mxu0 }
 0x6e0   : > { %v5010_v24 = vadd.f32 %v8845_v42, %v4940_v36 }
 0x6e1   : > { %v5034_v20 = vadd.f32 %v8850_v32, %v5011_v51 }
 0x6e2   : > { %v5033_v10 = vadd.f32 %v8850_v32, %v5010_v24 }
 0x6e3   : > { %v5050_v11 = vmax.f32 %v5034_v20, 0.0 }
 0x6e4   : > { %v5049_v12 = vmax.f32 %v5033_v10, 0.0 }
 0x6e5   : > { %5066 = vst.msk [vmem:[%s6378_s16 + $0x48] sm:$0xff] %vm1983_vm8, %v5050_v11 }
 0x6e6   : > { %5065 = vst.msk [vmem:[%s6378_s16 + $0x40] sm:$0xff] %vm1983_vm8, %v5049_v12 }
 0x6fa   : > { %v6096_v19 = vpop.f32.mrb[10].mxu0 }
 0x6fb   : > { %v5013_v2 = vadd.f32 %v6096_v19, %v8845_v42  ;;  %v4950_v7 = vpop.f32.mrb[11].mxu0 }
 0x6fc   : > { %v5012_v53 = vadd.f32 %v8845_v42, %v4950_v7 }
 0x6fd   : > { %v5036_v61 = vadd.f32 %v8850_v32, %v5013_v2 }
 0x6fe   : > { %v5035_v56 = vadd.f32 %v8850_v32, %v5012_v53 }
 0x6ff   : > { %v5052_v41 = vmax.f32 %v5036_v61, 0.0 }
 0x700   : > { %v5051_v4 = vmax.f32 %v5035_v56, 0.0 }
 0x701   : > { %5068 = vst.msk [vmem:[%s6378_s16 + $0x58] sm:$0xff] %vm1983_vm8, %v5052_v41 }
 0x702   : > { %5067 = vst.msk [vmem:[%s6378_s16 + $0x50] sm:$0xff] %vm1983_vm8, %v5051_v4 }
 0x717   : > { %v6099_v59 = vpop.f32.mrb[12].mxu0 }
 0x718   : > { %v5015_v25 = vadd.f32 %v6099_v59, %v8845_v42  ;;  %v4960_v55 = vpop.f32.mrb[13].mxu0 }
 0x719   : > { %v5014_v46 = vadd.f32 %v8845_v42, %v4960_v55 }
 0x71a   : > { %v5038_v62 = vadd.f32 %v8850_v32, %v5015_v25 }
 0x71b   : > { %v5037_v5 = vadd.f32 %v8850_v32, %v5014_v46 }
 0x71c   : > { %v5054_v29 = vmax.f32 %v5038_v62, 0.0 }
 0x71d   : > { %v5053_v49 = vmax.f32 %v5037_v5, 0.0 }
 0x71e   : > { %5070 = vst.msk [vmem:[%s6378_s16 + $0x68] sm:$0xff] %vm1983_vm8, %v5054_v29 }
 0x71f   : > { %5069 = vst.msk [vmem:[%s6378_s16 + $0x60] sm:$0xff] %vm1983_vm8, %v5053_v49 }
 0x724   : > { %v6102_v9 = vpop.f32.mrb[14].mxu0 }
 0x725   : > { %v5017_v28 = vadd.f32 %v6102_v9, %v8845_v42  ;;  %v4970_v39 = vpop.f32.mrb[15].mxu0 }
 0x726   : > { %v5016_v47 = vadd.f32 %v8845_v42, %v4970_v39 }
 0x727   : > { %v5040_v50 = vadd.f32 %v8850_v32, %v5017_v28 }
 0x728   : > { %v5039_v27 = vadd.f32 %v8850_v32, %v5016_v47 }
 0x729   : > { %v5056_v22 = vmax.f32 %v5040_v50, 0.0 }
 0x72a   : > { %v5055_v14 = vmax.f32 %v5039_v27, 0.0 }
 0x72b   : > { %5072 = vst.msk [vmem:[%s6378_s16 + $0x78] sm:$0xff] %vm1983_vm8, %v5056_v22 }
 0x72c   : > { %5071 = vst.msk [vmem:[%s6378_s16 + $0x70] sm:$0xff] %vm1983_vm8, %v5055_v14 }
 0x72d PF: > { %s21_s21 = sadd.s32 1, %s6265_s21   ;;  %s8985_s15 = sld [smem:[#allocation3_spill]] }
 0x72e   : > { %p18_p8 = scmp.ge.s32.totalorder %s21_s21, 6   ;;  %s8986_s28 = sld [smem:[#allocation4_spill]] }
 0x72f   : > { %s8987_s17 = smov %s6257_s19  ;;  %s8988_s18 = smov %s6261_s20 }
 0x730   :  { %20 = sbr.rel (!%p18_p8) target bundleno = 3 (0x3), region = 105 }
 0x733   : > { %s8989_s19 = smov %s8985_s15 }
 0x734   : > { %s8990_s20 = smov %s8986_s28 }

</bundles_post_ra>
